<compile_context>
chip_gen: v7x
topology: tpu7x:2x2x1
jax: 0.10.0
libtpu: 0.0.40
codegen_flags: <defaults>
</compile_context>

<pallas_src>
import functools

import jax
import jax.numpy as jnp
from jax import lax
from jax.experimental import pallas as pl
from jax.experimental.pallas import tpu as pltpu

EPS = 1e-5
LANE = 128


def _round_up(c, m=LANE):
    return max(m, ((c + m - 1) // m) * m)


def _pad_last(a, target):
    pad = target - a.shape[-1]
    if pad == 0:
        return a
    return jnp.pad(a, [(0, 0)] * (a.ndim - 1) + [(0, pad)])


# ------------------------------ kernel bodies --------------------------------

def _conv1x1_stats_kernel(x_ref, w_ref, y_ref, ssum_ref, ssq_ref, *, mmdt):
    """y = x @ w (bf16 operands, f32 accum) + per-image sum / sum-of-squares."""
    x = x_ref[0].astype(mmdt)                                        # (HW, Cin)
    y = jnp.dot(x, w_ref[...], preferred_element_type=jnp.float32)   # (HW, Co)
    y_ref[0] = y
    ssum_ref[0] = jnp.sum(y, axis=0, keepdims=True)
    ssq_ref[0] = jnp.sum(y * y, axis=0, keepdims=True)


def _bnrelu_conv1x1_stats_kernel(y_in_ref, sc_ref, sh_ref, w_ref,
                                 y_ref, ssum_ref, ssq_ref, *, mmdt):
    """y = relu(y_in*scale + shift) @ w + per-image stats."""
    z = jnp.maximum(y_in_ref[0] * sc_ref[...] + sh_ref[...], 0.0).astype(mmdt)
    y = jnp.dot(z, w_ref[...], preferred_element_type=jnp.float32)
    y_ref[0] = y
    ssum_ref[0] = jnp.sum(y, axis=0, keepdims=True)
    ssq_ref[0] = jnp.sum(y * y, axis=0, keepdims=True)


def _bnrelu_conv3x3_stats_kernel(y_in_ref, sc_ref, sh_ref, w_ref,
                                 y_ref, ssum_ref, ssq_ref,
                                 pad_ref, col_ref, *, H, W, Cp, mmdt):
    """bn+relu, 1-px zero halo, im2col, single K=9*Cp MXU matmul, stats."""
    HW = H * W

    # Zero only the halo border (interior is fully rewritten each step).
    zero_row = jnp.zeros((1, W + 2, Cp), pad_ref.dtype)
    zero_col = jnp.zeros((H + 2, 1, Cp), pad_ref.dtype)
    pad_ref[0:1, :, :] = zero_row
    pad_ref[H + 1:H + 2, :, :] = zero_row
    pad_ref[:, 0:1, :] = zero_col
    pad_ref[:, W + 1:W + 2, :] = zero_col

    z = jnp.maximum(y_in_ref[0] * sc_ref[...] + sh_ref[...], 0.0)     # f32
    pad_ref[1:H + 1, 1:W + 1, :] = z.reshape(H, W, Cp)

    # im2col patches -> (HW, 9*Cp); lane-aligned column writes (k*Cp % 128 == 0).
    # TODO(synk): the dh/dw reads start at sublane offsets 0/1/2 (masked loads);
    #             an 8-aligned halo layout would remove them.
    for k in range(9):
        dh, dw = k // 3, k % 3
        col_ref[:, k * Cp:(k + 1) * Cp] = (
            pad_ref[dh:dh + H, dw:dw + W, :].reshape(HW, Cp).astype(mmdt))

    y = jnp.dot(col_ref[...], w_ref[...], preferred_element_type=jnp.float32)
    y_ref[0] = y
    ssum_ref[0] = jnp.sum(y, axis=0, keepdims=True)
    ssq_ref[0] = jnp.sum(y * y, axis=0, keepdims=True)


def _bn_residual_relu_kernel(y_in_ref, x_ref, sc_ref, sh_ref, out_ref):
    out_ref[0] = jnp.maximum(
        y_in_ref[0] * sc_ref[...] + sh_ref[...] + x_ref[0], 0.0)


# --------------------------------- wrapper -----------------------------------

def _bn_scale_shift(ssum, ssq, count, gamma, beta):
    """Fold training-mode BN (batch stats, biased var, eps) to scale/shift."""
    s = jnp.sum(ssum, axis=0)            # (1, C)
    sq = jnp.sum(ssq, axis=0)            # (1, C)
    mean = s / count
    var = sq / count - mean * mean
    invstd = lax.rsqrt(var + EPS)
    scale = gamma.reshape(1, -1) * invstd
    shift = beta.reshape(1, -1) - mean * scale
    return scale.astype(jnp.float32), shift.astype(jnp.float32)


def bottleneck_pallas_nhwc(x_nhwc, params, matmul_dtype=jnp.bfloat16):
    """Bottleneck forward on an NHWC tensor (no layout transposes)."""
    N, H, W, Cin = x_nhwc.shape
    P = params["w2_oihw"].shape[0]                 # planes
    Cout = 4 * P
    assert Cin == Cout, "stride=1 / downsample=None requires inplanes == 4*planes"
    HW = H * W
    Cin_p, P_p, Cout_p = _round_up(Cin), _round_up(P), _round_up(Cout)

    # lane-dense slab, channels zero-padded up to a multiple of 128
    x_slab = _pad_last(x_nhwc.reshape(N, HW, Cin).astype(jnp.float32), Cin_p)

    # weights -> matmul layout, zero-padded channels, bf16 MXU operands
    w1 = jnp.pad(params["w1_oihw"][:, :, 0, 0].T,
                 ((0, Cin_p - Cin), (0, P_p - P))).astype(matmul_dtype)
    w2 = jnp.transpose(params["w2_oihw"], (2, 3, 1, 0))     # (3,3,in,out), k=dh*3+dw
    w2 = jnp.pad(w2, ((0, 0), (0, 0), (0, P_p - P), (0, P_p - P)))
    w2 = w2.reshape(9 * P_p, P_p).astype(matmul_dtype)
    w3 = jnp.pad(params["w3_oihw"][:, :, 0, 0].T,
                 ((0, P_p - P), (0, Cout_p - Cout))).astype(matmul_dtype)

    g1, b1 = _pad_last(params["g1"], P_p), _pad_last(params["b1"], P_p)
    g2, b2 = _pad_last(params["g2"], P_p), _pad_last(params["b2"], P_p)
    g3, b3 = _pad_last(params["g3"], Cout_p), _pad_last(params["b3"], Cout_p)

    count = jnp.float32(N * HW)

    cparams = pltpu.CompilerParams(
        dimension_semantics=("parallel",),          # v7x: shard batch over both TCs
        vmem_limit_bytes=48 * 1024 * 1024)          # sized against v7x's 64 MiB VMEM

    def row_spec(c):
        return pl.BlockSpec((1, HW, c), lambda n: (n, 0, 0))

    def stat_spec(c):
        return pl.BlockSpec((1, 1, c), lambda n: (n, 0, 0))

    def const_spec(shape):
        return pl.BlockSpec(shape, lambda n: tuple(0 for _ in shape))

    def stat_shapes(c):
        return (jax.ShapeDtypeStruct((N, 1, c), jnp.float32),
                jax.ShapeDtypeStruct((N, 1, c), jnp.float32))

    # ---- pass 1: conv1 (1x1) + partial stats --------------------------------
    y1, s1, q1 = pl.pallas_call(
        functools.partial(_conv1x1_stats_kernel, mmdt=matmul_dtype),
        grid=(N,),
        in_specs=[row_spec(Cin_p), const_spec((Cin_p, P_p))],
        out_specs=(row_spec(P_p), stat_spec(P_p), stat_spec(P_p)),
        out_shape=(jax.ShapeDtypeStruct((N, HW, P_p), jnp.float32),
                   *stat_shapes(P_p)),
        compiler_params=cparams,
    )(x_slab, w1)
    sc1, sh1 = _bn_scale_shift(s1, q1, count, g1, b1)

    # ---- pass 2: bn1+relu, conv2 (3x3 via im2col) + partial stats -----------
    y2, s2, q2 = pl.pallas_call(
        functools.partial(_bnrelu_conv3x3_stats_kernel,
                          H=H, W=W, Cp=P_p, mmdt=matmul_dtype),
        grid=(N,),
        in_specs=[row_spec(P_p), const_spec((1, P_p)), const_spec((1, P_p)),
                  const_spec((9 * P_p, P_p))],
        out_specs=(row_spec(P_p), stat_spec(P_p), stat_spec(P_p)),
        out_shape=(jax.ShapeDtypeStruct((N, HW, P_p), jnp.float32),
                   *stat_shapes(P_p)),
        scratch_shapes=[pltpu.VMEM((H + 2, W + 2, P_p), jnp.float32),
                        pltpu.VMEM((HW, 9 * P_p), matmul_dtype)],
        compiler_params=cparams,
    )(y1, sc1, sh1, w2)
    sc2, sh2 = _bn_scale_shift(s2, q2, count, g2, b2)

    # ---- pass 3: bn2+relu, conv3 (1x1) + partial stats -----------------------
    y3, s3, q3 = pl.pallas_call(
        functools.partial(_bnrelu_conv1x1_stats_kernel, mmdt=matmul_dtype),
        grid=(N,),
        in_specs=[row_spec(P_p), const_spec((1, P_p)), const_spec((1, P_p)),
                  const_spec((P_p, Cout_p))],
        out_specs=(row_spec(Cout_p), stat_spec(Cout_p), stat_spec(Cout_p)),
        out_shape=(jax.ShapeDtypeStruct((N, HW, Cout_p), jnp.float32),
                   *stat_shapes(Cout_p)),
        compiler_params=cparams,
    )(y2, sc2, sh2, w3)
    sc3, sh3 = _bn_scale_shift(s3, q3, count, g3, b3)

    # ---- pass 4: bn3 + residual + relu ---------------------------------------
    out_slab = pl.pallas_call(
        _bn_residual_relu_kernel,
        grid=(N,),
        in_specs=[row_spec(Cout_p), row_spec(Cin_p),
                  const_spec((1, Cout_p)), const_spec((1, Cout_p))],
        out_specs=row_spec(Cout_p),
        out_shape=jax.ShapeDtypeStruct((N, HW, Cout_p), jnp.float32),
        compiler_params=cparams,
    )(y3, x_slab, sc3, sh3)

    return out_slab[:, :, :Cout].reshape(N, H, W, Cout)


def bottleneck_pallas(x_nchw, params, matmul_dtype=jnp.bfloat16):
    """NCHW wrapper matching the PyTorch module's layout.

    NOTE: in a full network keep activations NHWC end-to-end and call
    bottleneck_pallas_nhwc directly — the two transposes below are full
    HBM read+write passes a per-block wrapper should not pay.
    """
    x_nhwc = jnp.transpose(x_nchw, (0, 2, 3, 1))
    out = bottleneck_pallas_nhwc(x_nhwc, params, matmul_dtype=matmul_dtype)
    return jnp.transpose(out, (0, 3, 1, 2))


# ----------------------------- pure-JAX reference -----------------------------

def _bn_train_nchw(x, gamma, beta):
    mean = jnp.mean(x, axis=(0, 2, 3), keepdims=True)
    var = jnp.mean((x - mean) ** 2, axis=(0, 2, 3), keepdims=True)
    return ((x - mean) * lax.rsqrt(var + EPS) * gamma.reshape(1, -1, 1, 1)
            + beta.reshape(1, -1, 1, 1))


def _conv_ref(a, w, pad, dtype):
    dn = ("NCHW", "OIHW", "NCHW")
    return lax.conv_general_dilated(
        a.astype(dtype), w.astype(dtype), window_strides=(1, 1),
        padding=[(pad, pad), (pad, pad)], dimension_numbers=dn,
        preferred_element_type=jnp.float32)


def bottleneck_ref(x, params, conv_dtype=jnp.float32):
    out = jax.nn.relu(_bn_train_nchw(_conv_ref(x, params["w1_oihw"], 0, conv_dtype),
                                     params["g1"], params["b1"]))
    out = jax.nn.relu(_bn_train_nchw(_conv_ref(out, params["w2_oihw"], 1, conv_dtype),
                                     params["g2"], params["b2"]))
    out = _bn_train_nchw(_conv_ref(out, params["w3_oihw"], 0, conv_dtype),
                         params["g3"], params["b3"])
    return jax.nn.relu(out + x)


if __name__ == "__main__":
    N, planes, H, W = 2, 4, 16, 16
    inplanes = planes * 4                       # expansion=4, residual adds cleanly
    key = jax.random.PRNGKey(0)
    kx, k1, k2, k3 = jax.random.split(key, 4)

    x = jax.random.normal(kx, (N, inplanes, H, W), jnp.float32)
    params = {
        "w1_oihw": 0.1 * jax.random.normal(k1, (planes, inplanes, 1, 1), jnp.float32),
        "w2_oihw": 0.1 * jax.random.normal(k2, (planes, planes, 3, 3), jnp.float32),
        "w3_oihw": 0.1 * jax.random.normal(k3, (planes * 4, planes, 1, 1), jnp.float32),
        "g1": jnp.ones((planes,), jnp.float32), "b1": jnp.zeros((planes,), jnp.float32),
        "g2": jnp.ones((planes,), jnp.float32), "b2": jnp.zeros((planes,), jnp.float32),
        "g3": jnp.ones((planes * 4,), jnp.float32),
        "b3": jnp.zeros((planes * 4,), jnp.float32),
    }

    run = jax.jit(bottleneck_pallas)
    out = jax.block_until_ready(run(x, params))

    # Reference with the same bf16 conv-operand quantization points (tight tol),
    # plus a pure-f32 reference as a loose sanity bound on the bf16 kernel.
    ref_bf16 = jax.block_until_ready(bottleneck_ref(x, params, conv_dtype=jnp.bfloat16))
    ref_f32 = jax.block_until_ready(bottleneck_ref(x, params, conv_dtype=jnp.float32))

    assert out.shape == (N, inplanes, H, W)
    assert jnp.allclose(out, ref_bf16, rtol=2e-3, atol=2e-3), \
        float(jnp.max(jnp.abs(out - ref_bf16)))
    assert jnp.allclose(out, ref_f32, rtol=1e-1, atol=1e-1), \
        float(jnp.max(jnp.abs(out - ref_f32)))
    print("KERNEL_OK")
</pallas_src>

<mosaic_0001>
module attributes {stable_mosaic.version = 11 : i64} {
  func.func @_conv1x1_stats_kernel(%arg0: i32, %arg1: memref<1x256x128xf32, #tpu.memory_space<vmem>>, %arg2: memref<128x128xbf16, #tpu.memory_space<vmem>>, %arg3: memref<1x256x128xf32, #tpu.memory_space<vmem>>, %arg4: memref<1x1x128xf32, #tpu.memory_space<vmem>>, %arg5: memref<1x1x128xf32, #tpu.memory_space<vmem>>) attributes {dimension_semantics = [#tpu.dimension_semantics<parallel>], iteration_bounds = array<i64: 2>, scalar_prefetch = 0 : i64, scratch_operands = 0 : i64, tpu.core_type = #tpu.core_type<tc>, window_params = [{transform_indices = @transform_0, window_bounds = array<i64: 1, 256, 128>}, {pipeline_mode = #tpu.pipeline_mode<synchronous>, transform_indices = @transform_1, window_bounds = array<i64: 128, 128>}, {transform_indices = @transform_2, window_bounds = array<i64: 1, 256, 128>}, {transform_indices = @transform_3, window_bounds = array<i64: 1, 1, 128>}, {transform_indices = @transform_4, window_bounds = array<i64: 1, 1, 128>}]} {
    %c0 = arith.constant 0 : index
    %c0_0 = arith.constant 0 : index
    %c0_1 = arith.constant 0 : index
    %0 = vector.load %arg1[%c0, %c0_0, %c0_1] : memref<1x256x128xf32, #tpu.memory_space<vmem>>, vector<1x256x128xf32>
    %1 = vector.shape_cast %0 : vector<1x256x128xf32> to vector<256x128xf32>
    %2 = arith.truncf %1 : vector<256x128xf32> to vector<256x128xbf16>
    %c0_2 = arith.constant 0 : index
    %c0_3 = arith.constant 0 : index
    %3 = vector.load %arg2[%c0_2, %c0_3] : memref<128x128xbf16, #tpu.memory_space<vmem>>, vector<128x128xbf16>
    %cst = arith.constant dense<0.000000e+00> : vector<256x128xf32>
    %4 = tpu.matmul %2, %3, %cst {dimension_numbers = #tpu.dot_dimension_numbers<[1], [0], [0], [1], [0, 0, 1, 1], [], []>} : vector<256x128xbf16>, vector<128x128xbf16>, vector<256x128xf32> -> vector<256x128xf32>
    %c0_4 = arith.constant 0 : index
    %c0_5 = arith.constant 0 : index
    %c0_6 = arith.constant 0 : index
    %5 = vector.load %arg3[%c0_4, %c0_5, %c0_6] : memref<1x256x128xf32, #tpu.memory_space<vmem>>, vector<1x256x128xf32>
    %6 = vector.shape_cast %5 : vector<1x256x128xf32> to vector<256x128xf32>
    %7 = vector.shape_cast %4 : vector<256x128xf32> to vector<1x256x128xf32>
    tpu.vector_store %arg3[%c0_4, %c0_5, %c0_6], %7 {strides = array<i32>} : memref<1x256x128xf32, #tpu.memory_space<vmem>>, vector<1x256x128xf32>,
    %cst_7 = arith.constant dense<0.000000e+00> : vector<128xf32>
    %8 = vector.multi_reduction <add>, %4, %cst_7 [0] : vector<256x128xf32> to vector<128xf32>
    %9 = vector.shape_cast %8 : vector<128xf32> to vector<1x128xf32>
    %c0_8 = arith.constant 0 : index
    %c0_9 = arith.constant 0 : index
    %c0_10 = arith.constant 0 : index
    %10 = vector.load %arg4[%c0_8, %c0_9, %c0_10] : memref<1x1x128xf32, #tpu.memory_space<vmem>>, vector<1x1x128xf32>
    %11 = vector.shape_cast %10 : vector<1x1x128xf32> to vector<1x128xf32>
    %12 = vector.shape_cast %9 : vector<1x128xf32> to vector<1x1x128xf32>
    tpu.vector_store %arg4[%c0_8, %c0_9, %c0_10], %12 {strides = array<i32>} : memref<1x1x128xf32, #tpu.memory_space<vmem>>, vector<1x1x128xf32>,
    %13 = arith.mulf %4, %4 : vector<256x128xf32>
    %cst_11 = arith.constant dense<0.000000e+00> : vector<128xf32>
    %14 = vector.multi_reduction <add>, %13, %cst_11 [0] : vector<256x128xf32> to vector<128xf32>
    %15 = vector.shape_cast %14 : vector<128xf32> to vector<1x128xf32>
    %c0_12 = arith.constant 0 : index
    %c0_13 = arith.constant 0 : index
    %c0_14 = arith.constant 0 : index
    %16 = vector.load %arg5[%c0_12, %c0_13, %c0_14] : memref<1x1x128xf32, #tpu.memory_space<vmem>>, vector<1x1x128xf32>
    %17 = vector.shape_cast %16 : vector<1x1x128xf32> to vector<1x128xf32>
    %18 = vector.shape_cast %15 : vector<1x128xf32> to vector<1x1x128xf32>
    tpu.vector_store %arg5[%c0_12, %c0_13, %c0_14], %18 {strides = array<i32>} : memref<1x1x128xf32, #tpu.memory_space<vmem>>, vector<1x1x128xf32>,
    return
  }
  func.func @transform_0(%arg0: i32) -> (i32, i32, i32) {
    %c0_i32 = arith.constant 0 : i32
    %c0_i32_0 = arith.constant 0 : i32
    %c0_i32_1 = arith.constant 0 : i32
    return %arg0, %c0_i32, %c0_i32_0 : i32, i32, i32
  }
  func.func @transform_1(%arg0: i32) -> (i32, i32) {
    %c0_i32 = arith.constant 0 : i32
    %c0_i32_0 = arith.constant 0 : i32
    %c0_i32_1 = arith.constant 0 : i32
    return %c0_i32, %c0_i32_0 : i32, i32
  }
  func.func @transform_2(%arg0: i32) -> (i32, i32, i32) {
    %c0_i32 = arith.constant 0 : i32
    %c0_i32_0 = arith.constant 0 : i32
    %c0_i32_1 = arith.constant 0 : i32
    return %arg0, %c0_i32, %c0_i32_0 : i32, i32, i32
  }
  func.func @transform_3(%arg0: i32) -> (i32, i32, i32) {
    %c0_i32 = arith.constant 0 : i32
    %c0_i32_0 = arith.constant 0 : i32
    %c0_i32_1 = arith.constant 0 : i32
    return %arg0, %c0_i32, %c0_i32_0 : i32, i32, i32
  }
  func.func @transform_4(%arg0: i32) -> (i32, i32, i32) {
    %c0_i32 = arith.constant 0 : i32
    %c0_i32_0 = arith.constant 0 : i32
    %c0_i32_1 = arith.constant 0 : i32
    return %arg0, %c0_i32, %c0_i32_0 : i32, i32, i32
  }
}

module attributes {stable_mosaic.version = 11 : i64} {
  func.func @_bnrelu_conv3x3_stats_kernel(%arg0: i32, %arg1: memref<1x256x128xf32, #tpu.memory_space<vmem>>, %arg2: memref<1x128xf32, #tpu.memory_space<vmem>>, %arg3: memref<1x128xf32, #tpu.memory_space<vmem>>, %arg4: memref<1152x128xbf16, #tpu.memory_space<vmem>>, %arg5: memref<1x256x128xf32, #tpu.memory_space<vmem>>, %arg6: memref<1x1x128xf32, #tpu.memory_space<vmem>>, %arg7: memref<1x1x128xf32, #tpu.memory_space<vmem>>, %arg8: memref<18x18x128xf32, #tpu.memory_space<vmem>>, %arg9: memref<256x1152xbf16, #tpu.memory_space<vmem>>) attributes {dimension_semantics = [#tpu.dimension_semantics<parallel>], iteration_bounds = array<i64: 2>, scalar_prefetch = 0 : i64, scratch_operands = 2 : i64, tpu.core_type = #tpu.core_type<tc>, window_params = [{transform_indices = @transform_0, window_bounds = array<i64: 1, 256, 128>}, {pipeline_mode = #tpu.pipeline_mode<synchronous>, transform_indices = @transform_1, window_bounds = array<i64: 1, 128>}, {pipeline_mode = #tpu.pipeline_mode<synchronous>, transform_indices = @transform_2, window_bounds = array<i64: 1, 128>}, {pipeline_mode = #tpu.pipeline_mode<synchronous>, transform_indices = @transform_3, window_bounds = array<i64: 1152, 128>}, {transform_indices = @transform_4, window_bounds = array<i64: 1, 256, 128>}, {transform_indices = @transform_5, window_bounds = array<i64: 1, 1, 128>}, {transform_indices = @transform_6, window_bounds = array<i64: 1, 1, 128>}]} {
    %cst = arith.constant 0.000000e+00 : f32
    %0 = vector.broadcast %cst : f32 to vector<1x18x128xf32>
    %cst_0 = arith.constant 0.000000e+00 : f32
    %1 = vector.broadcast %cst_0 : f32 to vector<18x1x128xf32>
    %c0 = arith.constant 0 : index
    %c0_1 = arith.constant 0 : index
    %c0_2 = arith.constant 0 : index
    %2 = vector.load %arg8[%c0, %c0_1, %c0_2] : memref<18x18x128xf32, #tpu.memory_space<vmem>>, vector<1x18x128xf32>
    tpu.vector_store %arg8[%c0, %c0_1, %c0_2], %0 {strides = array<i32>} : memref<18x18x128xf32, #tpu.memory_space<vmem>>, vector<1x18x128xf32>,
    %c17 = arith.constant 17 : index
    %c0_3 = arith.constant 0 : index
    %c0_4 = arith.constant 0 : index
    %3 = vector.load %arg8[%c17, %c0_3, %c0_4] : memref<18x18x128xf32, #tpu.memory_space<vmem>>, vector<1x18x128xf32>
    tpu.vector_store %arg8[%c17, %c0_3, %c0_4], %0 {strides = array<i32>} : memref<18x18x128xf32, #tpu.memory_space<vmem>>, vector<1x18x128xf32>,
    %c0_5 = arith.constant 0 : index
    %c0_6 = arith.constant 0 : index
    %c0_7 = arith.constant 0 : index
    %4 = vector.load %arg8[%c0_5, %c0_6, %c0_7] : memref<18x18x128xf32, #tpu.memory_space<vmem>>, vector<18x1x128xf32>
    tpu.vector_store %arg8[%c0_5, %c0_6, %c0_7], %1 {strides = array<i32>} : memref<18x18x128xf32, #tpu.memory_space<vmem>>, vector<18x1x128xf32>,
    %c0_8 = arith.constant 0 : index
    %c17_9 = arith.constant 17 : index
    %c0_10 = arith.constant 0 : index
    %5 = vector.load %arg8[%c0_8, %c17_9, %c0_10] : memref<18x18x128xf32, #tpu.memory_space<vmem>>, vector<18x1x128xf32>
    tpu.vector_store %arg8[%c0_8, %c17_9, %c0_10], %1 {strides = array<i32>} : memref<18x18x128xf32, #tpu.memory_space<vmem>>, vector<18x1x128xf32>,
    %c0_11 = arith.constant 0 : index
    %c0_12 = arith.constant 0 : index
    %c0_13 = arith.constant 0 : index
    %6 = vector.load %arg1[%c0_11, %c0_12, %c0_13] : memref<1x256x128xf32, #tpu.memory_space<vmem>>, vector<1x256x128xf32>
    %7 = vector.shape_cast %6 : vector<1x256x128xf32> to vector<256x128xf32>
    %c0_14 = arith.constant 0 : index
    %c0_15 = arith.constant 0 : index
    %8 = vector.load %arg2[%c0_14, %c0_15] : memref<1x128xf32, #tpu.memory_space<vmem>>, vector<1x128xf32>
    %9 = vector.broadcast %8 : vector<1x128xf32> to vector<256x128xf32>
    %10 = arith.mulf %7, %9 : vector<256x128xf32>
    %c0_16 = arith.constant 0 : index
    %c0_17 = arith.constant 0 : index
    %11 = vector.load %arg3[%c0_16, %c0_17] : memref<1x128xf32, #tpu.memory_space<vmem>>, vector<1x128xf32>
    %12 = vector.broadcast %11 : vector<1x128xf32> to vector<256x128xf32>
    %13 = arith.addf %10, %12 : vector<256x128xf32>
    %cst_18 = arith.constant 0.000000e+00 : f32
    %14 = vector.broadcast %cst_18 : f32 to vector<256x128xf32>
    %15 = arith.maximumf %13, %14 : vector<256x128xf32>
    %16 = vector.shape_cast %15 : vector<256x128xf32> to vector<16x16x128xf32>
    %c1 = arith.constant 1 : index
    %c1_19 = arith.constant 1 : index
    %c0_20 = arith.constant 0 : index
    %17 = vector.load %arg8[%c1, %c1_19, %c0_20] : memref<18x18x128xf32, #tpu.memory_space<vmem>>, vector<16x16x128xf32>
    tpu.vector_store %arg8[%c1, %c1_19, %c0_20], %16 {strides = array<i32>} : memref<18x18x128xf32, #tpu.memory_space<vmem>>, vector<16x16x128xf32>,
    %c0_21 = arith.constant 0 : index
    %c0_22 = arith.constant 0 : index
    %c0_23 = arith.constant 0 : index
    %18 = vector.load %arg8[%c0_21, %c0_22, %c0_23] : memref<18x18x128xf32, #tpu.memory_space<vmem>>, vector<16x16x128xf32>
    %19 = vector.shape_cast %18 : vector<16x16x128xf32> to vector<256x128xf32>
    %20 = arith.truncf %19 : vector<256x128xf32> to vector<256x128xbf16>
    %c0_24 = arith.constant 0 : index
    %c0_25 = arith.constant 0 : index
    %21 = vector.load %arg9[%c0_24, %c0_25] : memref<256x1152xbf16, #tpu.memory_space<vmem>>, vector<256x128xbf16>
    tpu.vector_store %arg9[%c0_24, %c0_25], %20 {strides = array<i32>} : memref<256x1152xbf16, #tpu.memory_space<vmem>>, vector<256x128xbf16>,
    %c0_26 = arith.constant 0 : index
    %c1_27 = arith.constant 1 : index
    %c0_28 = arith.constant 0 : index
    %22 = vector.load %arg8[%c0_26, %c1_27, %c0_28] : memref<18x18x128xf32, #tpu.memory_space<vmem>>, vector<16x16x128xf32>
    %23 = vector.shape_cast %22 : vector<16x16x128xf32> to vector<256x128xf32>
    %24 = arith.truncf %23 : vector<256x128xf32> to vector<256x128xbf16>
    %c0_29 = arith.constant 0 : index
    %c128 = arith.constant 128 : index
    %25 = vector.load %arg9[%c0_29, %c128] : memref<256x1152xbf16, #tpu.memory_space<vmem>>, vector<256x128xbf16>
    tpu.vector_store %arg9[%c0_29, %c128], %24 {strides = array<i32>} : memref<256x1152xbf16, #tpu.memory_space<vmem>>, vector<256x128xbf16>,
    %c0_30 = arith.constant 0 : index
    %c2 = arith.constant 2 : index
    %c0_31 = arith.constant 0 : index
    %26 = vector.load %arg8[%c0_30, %c2, %c0_31] : memref<18x18x128xf32, #tpu.memory_space<vmem>>, vector<16x16x128xf32>
    %27 = vector.shape_cast %26 : vector<16x16x128xf32> to vector<256x128xf32>
    %28 = arith.truncf %27 : vector<256x128xf32> to vector<256x128xbf16>
    %c0_32 = arith.constant 0 : index
    %c256 = arith.constant 256 : index
    %29 = vector.load %arg9[%c0_32, %c256] : memref<256x1152xbf16, #tpu.memory_space<vmem>>, vector<256x128xbf16>
    tpu.vector_store %arg9[%c0_32, %c256], %28 {strides = array<i32>} : memref<256x1152xbf16, #tpu.memory_space<vmem>>, vector<256x128xbf16>,
    %c1_33 = arith.constant 1 : index
    %c0_34 = arith.constant 0 : index
    %c0_35 = arith.constant 0 : index
    %30 = vector.load %arg8[%c1_33, %c0_34, %c0_35] : memref<18x18x128xf32, #tpu.memory_space<vmem>>, vector<16x16x128xf32>
    %31 = vector.shape_cast %30 : vector<16x16x128xf32> to vector<256x128xf32>
    %32 = arith.truncf %31 : vector<256x128xf32> to vector<256x128xbf16>
    %c0_36 = arith.constant 0 : index
    %c384 = arith.constant 384 : index
    %33 = vector.load %arg9[%c0_36, %c384] : memref<256x1152xbf16, #tpu.memory_space<vmem>>, vector<256x128xbf16>
    tpu.vector_store %arg9[%c0_36, %c384], %32 {strides = array<i32>} : memref<256x1152xbf16, #tpu.memory_space<vmem>>, vector<256x128xbf16>,
    %c1_37 = arith.constant 1 : index
    %c1_38 = arith.constant 1 : index
    %c0_39 = arith.constant 0 : index
    %34 = vector.load %arg8[%c1_37, %c1_38, %c0_39] : memref<18x18x128xf32, #tpu.memory_space<vmem>>, vector<16x16x128xf32>
    %35 = vector.shape_cast %34 : vector<16x16x128xf32> to vector<256x128xf32>
    %36 = arith.truncf %35 : vector<256x128xf32> to vector<256x128xbf16>
    %c0_40 = arith.constant 0 : index
    %c512 = arith.constant 512 : index
    %37 = vector.load %arg9[%c0_40, %c512] : memref<256x1152xbf16, #tpu.memory_space<vmem>>, vector<256x128xbf16>
    tpu.vector_store %arg9[%c0_40, %c512], %36 {strides = array<i32>} : memref<256x1152xbf16, #tpu.memory_space<vmem>>, vector<256x128xbf16>,
    %c1_41 = arith.constant 1 : index
    %c2_42 = arith.constant 2 : index
    %c0_43 = arith.constant 0 : index
    %38 = vector.load %arg8[%c1_41, %c2_42, %c0_43] : memref<18x18x128xf32, #tpu.memory_space<vmem>>, vector<16x16x128xf32>
    %39 = vector.shape_cast %38 : vector<16x16x128xf32> to vector<256x128xf32>
    %40 = arith.truncf %39 : vector<256x128xf32> to vector<256x128xbf16>
    %c0_44 = arith.constant 0 : index
    %c640 = arith.constant 640 : index
    %41 = vector.load %arg9[%c0_44, %c640] : memref<256x1152xbf16, #tpu.memory_space<vmem>>, vector<256x128xbf16>
    tpu.vector_store %arg9[%c0_44, %c640], %40 {strides = array<i32>} : memref<256x1152xbf16, #tpu.memory_space<vmem>>, vector<256x128xbf16>,
    %c2_45 = arith.constant 2 : index
    %c0_46 = arith.constant 0 : index
    %c0_47 = arith.constant 0 : index
    %42 = vector.load %arg8[%c2_45, %c0_46, %c0_47] : memref<18x18x128xf32, #tpu.memory_space<vmem>>, vector<16x16x128xf32>
    %43 = vector.shape_cast %42 : vector<16x16x128xf32> to vector<256x128xf32>
    %44 = arith.truncf %43 : vector<256x128xf32> to vector<256x128xbf16>
    %c0_48 = arith.constant 0 : index
    %c768 = arith.constant 768 : index
    %45 = vector.load %arg9[%c0_48, %c768] : memref<256x1152xbf16, #tpu.memory_space<vmem>>, vector<256x128xbf16>
    tpu.vector_store %arg9[%c0_48, %c768], %44 {strides = array<i32>} : memref<256x1152xbf16, #tpu.memory_space<vmem>>, vector<256x128xbf16>,
    %c2_49 = arith.constant 2 : index
    %c1_50 = arith.constant 1 : index
    %c0_51 = arith.constant 0 : index
    %46 = vector.load %arg8[%c2_49, %c1_50, %c0_51] : memref<18x18x128xf32, #tpu.memory_space<vmem>>, vector<16x16x128xf32>
    %47 = vector.shape_cast %46 : vector<16x16x128xf32> to vector<256x128xf32>
    %48 = arith.truncf %47 : vector<256x128xf32> to vector<256x128xbf16>
    %c0_52 = arith.constant 0 : index
    %c896 = arith.constant 896 : index
    %49 = vector.load %arg9[%c0_52, %c896] : memref<256x1152xbf16, #tpu.memory_space<vmem>>, vector<256x128xbf16>
    tpu.vector_store %arg9[%c0_52, %c896], %48 {strides = array<i32>} : memref<256x1152xbf16, #tpu.memory_space<vmem>>, vector<256x128xbf16>,
    %c2_53 = arith.constant 2 : index
    %c2_54 = arith.constant 2 : index
    %c0_55 = arith.constant 0 : index
    %50 = vector.load %arg8[%c2_53, %c2_54, %c0_55] : memref<18x18x128xf32, #tpu.memory_space<vmem>>, vector<16x16x128xf32>
    %51 = vector.shape_cast %50 : vector<16x16x128xf32> to vector<256x128xf32>
    %52 = arith.truncf %51 : vector<256x128xf32> to vector<256x128xbf16>
    %c0_56 = arith.constant 0 : index
    %c1024 = arith.constant 1024 : index
    %53 = vector.load %arg9[%c0_56, %c1024] : memref<256x1152xbf16, #tpu.memory_space<vmem>>, vector<256x128xbf16>
    tpu.vector_store %arg9[%c0_56, %c1024], %52 {strides = array<i32>} : memref<256x1152xbf16, #tpu.memory_space<vmem>>, vector<256x128xbf16>,
    %c0_57 = arith.constant 0 : index
    %c0_58 = arith.constant 0 : index
    %54 = vector.load %arg9[%c0_57, %c0_58] : memref<256x1152xbf16, #tpu.memory_space<vmem>>, vector<256x1152xbf16>
    %c0_59 = arith.constant 0 : index
    %c0_60 = arith.constant 0 : index
    %55 = vector.load %arg4[%c0_59, %c0_60] : memref<1152x128xbf16, #tpu.memory_space<vmem>>, vector<1152x128xbf16>
    %cst_61 = arith.constant dense<0.000000e+00> : vector<256x128xf32>
    %56 = tpu.matmul %54, %55, %cst_61 {dimension_numbers = #tpu.dot_dimension_numbers<[1], [0], [0], [1], [0, 0, 1, 1], [], []>} : vector<256x1152xbf16>, vector<1152x128xbf16>, vector<256x128xf32> -> vector<256x128xf32>
    %c0_62 = arith.constant 0 : index
    %c0_63 = arith.constant 0 : index
    %c0_64 = arith.constant 0 : index
    %57 = vector.load %arg5[%c0_62, %c0_63, %c0_64] : memref<1x256x128xf32, #tpu.memory_space<vmem>>, vector<1x256x128xf32>
    %58 = vector.shape_cast %57 : vector<1x256x128xf32> to vector<256x128xf32>
    %59 = vector.shape_cast %56 : vector<256x128xf32> to vector<1x256x128xf32>
    tpu.vector_store %arg5[%c0_62, %c0_63, %c0_64], %59 {strides = array<i32>} : memref<1x256x128xf32, #tpu.memory_space<vmem>>, vector<1x256x128xf32>,
    %cst_65 = arith.constant dense<0.000000e+00> : vector<128xf32>
    %60 = vector.multi_reduction <add>, %56, %cst_65 [0] : vector<256x128xf32> to vector<128xf32>
    %61 = vector.shape_cast %60 : vector<128xf32> to vector<1x128xf32>
    %c0_66 = arith.constant 0 : index
    %c0_67 = arith.constant 0 : index
    %c0_68 = arith.constant 0 : index
    %62 = vector.load %arg6[%c0_66, %c0_67, %c0_68] : memref<1x1x128xf32, #tpu.memory_space<vmem>>, vector<1x1x128xf32>
    %63 = vector.shape_cast %62 : vector<1x1x128xf32> to vector<1x128xf32>
    %64 = vector.shape_cast %61 : vector<1x128xf32> to vector<1x1x128xf32>
    tpu.vector_store %arg6[%c0_66, %c0_67, %c0_68], %64 {strides = array<i32>} : memref<1x1x128xf32, #tpu.memory_space<vmem>>, vector<1x1x128xf32>,
    %65 = arith.mulf %56, %56 : vector<256x128xf32>
    %cst_69 = arith.constant dense<0.000000e+00> : vector<128xf32>
    %66 = vector.multi_reduction <add>, %65, %cst_69 [0] : vector<256x128xf32> to vector<128xf32>
    %67 = vector.shape_cast %66 : vector<128xf32> to vector<1x128xf32>
    %c0_70 = arith.constant 0 : index
    %c0_71 = arith.constant 0 : index
    %c0_72 = arith.constant 0 : index
    %68 = vector.load %arg7[%c0_70, %c0_71, %c0_72] : memref<1x1x128xf32, #tpu.memory_space<vmem>>, vector<1x1x128xf32>
    %69 = vector.shape_cast %68 : vector<1x1x128xf32> to vector<1x128xf32>
    %70 = vector.shape_cast %67 : vector<1x128xf32> to vector<1x1x128xf32>
    tpu.vector_store %arg7[%c0_70, %c0_71, %c0_72], %70 {strides = array<i32>} : memref<1x1x128xf32, #tpu.memory_space<vmem>>, vector<1x1x128xf32>,
    return
  }
  func.func @transform_0(%arg0: i32) -> (i32, i32, i32) {
    %c0_i32 = arith.constant 0 : i32
    %c0_i32_0 = arith.constant 0 : i32
    %c0_i32_1 = arith.constant 0 : i32
    return %arg0, %c0_i32, %c0_i32_0 : i32, i32, i32
  }
  func.func @transform_1(%arg0: i32) -> (i32, i32) {
    %c0_i32 = arith.constant 0 : i32
    %c0_i32_0 = arith.constant 0 : i32
    %c0_i32_1 = arith.constant 0 : i32
    return %c0_i32, %c0_i32_0 : i32, i32
  }
  func.func @transform_2(%arg0: i32) -> (i32, i32) {
    %c0_i32 = arith.constant 0 : i32
    %c0_i32_0 = arith.constant 0 : i32
    %c0_i32_1 = arith.constant 0 : i32
    return %c0_i32, %c0_i32_0 : i32, i32
  }
  func.func @transform_3(%arg0: i32) -> (i32, i32) {
    %c0_i32 = arith.constant 0 : i32
    %c0_i32_0 = arith.constant 0 : i32
    %c0_i32_1 = arith.constant 0 : i32
    return %c0_i32, %c0_i32_0 : i32, i32
  }
  func.func @transform_4(%arg0: i32) -> (i32, i32, i32) {
    %c0_i32 = arith.constant 0 : i32
    %c0_i32_0 = arith.constant 0 : i32
    %c0_i32_1 = arith.constant 0 : i32
    return %arg0, %c0_i32, %c0_i32_0 : i32, i32, i32
  }
  func.func @transform_5(%arg0: i32) -> (i32, i32, i32) {
    %c0_i32 = arith.constant 0 : i32
    %c0_i32_0 = arith.constant 0 : i32
    %c0_i32_1 = arith.constant 0 : i32
    return %arg0, %c0_i32, %c0_i32_0 : i32, i32, i32
  }
  func.func @transform_6(%arg0: i32) -> (i32, i32, i32) {
    %c0_i32 = arith.constant 0 : i32
    %c0_i32_0 = arith.constant 0 : i32
    %c0_i32_1 = arith.constant 0 : i32
    return %arg0, %c0_i32, %c0_i32_0 : i32, i32, i32
  }
}

module attributes {stable_mosaic.version = 11 : i64} {
  func.func @_bnrelu_conv1x1_stats_kernel(%arg0: i32, %arg1: memref<1x256x128xf32, #tpu.memory_space<vmem>>, %arg2: memref<1x128xf32, #tpu.memory_space<vmem>>, %arg3: memref<1x128xf32, #tpu.memory_space<vmem>>, %arg4: memref<128x128xbf16, #tpu.memory_space<vmem>>, %arg5: memref<1x256x128xf32, #tpu.memory_space<vmem>>, %arg6: memref<1x1x128xf32, #tpu.memory_space<vmem>>, %arg7: memref<1x1x128xf32, #tpu.memory_space<vmem>>) attributes {dimension_semantics = [#tpu.dimension_semantics<parallel>], iteration_bounds = array<i64: 2>, scalar_prefetch = 0 : i64, scratch_operands = 0 : i64, tpu.core_type = #tpu.core_type<tc>, window_params = [{transform_indices = @transform_0, window_bounds = array<i64: 1, 256, 128>}, {pipeline_mode = #tpu.pipeline_mode<synchronous>, transform_indices = @transform_1, window_bounds = array<i64: 1, 128>}, {pipeline_mode = #tpu.pipeline_mode<synchronous>, transform_indices = @transform_2, window_bounds = array<i64: 1, 128>}, {pipeline_mode = #tpu.pipeline_mode<synchronous>, transform_indices = @transform_3, window_bounds = array<i64: 128, 128>}, {transform_indices = @transform_4, window_bounds = array<i64: 1, 256, 128>}, {transform_indices = @transform_5, window_bounds = array<i64: 1, 1, 128>}, {transform_indices = @transform_6, window_bounds = array<i64: 1, 1, 128>}]} {
    %c0 = arith.constant 0 : index
    %c0_0 = arith.constant 0 : index
    %c0_1 = arith.constant 0 : index
    %0 = vector.load %arg1[%c0, %c0_0, %c0_1] : memref<1x256x128xf32, #tpu.memory_space<vmem>>, vector<1x256x128xf32>
    %1 = vector.shape_cast %0 : vector<1x256x128xf32> to vector<256x128xf32>
    %c0_2 = arith.constant 0 : index
    %c0_3 = arith.constant 0 : index
    %2 = vector.load %arg2[%c0_2, %c0_3] : memref<1x128xf32, #tpu.memory_space<vmem>>, vector<1x128xf32>
    %3 = vector.broadcast %2 : vector<1x128xf32> to vector<256x128xf32>
    %4 = arith.mulf %1, %3 : vector<256x128xf32>
    %c0_4 = arith.constant 0 : index
    %c0_5 = arith.constant 0 : index
    %5 = vector.load %arg3[%c0_4, %c0_5] : memref<1x128xf32, #tpu.memory_space<vmem>>, vector<1x128xf32>
    %6 = vector.broadcast %5 : vector<1x128xf32> to vector<256x128xf32>
    %7 = arith.addf %4, %6 : vector<256x128xf32>
    %cst = arith.constant 0.000000e+00 : f32
    %8 = vector.broadcast %cst : f32 to vector<256x128xf32>
    %9 = arith.maximumf %7, %8 : vector<256x128xf32>
    %10 = arith.truncf %9 : vector<256x128xf32> to vector<256x128xbf16>
    %c0_6 = arith.constant 0 : index
    %c0_7 = arith.constant 0 : index
    %11 = vector.load %arg4[%c0_6, %c0_7] : memref<128x128xbf16, #tpu.memory_space<vmem>>, vector<128x128xbf16>
    %cst_8 = arith.constant dense<0.000000e+00> : vector<256x128xf32>
    %12 = tpu.matmul %10, %11, %cst_8 {dimension_numbers = #tpu.dot_dimension_numbers<[1], [0], [0], [1], [0, 0, 1, 1], [], []>} : vector<256x128xbf16>, vector<128x128xbf16>, vector<256x128xf32> -> vector<256x128xf32>
    %c0_9 = arith.constant 0 : index
    %c0_10 = arith.constant 0 : index
    %c0_11 = arith.constant 0 : index
    %13 = vector.load %arg5[%c0_9, %c0_10, %c0_11] : memref<1x256x128xf32, #tpu.memory_space<vmem>>, vector<1x256x128xf32>
    %14 = vector.shape_cast %13 : vector<1x256x128xf32> to vector<256x128xf32>
    %15 = vector.shape_cast %12 : vector<256x128xf32> to vector<1x256x128xf32>
    tpu.vector_store %arg5[%c0_9, %c0_10, %c0_11], %15 {strides = array<i32>} : memref<1x256x128xf32, #tpu.memory_space<vmem>>, vector<1x256x128xf32>,
    %cst_12 = arith.constant dense<0.000000e+00> : vector<128xf32>
    %16 = vector.multi_reduction <add>, %12, %cst_12 [0] : vector<256x128xf32> to vector<128xf32>
    %17 = vector.shape_cast %16 : vector<128xf32> to vector<1x128xf32>
    %c0_13 = arith.constant 0 : index
    %c0_14 = arith.constant 0 : index
    %c0_15 = arith.constant 0 : index
    %18 = vector.load %arg6[%c0_13, %c0_14, %c0_15] : memref<1x1x128xf32, #tpu.memory_space<vmem>>, vector<1x1x128xf32>
    %19 = vector.shape_cast %18 : vector<1x1x128xf32> to vector<1x128xf32>
    %20 = vector.shape_cast %17 : vector<1x128xf32> to vector<1x1x128xf32>
    tpu.vector_store %arg6[%c0_13, %c0_14, %c0_15], %20 {strides = array<i32>} : memref<1x1x128xf32, #tpu.memory_space<vmem>>, vector<1x1x128xf32>,
    %21 = arith.mulf %12, %12 : vector<256x128xf32>
    %cst_16 = arith.constant dense<0.000000e+00> : vector<128xf32>
    %22 = vector.multi_reduction <add>, %21, %cst_16 [0] : vector<256x128xf32> to vector<128xf32>
    %23 = vector.shape_cast %22 : vector<128xf32> to vector<1x128xf32>
    %c0_17 = arith.constant 0 : index
    %c0_18 = arith.constant 0 : index
    %c0_19 = arith.constant 0 : index
    %24 = vector.load %arg7[%c0_17, %c0_18, %c0_19] : memref<1x1x128xf32, #tpu.memory_space<vmem>>, vector<1x1x128xf32>
    %25 = vector.shape_cast %24 : vector<1x1x128xf32> to vector<1x128xf32>
    %26 = vector.shape_cast %23 : vector<1x128xf32> to vector<1x1x128xf32>
    tpu.vector_store %arg7[%c0_17, %c0_18, %c0_19], %26 {strides = array<i32>} : memref<1x1x128xf32, #tpu.memory_space<vmem>>, vector<1x1x128xf32>,
    return
  }
  func.func @transform_0(%arg0: i32) -> (i32, i32, i32) {
    %c0_i32 = arith.constant 0 : i32
    %c0_i32_0 = arith.constant 0 : i32
    %c0_i32_1 = arith.constant 0 : i32
    return %arg0, %c0_i32, %c0_i32_0 : i32, i32, i32
  }
  func.func @transform_1(%arg0: i32) -> (i32, i32) {
    %c0_i32 = arith.constant 0 : i32
    %c0_i32_0 = arith.constant 0 : i32
    %c0_i32_1 = arith.constant 0 : i32
    return %c0_i32, %c0_i32_0 : i32, i32
  }
  func.func @transform_2(%arg0: i32) -> (i32, i32) {
    %c0_i32 = arith.constant 0 : i32
    %c0_i32_0 = arith.constant 0 : i32
    %c0_i32_1 = arith.constant 0 : i32
    return %c0_i32, %c0_i32_0 : i32, i32
  }
  func.func @transform_3(%arg0: i32) -> (i32, i32) {
    %c0_i32 = arith.constant 0 : i32
    %c0_i32_0 = arith.constant 0 : i32
    %c0_i32_1 = arith.constant 0 : i32
    return %c0_i32, %c0_i32_0 : i32, i32
  }
  func.func @transform_4(%arg0: i32) -> (i32, i32, i32) {
    %c0_i32 = arith.constant 0 : i32
    %c0_i32_0 = arith.constant 0 : i32
    %c0_i32_1 = arith.constant 0 : i32
    return %arg0, %c0_i32, %c0_i32_0 : i32, i32, i32
  }
  func.func @transform_5(%arg0: i32) -> (i32, i32, i32) {
    %c0_i32 = arith.constant 0 : i32
    %c0_i32_0 = arith.constant 0 : i32
    %c0_i32_1 = arith.constant 0 : i32
    return %arg0, %c0_i32, %c0_i32_0 : i32, i32, i32
  }
  func.func @transform_6(%arg0: i32) -> (i32, i32, i32) {
    %c0_i32 = arith.constant 0 : i32
    %c0_i32_0 = arith.constant 0 : i32
    %c0_i32_1 = arith.constant 0 : i32
    return %arg0, %c0_i32, %c0_i32_0 : i32, i32, i32
  }
}

module attributes {stable_mosaic.version = 11 : i64} {
  func.func @_bn_residual_relu_kernel(%arg0: i32, %arg1: memref<1x256x128xf32, #tpu.memory_space<vmem>>, %arg2: memref<1x256x128xf32, #tpu.memory_space<vmem>>, %arg3: memref<1x128xf32, #tpu.memory_space<vmem>>, %arg4: memref<1x128xf32, #tpu.memory_space<vmem>>, %arg5: memref<1x256x128xf32, #tpu.memory_space<vmem>>) attributes {dimension_semantics = [#tpu.dimension_semantics<parallel>], iteration_bounds = array<i64: 2>, scalar_prefetch = 0 : i64, scratch_operands = 0 : i64, tpu.core_type = #tpu.core_type<tc>, window_params = [{transform_indices = @transform_0, window_bounds = array<i64: 1, 256, 128>}, {transform_indices = @transform_1, window_bounds = array<i64: 1, 256, 128>}, {pipeline_mode = #tpu.pipeline_mode<synchronous>, transform_indices = @transform_2, window_bounds = array<i64: 1, 128>}, {pipeline_mode = #tpu.pipeline_mode<synchronous>, transform_indices = @transform_3, window_bounds = array<i64: 1, 128>}, {transform_indices = @transform_4, window_bounds = array<i64: 1, 256, 128>}]} {
    %c0 = arith.constant 0 : index
    %c0_0 = arith.constant 0 : index
    %c0_1 = arith.constant 0 : index
    %0 = vector.load %arg1[%c0, %c0_0, %c0_1] : memref<1x256x128xf32, #tpu.memory_space<vmem>>, vector<1x256x128xf32>
    %1 = vector.shape_cast %0 : vector<1x256x128xf32> to vector<256x128xf32>
    %c0_2 = arith.constant 0 : index
    %c0_3 = arith.constant 0 : index
    %2 = vector.load %arg3[%c0_2, %c0_3] : memref<1x128xf32, #tpu.memory_space<vmem>>, vector<1x128xf32>
    %3 = vector.broadcast %2 : vector<1x128xf32> to vector<256x128xf32>
    %4 = arith.mulf %1, %3 : vector<256x128xf32>
    %c0_4 = arith.constant 0 : index
    %c0_5 = arith.constant 0 : index
    %5 = vector.load %arg4[%c0_4, %c0_5] : memref<1x128xf32, #tpu.memory_space<vmem>>, vector<1x128xf32>
    %6 = vector.broadcast %5 : vector<1x128xf32> to vector<256x128xf32>
    %7 = arith.addf %4, %6 : vector<256x128xf32>
    %c0_6 = arith.constant 0 : index
    %c0_7 = arith.constant 0 : index
    %c0_8 = arith.constant 0 : index
    %8 = vector.load %arg2[%c0_6, %c0_7, %c0_8] : memref<1x256x128xf32, #tpu.memory_space<vmem>>, vector<1x256x128xf32>
    %9 = vector.shape_cast %8 : vector<1x256x128xf32> to vector<256x128xf32>
    %10 = arith.addf %7, %9 : vector<256x128xf32>
    %cst = arith.constant 0.000000e+00 : f32
    %11 = vector.broadcast %cst : f32 to vector<256x128xf32>
    %12 = arith.maximumf %10, %11 : vector<256x128xf32>
    %c0_9 = arith.constant 0 : index
    %c0_10 = arith.constant 0 : index
    %c0_11 = arith.constant 0 : index
    %13 = vector.load %arg5[%c0_9, %c0_10, %c0_11] : memref<1x256x128xf32, #tpu.memory_space<vmem>>, vector<1x256x128xf32>
    %14 = vector.shape_cast %13 : vector<1x256x128xf32> to vector<256x128xf32>
    %15 = vector.shape_cast %12 : vector<256x128xf32> to vector<1x256x128xf32>
    tpu.vector_store %arg5[%c0_9, %c0_10, %c0_11], %15 {strides = array<i32>} : memref<1x256x128xf32, #tpu.memory_space<vmem>>, vector<1x256x128xf32>,
    return
  }
  func.func @transform_0(%arg0: i32) -> (i32, i32, i32) {
    %c0_i32 = arith.constant 0 : i32
    %c0_i32_0 = arith.constant 0 : i32
    %c0_i32_1 = arith.constant 0 : i32
    return %arg0, %c0_i32, %c0_i32_0 : i32, i32, i32
  }
  func.func @transform_1(%arg0: i32) -> (i32, i32, i32) {
    %c0_i32 = arith.constant 0 : i32
    %c0_i32_0 = arith.constant 0 : i32
    %c0_i32_1 = arith.constant 0 : i32
    return %arg0, %c0_i32, %c0_i32_0 : i32, i32, i32
  }
  func.func @transform_2(%arg0: i32) -> (i32, i32) {
    %c0_i32 = arith.constant 0 : i32
    %c0_i32_0 = arith.constant 0 : i32
    %c0_i32_1 = arith.constant 0 : i32
    return %c0_i32, %c0_i32_0 : i32, i32
  }
  func.func @transform_3(%arg0: i32) -> (i32, i32) {
    %c0_i32 = arith.constant 0 : i32
    %c0_i32_0 = arith.constant 0 : i32
    %c0_i32_1 = arith.constant 0 : i32
    return %c0_i32, %c0_i32_0 : i32, i32
  }
  func.func @transform_4(%arg0: i32) -> (i32, i32, i32) {
    %c0_i32 = arith.constant 0 : i32
    %c0_i32_0 = arith.constant 0 : i32
    %c0_i32_1 = arith.constant 0 : i32
    return %arg0, %c0_i32, %c0_i32_0 : i32, i32, i32
  }
}

</mosaic_0001>

<bundles_post_ra>
// kernel: bottleneck_pallas.7
= control target key start
LH: loop header
LB: loop body
LE: loop exit
PB: predicated region body
PF: predicated region fallthrough
CT: control target
= control target key end

     0   :  { %s582_s15 = smov 0   ;;  %s783_s0 = inlined_call_operand.vmem [shape: f32[2,256,128], index: 0, kind: input, shape index: {}]   ;;  %s784_s1 = inlined_call_operand.vmem [shape: f32[2,256,128], index: 1, kind: input, shape index: {}]   ;;  %s785_s2 = inlined_call_operand.vmem [shape: f32[1,128], index: 2, kind: input, shape index: {}]   ;;  %s786_s3 = inlined_call_operand.vmem [shape: f32[1,128], index: 3, kind: input, shape index: {}]   ;;  %s787_s4 = inlined_call_operand.vmem [shape: f32[2,256,128], index: 4, kind: output, shape index: {}]  }
   0x1 LB: > { %s523_s16 = sadd.s32 4294967295, %s555_s15   ;;  %p527_p0 = scmp.ge.s32.totalorder %s555_s15, 1  ;;  %s555_s15 = sphi %s582_s15, %s14_s15  }
   0x2   : > { %p172_p1 = scmp.lt.s32.totalorder %s555_s15, 3 }
   0x4   : > { %p173_p2 = pnand %p527_p0, %p172_p1 }
   0x5   : > { %p203_p3 = scmp.lt.s32.totalorder (!%p173_p2), %s523_s16, 1  ;;  %v595_v0 = vld [vmem:[%s785_s2] ss:$0 sm:$0xff] (!%p173_p2) }
   0x6   : > { %176 = sbr.rel (%p173_p2) target bundleno = 55 (0x37), region = 36  ;;  %v613_v2 = vld [vmem:[%s786_s3] ss:$0 sm:$0xff] (!%p173_p2) }
   0xd   : > { %s789_s16 = smov (!%p203_p3, %s523_s16), 1 }
   0xe   : > { %s590_s17 = sshll.u32 %s789_s16, 8 }
   0xf   : > { %s601_s22 = scalar_lea.vmem %s783_s0, %s590_s17  ;;  %s607_s25 = scalar_lea.vmem %s784_s1, %s590_s17 }
  0x10   : > { %v218_v1 = vld [vmem:[%s601_s22] sm:$0xff]  ;;  %v219_v3 = vld [vmem:[%s601_s22 + $0x8] sm:$0xff]  ;;  %v220_v7 = vld [vmem:[%s601_s22 + $0x10] sm:$0xff]  ;;  %s643_s30 = scalar_lea.vmem %s787_s4, %s590_s17 }
  0x11   : > { %v257_v4 = vmul.f32 %v595_v0, %v218_v1  ;;  %v328_v5 = vld [vmem:[%s607_s25] sm:$0xff]  ;;  %v258_v6 = vmul.f32 %v595_v0, %v219_v3  ;;  %v329_v8 = vld [vmem:[%s607_s25 + $0x8] sm:$0xff]  ;;  %v259_v9 = vmul.f32 %v595_v0, %v220_v7  ;;  %v221_v10 = vld [vmem:[%s601_s22 + $0x18] sm:$0xff] }
  0x12   : > { %v222_v11 = vld [vmem:[%s601_s22 + $0x20] sm:$0xff]  ;;  %v330_v14 = vld [vmem:[%s607_s25 + $0x10] sm:$0xff]  ;;  %v260_v15 = vmul.f32 %v595_v0, %v221_v10  ;;  %v331_v16 = vld [vmem:[%s607_s25 + $0x18] sm:$0xff] }
  0x13   : > { %v296_v12 = vadd.f32 %v613_v2, %v257_v4  ;;  %v297_v13 = vadd.f32 %v613_v2, %v258_v6  ;;  %v261_v17 = vmul.f32 %v595_v0, %v222_v11  ;;  %v223_v18 = vld [vmem:[%s601_s22 + $0x28] sm:$0xff]  ;;  %v298_v19 = vadd.f32 %v613_v2, %v259_v9  ;;  %v332_v20 = vld [vmem:[%s607_s25 + $0x20] sm:$0xff]  ;;  %v224_v22 = vld [vmem:[%s601_s22 + $0x30] sm:$0xff] }
  0x14   : > { %v262_v21 = vmul.f32 %v595_v0, %v223_v18  ;;  %v225_v23 = vld [vmem:[%s601_s22 + $0x38] sm:$0xff]  ;;  %v299_v26 = vadd.f32 %v613_v2, %v260_v15  ;;  %v333_v28 = vld [vmem:[%s607_s25 + $0x28] sm:$0xff]  ;;  %v263_v31 = vmul.f32 %v595_v0, %v224_v22  ;;  %v226_v33 = vld [vmem:[%s601_s22 + $0x40] sm:$0xff] }
  0x15   : > { %v360_v24 = vadd.f32 %v328_v5, %v296_v12  ;;  %v361_v25 = vadd.f32 %v329_v8, %v297_v13  ;;  %v300_v27 = vadd.f32 %v613_v2, %v261_v17  ;;  %v362_v29 = vadd.f32 %v330_v14, %v298_v19  ;;  %v227_v34 = vld [vmem:[%s601_s22 + $0x48] sm:$0xff]  ;;  %v334_v39 = vld [vmem:[%s607_s25 + $0x30] sm:$0xff]  ;;  %v335_v40 = vld [vmem:[%s607_s25 + $0x38] sm:$0xff] }
  0x16   : > { %v301_v30 = vadd.f32 %v613_v2, %v262_v21  ;;  %v264_v32 = vmul.f32 %v595_v0, %v225_v23  ;;  %v363_v37 = vadd.f32 %v331_v16, %v299_v26  ;;  %v228_v41 = vld [vmem:[%s601_s22 + $0x50] sm:$0xff]  ;;  %v302_v44 = vadd.f32 %v613_v2, %v263_v31  ;;  %v229_v46 = vld [vmem:[%s601_s22 + $0x58] sm:$0xff]  ;;  %v230_v47 = vld [vmem:[%s601_s22 + $0x60] sm:$0xff] }
  0x17   : > { %v392_v35 = vmax.f32 %v360_v24, 0.0  ;;  %v393_v36 = vmax.f32 %v361_v25, 0.0  ;;  %v364_v38 = vadd.f32 %v332_v20, %v300_v27  ;;  %v394_v42 = vmax.f32 %v362_v29, 0.0  ;;  %v231_v52 = vld [vmem:[%s601_s22 + $0x68] sm:$0xff]  ;;  %v336_v56 = vld [vmem:[%s607_s25 + $0x40] sm:$0xff]  ;;  %v338_v61 = vld [vmem:[%s607_s25 + $0x50] sm:$0xff] }
  0x18   : > { %v365_v43 = vadd.f32 %v333_v28, %v301_v30  ;;  %v303_v45 = vadd.f32 %v613_v2, %v264_v32  ;;  %v395_v48 = vmax.f32 %v363_v37, 0.0  ;;  %v265_v50 = vmul.f32 %v595_v0, %v226_v33  ;;  %v337_v57 = vld [vmem:[%s607_s25 + $0x48] sm:$0xff]  ;;  %v232_v1 = vld [vmem:[%s601_s22 + $0x70] sm:$0xff]  ;;  %v233_v3 = vld [vmem:[%s601_s22 + $0x78] sm:$0xff] }
  0x19   : > { %424 = vst [vmem:[%s643_s30] sm:$0xff] %v392_v35  ;;  %425 = vst [vmem:[%s643_s30 + $0x8] sm:$0xff] %v393_v36  ;;  %v396_v49 = vmax.f32 %v364_v38, 0.0  ;;  %v266_v51 = vmul.f32 %v595_v0, %v227_v34  ;;  %v366_v54 = vadd.f32 %v334_v39, %v302_v44  ;;  %v267_v58 = vmul.f32 %v595_v0, %v228_v41  ;;  %v339_v7 = vld [vmem:[%s607_s25 + $0x58] sm:$0xff]  ;;  %v340_v8 = vld [vmem:[%s607_s25 + $0x60] sm:$0xff] }
  0x1a   : > { %426 = vst [vmem:[%s643_s30 + $0x10] sm:$0xff] %v394_v42  ;;  %v397_v53 = vmax.f32 %v365_v43, 0.0  ;;  %v367_v55 = vadd.f32 %v335_v40, %v303_v45  ;;  %427 = vst [vmem:[%s643_s30 + $0x18] sm:$0xff] %v395_v48  ;;  %v304_v59 = vadd.f32 %v613_v2, %v265_v50  ;;  %v268_v62 = vmul.f32 %v595_v0, %v229_v46  ;;  %v341_v14 = vld [vmem:[%s607_s25 + $0x68] sm:$0xff]  ;;  %v234_v19 = vld [vmem:[%s601_s22 + $0x80] sm:$0xff] }
  0x1b   : > { %428 = vst [vmem:[%s643_s30 + $0x20] sm:$0xff] %v396_v49  ;;  %v305_v60 = vadd.f32 %v613_v2, %v266_v51  ;;  %v269_v63 = vmul.f32 %v595_v0, %v230_v47  ;;  %v398_v4 = vmax.f32 %v366_v54, 0.0  ;;  %v306_v6 = vadd.f32 %v613_v2, %v267_v58  ;;  %v235_v20 = vld [vmem:[%s601_s22 + $0x88] sm:$0xff]  ;;  %v342_v25 = vld [vmem:[%s607_s25 + $0x70] sm:$0xff]  ;;  %v343_v26 = vld [vmem:[%s607_s25 + $0x78] sm:$0xff] }
  0x1c   : > { %429 = vst [vmem:[%s643_s30 + $0x28] sm:$0xff] %v397_v53  ;;  %v399_v5 = vmax.f32 %v367_v55, 0.0  ;;  %v270_v9 = vmul.f32 %v595_v0, %v231_v52  ;;  %v368_v10 = vadd.f32 %v336_v56, %v304_v59  ;;  %v307_v12 = vadd.f32 %v613_v2, %v268_v62  ;;  %v236_v27 = vld [vmem:[%s601_s22 + $0x90] sm:$0xff]  ;;  %v237_v32 = vld [vmem:[%s601_s22 + $0x98] sm:$0xff]  ;;  %v238_v33 = vld [vmem:[%s601_s22 + $0xa0] sm:$0xff] }
  0x1d   : > { %v369_v11 = vadd.f32 %v337_v57, %v305_v60  ;;  %v308_v13 = vadd.f32 %v613_v2, %v269_v63  ;;  %430 = vst [vmem:[%s643_s30 + $0x30] sm:$0xff] %v398_v4  ;;  %v370_v15 = vadd.f32 %v338_v61, %v306_v6  ;;  %v271_v17 = vmul.f32 %v595_v0, %v232_v1  ;;  %v239_v38 = vld [vmem:[%s601_s22 + $0xa8] sm:$0xff]  ;;  %v344_v42 = vld [vmem:[%s607_s25 + $0x80] sm:$0xff]  ;;  %v346_v47 = vld [vmem:[%s607_s25 + $0x90] sm:$0xff] }
  0x1e   : > { %431 = vst [vmem:[%s643_s30 + $0x38] sm:$0xff] %v399_v5  ;;  %v309_v16 = vadd.f32 %v613_v2, %v270_v9  ;;  %v272_v18 = vmul.f32 %v595_v0, %v233_v3  ;;  %v400_v21 = vmax.f32 %v368_v10, 0.0  ;;  %v371_v23 = vadd.f32 %v339_v7, %v307_v12  ;;  %v345_v43 = vld [vmem:[%s607_s25 + $0x88] sm:$0xff]  ;;  %v240_v50 = vld [vmem:[%s601_s22 + $0xb0] sm:$0xff]  ;;  %v241_v51 = vld [vmem:[%s601_s22 + $0xb8] sm:$0xff] }
  0x1f   : > { %v401_v22 = vmax.f32 %v369_v11, 0.0  ;;  %v372_v24 = vadd.f32 %v340_v8, %v308_v13  ;;  %v402_v28 = vmax.f32 %v370_v15, 0.0  ;;  %v310_v30 = vadd.f32 %v613_v2, %v271_v17  ;;  %v347_v55 = vld [vmem:[%s607_s25 + $0x98] sm:$0xff]  ;;  %v348_v56 = vld [vmem:[%s607_s25 + $0xa0] sm:$0xff]  ;;  %v349_v62 = vld [vmem:[%s607_s25 + $0xa8] sm:$0xff] }
  0x20   : > { %v373_v29 = vadd.f32 %v341_v14, %v309_v16  ;;  %v311_v31 = vadd.f32 %v613_v2, %v272_v18  ;;  %432 = vst [vmem:[%s643_s30 + $0x40] sm:$0xff] %v400_v21  ;;  %v403_v34 = vmax.f32 %v371_v23, 0.0  ;;  %v273_v36 = vmul.f32 %v595_v0, %v234_v19  ;;  %v242_v5 = vld [vmem:[%s601_s22 + $0xc0] sm:$0xff]  ;;  %v243_v6 = vld [vmem:[%s601_s22 + $0xc8] sm:$0xff]  ;;  %v350_v11 = vld [vmem:[%s607_s25 + $0xb0] sm:$0xff] }
  0x21   : > { %433 = vst [vmem:[%s643_s30 + $0x48] sm:$0xff] %v401_v22  ;;  %v404_v35 = vmax.f32 %v372_v24, 0.0  ;;  %v274_v37 = vmul.f32 %v595_v0, %v235_v20  ;;  %434 = vst [vmem:[%s643_s30 + $0x50] sm:$0xff] %v402_v28  ;;  %v374_v40 = vadd.f32 %v342_v25, %v310_v30  ;;  %v275_v44 = vmul.f32 %v595_v0, %v236_v27  ;;  %v351_v12 = vld [vmem:[%s607_s25 + $0xb8] sm:$0xff]  ;;  %v244_v13 = vld [vmem:[%s601_s22 + $0xd0] sm:$0xff] }
  0x22   : > { %v405_v39 = vmax.f32 %v373_v29, 0.0  ;;  %v375_v41 = vadd.f32 %v343_v26, %v311_v31  ;;  %435 = vst [vmem:[%s643_s30 + $0x58] sm:$0xff] %v403_v34  ;;  %v312_v45 = vadd.f32 %v613_v2, %v273_v36  ;;  %v276_v48 = vmul.f32 %v595_v0, %v237_v32  ;;  %v245_v18 = vld [vmem:[%s601_s22 + $0xd8] sm:$0xff]  ;;  %v246_v19 = vld [vmem:[%s601_s22 + $0xe0] sm:$0xff]  ;;  %v247_v24 = vld [vmem:[%s601_s22 + $0xe8] sm:$0xff] }
  0x23   : > { %436 = vst [vmem:[%s643_s30 + $0x60] sm:$0xff] %v404_v35  ;;  %v313_v46 = vadd.f32 %v613_v2, %v274_v37  ;;  %v277_v49 = vmul.f32 %v595_v0, %v238_v33  ;;  %v406_v52 = vmax.f32 %v374_v40, 0.0  ;;  %v314_v54 = vadd.f32 %v613_v2, %v275_v44  ;;  %v352_v28 = vld [vmem:[%s607_s25 + $0xc0] sm:$0xff]  ;;  %v353_v29 = vld [vmem:[%s607_s25 + $0xc8] sm:$0xff]  ;;  %v354_v33 = vld [vmem:[%s607_s25 + $0xd0] sm:$0xff] }
  0x24   : > { %437 = vst [vmem:[%s643_s30 + $0x68] sm:$0xff] %v405_v39  ;;  %v407_v53 = vmax.f32 %v375_v41, 0.0  ;;  %v278_v57 = vmul.f32 %v595_v0, %v239_v38  ;;  %v376_v58 = vadd.f32 %v344_v42, %v312_v45  ;;  %v315_v60 = vadd.f32 %v613_v2, %v276_v48  ;;  %v248_v36 = vld [vmem:[%s601_s22 + $0xf0] sm:$0xff]  ;;  %v249_v37 = vld [vmem:[%s601_s22 + $0xf8] sm:$0xff]  ;;  %v356_v42 = vld [vmem:[%s607_s25 + $0xe0] sm:$0xff] }
  0x25   : > { %v377_v59 = vadd.f32 %v345_v43, %v313_v46  ;;  %v316_v61 = vadd.f32 %v613_v2, %v277_v49  ;;  %438 = vst [vmem:[%s643_s30 + $0x70] sm:$0xff] %v406_v52  ;;  %v378_v63 = vadd.f32 %v346_v47, %v314_v54  ;;  %v279_v3 = vmul.f32 %v595_v0, %v240_v50  ;;  %v355_v41 = vld [vmem:[%s607_s25 + $0xd8] sm:$0xff]  ;;  %v357_v48 = vld [vmem:[%s607_s25 + $0xe8] sm:$0xff] }
  0x26   : > { %439 = vst [vmem:[%s643_s30 + $0x78] sm:$0xff] %v407_v53  ;;  %v317_v1 = vadd.f32 %v613_v2, %v278_v57  ;;  %v280_v4 = vmul.f32 %v595_v0, %v241_v51  ;;  %v408_v7 = vmax.f32 %v376_v58, 0.0  ;;  %v379_v9 = vadd.f32 %v347_v55, %v315_v60  ;;  %v358_v57 = vld [vmem:[%s607_s25 + $0xf0] sm:$0xff]  ;;  %v359_v58 = vld [vmem:[%s607_s25 + $0xf8] sm:$0xff] }
  0x27   : > { %v409_v8 = vmax.f32 %v377_v59, 0.0  ;;  %v380_v10 = vadd.f32 %v348_v56, %v316_v61  ;;  %v410_v14 = vmax.f32 %v378_v63, 0.0  ;;  %v318_v16 = vadd.f32 %v613_v2, %v279_v3 }
  0x28   : > { %v381_v15 = vadd.f32 %v349_v62, %v317_v1  ;;  %v319_v17 = vadd.f32 %v613_v2, %v280_v4  ;;  %440 = vst [vmem:[%s643_s30 + $0x80] sm:$0xff] %v408_v7  ;;  %v411_v20 = vmax.f32 %v379_v9, 0.0  ;;  %v281_v22 = vmul.f32 %v595_v0, %v242_v5 }
  0x29   : > { %441 = vst [vmem:[%s643_s30 + $0x88] sm:$0xff] %v409_v8  ;;  %v412_v21 = vmax.f32 %v380_v10, 0.0  ;;  %v282_v23 = vmul.f32 %v595_v0, %v243_v6  ;;  %442 = vst [vmem:[%s643_s30 + $0x90] sm:$0xff] %v410_v14  ;;  %v382_v26 = vadd.f32 %v350_v11, %v318_v16  ;;  %v283_v30 = vmul.f32 %v595_v0, %v244_v13 }
  0x2a   : > { %v413_v25 = vmax.f32 %v381_v15, 0.0  ;;  %v383_v27 = vadd.f32 %v351_v12, %v319_v17  ;;  %443 = vst [vmem:[%s643_s30 + $0x98] sm:$0xff] %v411_v20  ;;  %v320_v31 = vadd.f32 %v613_v2, %v281_v22  ;;  %v284_v34 = vmul.f32 %v595_v0, %v245_v18 }
  0x2b   : > { %444 = vst [vmem:[%s643_s30 + $0xa0] sm:$0xff] %v412_v21  ;;  %v321_v32 = vadd.f32 %v613_v2, %v282_v23  ;;  %v285_v35 = vmul.f32 %v595_v0, %v246_v19  ;;  %v414_v38 = vmax.f32 %v382_v26, 0.0  ;;  %v322_v40 = vadd.f32 %v613_v2, %v283_v30 }
  0x2c   : > { %445 = vst [vmem:[%s643_s30 + $0xa8] sm:$0xff] %v413_v25  ;;  %v415_v39 = vmax.f32 %v383_v27, 0.0  ;;  %v286_v43 = vmul.f32 %v595_v0, %v247_v24  ;;  %v384_v44 = vadd.f32 %v352_v28, %v320_v31  ;;  %v323_v46 = vadd.f32 %v613_v2, %v284_v34 }
  0x2d   : > { %v385_v45 = vadd.f32 %v353_v29, %v321_v32  ;;  %v324_v47 = vadd.f32 %v613_v2, %v285_v35  ;;  %446 = vst [vmem:[%s643_s30 + $0xb0] sm:$0xff] %v414_v38  ;;  %v386_v49 = vadd.f32 %v354_v33, %v322_v40  ;;  %v287_v51 = vmul.f32 %v595_v0, %v248_v36 }
  0x2e   : > { %447 = vst [vmem:[%s643_s30 + $0xb8] sm:$0xff] %v415_v39  ;;  %v325_v50 = vadd.f32 %v613_v2, %v286_v43  ;;  %v288_v52 = vmul.f32 %v595_v0, %v249_v37  ;;  %v416_v53 = vmax.f32 %v384_v44, 0.0  ;;  %v387_v55 = vadd.f32 %v355_v41, %v323_v46 }
  0x2f   : > { %v417_v54 = vmax.f32 %v385_v45, 0.0  ;;  %v388_v56 = vadd.f32 %v356_v42, %v324_v47  ;;  %v418_v59 = vmax.f32 %v386_v49, 0.0  ;;  %v326_v61 = vadd.f32 %v613_v2, %v287_v51 }
  0x30   : > { %v389_v60 = vadd.f32 %v357_v48, %v325_v50  ;;  %v327_v62 = vadd.f32 %v613_v2, %v288_v52  ;;  %448 = vst [vmem:[%s643_s30 + $0xc0] sm:$0xff] %v416_v53  ;;  %v419_v0 = vmax.f32 %v387_v55, 0.0 }
  0x31   : > { %449 = vst [vmem:[%s643_s30 + $0xc8] sm:$0xff] %v417_v54  ;;  %v420_v63 = vmax.f32 %v388_v56, 0.0  ;;  %450 = vst [vmem:[%s643_s30 + $0xd0] sm:$0xff] %v418_v59  ;;  %v390_v3 = vadd.f32 %v358_v57, %v326_v61 }
  0x32   : > { %v421_v1 = vmax.f32 %v389_v60, 0.0  ;;  %v391_v4 = vadd.f32 %v359_v58, %v327_v62  ;;  %451 = vst [vmem:[%s643_s30 + $0xd8] sm:$0xff] %v419_v0 }
  0x33   : > { %452 = vst [vmem:[%s643_s30 + $0xe0] sm:$0xff] %v420_v63  ;;  %v422_v5 = vmax.f32 %v390_v3, 0.0 }
  0x34   : > { %453 = vst [vmem:[%s643_s30 + $0xe8] sm:$0xff] %v421_v1  ;;  %v423_v6 = vmax.f32 %v391_v4, 0.0 }
  0x35   : > { %454 = vst [vmem:[%s643_s30 + $0xf0] sm:$0xff] %v422_v5 }
  0x36   : > { %455 = vst [vmem:[%s643_s30 + $0xf8] sm:$0xff] %v423_v6 }
  0x37 PF: > { %s14_s15 = sadd.s32 1, %s555_s15  }
  0x38   : > { %p11_p4 = scmp.ge.s32.totalorder %s14_s15, 4  }
  0x3a   :  { %13 = sbr.rel (!%p11_p4) target bundleno = 1 (0x1), region = 69 }

// kernel: bottleneck_pallas.6
= control target key start
LH: loop header
LB: loop body
LE: loop exit
PB: predicated region body
PF: predicated region fallthrough
CT: control target
= control target key end

     0   :  { %s1068_s21 = smov 0   ;;  %s1364_s0 = inlined_call_operand.vmem [shape: f32[2,256,128], index: 0, kind: input, shape index: {}]   ;;  %s1365_s1 = inlined_call_operand.vmem [shape: f32[1,128], index: 1, kind: input, shape index: {}]   ;;  %s1366_s2 = inlined_call_operand.vmem [shape: f32[1,128], index: 2, kind: input, shape index: {}]   ;;  %s1367_s3 = inlined_call_operand.vmem [shape: bf16[128,128], index: 3, kind: input, shape index: {}]   ;;  %s1368_s4 = inlined_call_operand.vmem [shape: f32[2,256,128], index: 4, kind: output, shape index: {0}]   ;;  %s1369_s5 = inlined_call_operand.vmem [shape: f32[2,1,128], index: 5, kind: output, shape index: {1}]   ;;  %s1370_s6 = inlined_call_operand.vmem [shape: f32[2,1,128], index: 6, kind: output, shape index: {2}]  }
   0x1 LB: > { %s898_s22 = sadd.s32 4294967295, %s1031_s21   ;;  %p902_p0 = scmp.ge.s32.totalorder %s1031_s21, 1  ;;  %s1031_s21 = sphi %s1068_s21, %s17_s21  }
   0x2   : > { %p217_p1 = scmp.lt.s32.totalorder %s1031_s21, 3 }
   0x4   : > { %p218_p2 = pnand %p902_p0, %p217_p1 }
   0x5   : > { %v1017_v0 = vld [vmem:[%s1367_s3] sm:$0xff] (!%p218_p2)   ;;  %p253_p3 = scmp.lt.s32.totalorder (!%p218_p2), %s898_s22, 1  ;;  %v1018_v1 = vld [vmem:[%s1367_s3 + $0x8] sm:$0xff] (!%p218_p2)   ;;  %v1019_v2 = vld [vmem:[%s1367_s3 + $0x10] sm:$0xff] (!%p218_p2)  }
   0x6   : > { %221 = sbr.rel (%p218_p2) target bundleno = 330 (0x14a), region = 36  ;;  %945 = vmatprep.subr.bf16.mxu0 (!%p218_p2), %v1017_v0  ;;  %993 = vmatprep.subr.bf16.mxu1 (!%p218_p2), %v1017_v0  ;;  %v1020_v3 = vld [vmem:[%s1367_s3 + $0x18] sm:$0xff] (!%p218_p2)   ;;  %v1103_v6 = vld [vmem:[%s1365_s1] ss:$0 sm:$0xff] (!%p218_p2)  ;;  %v1022_v27 = vld [vmem:[%s1367_s3 + $0x28] sm:$0xff] (!%p218_p2)  }
   0x7   : > { %946 = vmatpush3.bf16.msra.mxu0 (!%p218_p2), %v1017_v0  ;;  %1001 = vmatpush3.bf16.msra.mxu1 (!%p218_p2), %v1017_v0  ;;  %v1110_v9 = vld [vmem:[%s1366_s2] ss:$0 sm:$0xff] (!%p218_p2)  ;;  %v1023_v35 = vld [vmem:[%s1367_s3 + $0x30] sm:$0xff] (!%p218_p2)   ;;  %v1024_v52 = vld [vmem:[%s1367_s3 + $0x38] sm:$0xff] (!%p218_p2)  }
   0x8   : > { %947 = vmatprep.subr.bf16.mxu0 (!%p218_p2), %v1018_v1  ;;  %994 = vmatprep.subr.bf16.mxu1 (!%p218_p2), %v1018_v1  ;;  %v1021_v17 = vld [vmem:[%s1367_s3 + $0x20] sm:$0xff] (!%p218_p2)  }
   0xb   : > { %948 = vmatpush3.bf16.msra.mxu0 (!%p218_p2), %v1018_v1  ;;  %1002 = vmatpush3.bf16.msra.mxu1 (!%p218_p2), %v1018_v1 }
   0xc   : > { %949 = vmatprep.subr.bf16.mxu0 (!%p218_p2), %v1019_v2  ;;  %995 = vmatprep.subr.bf16.mxu1 (!%p218_p2), %v1019_v2 }
   0xd   : > { %s1372_s22 = smov (!%p253_p3, %s898_s22), 1 }
   0xe   : > { %s919_s29 = sshll.u32 %s1372_s22, 8  ;;  %s265_s30 = scalar_lea.vmem %s1369_s5, %s1372_s22 }
   0xf   : > { %s1093_s8 = scalar_lea.vmem %s1364_s0, %s919_s29  ;;  %950 = vmatpush3.bf16.msra.mxu0 %v1019_v2  ;;  %1003 = vmatpush3.bf16.msra.mxu1 %v1019_v2  ;;  %s1241_s27 = scalar_lea.vmem %s1368_s4, %s919_s29 }
  0x10   : > { %v270_v4 = vld [vmem:[%s1093_s8] sm:$0xff]  ;;  %v271_v5 = vld [vmem:[%s1093_s8 + $0x8] sm:$0xff]  ;;  %v272_v10 = vld [vmem:[%s1093_s8 + $0x10] sm:$0xff]  ;;  %951 = vmatprep.subr.bf16.mxu0 %v1020_v3  ;;  %996 = vmatprep.subr.bf16.mxu1 %v1020_v3  ;;  %s268_s9 = scalar_lea.vmem %s1370_s6, %s1372_s22 }
  0x11   : > { %v309_v7 = vmul.f32 %v1103_v6, %v270_v4  ;;  %v310_v8 = vmul.f32 %v1103_v6, %v271_v5  ;;  %v273_v11 = vld [vmem:[%s1093_s8 + $0x18] sm:$0xff]  ;;  %v311_v12 = vmul.f32 %v1103_v6, %v272_v10  ;;  %v274_v16 = vld [vmem:[%s1093_s8 + $0x20] sm:$0xff]  ;;  %v275_v20 = vld [vmem:[%s1093_s8 + $0x28] sm:$0xff] }
  0x12   : > { %v312_v15 = vmul.f32 %v1103_v6, %v273_v11  ;;  %v313_v21 = vmul.f32 %v1103_v6, %v274_v16  ;;  %v276_v22 = vld [vmem:[%s1093_s8 + $0x30] sm:$0xff]  ;;  %v277_v26 = vld [vmem:[%s1093_s8 + $0x38] sm:$0xff]  ;;  %v314_v28 = vmul.f32 %v1103_v6, %v275_v20  ;;  %v286_v31 = vld [vmem:[%s1093_s8 + $0x80] sm:$0xff] }
  0x13   : > { %v348_v13 = vadd.f32 %v1110_v9, %v309_v7  ;;  %v349_v14 = vadd.f32 %v1110_v9, %v310_v8  ;;  %952 = vmatpush3.bf16.msra.mxu0 %v1020_v3  ;;  %v350_v24 = vadd.f32 %v1110_v9, %v311_v12  ;;  %1004 = vmatpush3.bf16.msra.mxu1 %v1020_v3  ;;  %v278_v37 = vld [vmem:[%s1093_s8 + $0x40] sm:$0xff]  ;;  %v287_v38 = vld [vmem:[%s1093_s8 + $0x88] sm:$0xff]  ;;  %v288_v42 = vld [vmem:[%s1093_s8 + $0x90] sm:$0xff] }
  0x14   : > { %v351_v25 = vadd.f32 %v1110_v9, %v312_v15  ;;  %953 = vmatprep.subr.bf16.mxu0 %v1021_v17  ;;  %997 = vmatprep.subr.bf16.mxu1 %v1021_v17  ;;  %v315_v29 = vmul.f32 %v1103_v6, %v276_v22  ;;  %v316_v30 = vmul.f32 %v1103_v6, %v277_v26  ;;  %v279_v40 = vld [vmem:[%s1093_s8 + $0x48] sm:$0xff]  ;;  %v289_v44 = vld [vmem:[%s1093_s8 + $0x98] sm:$0xff]  ;;  %v290_v45 = vld [vmem:[%s1093_s8 + $0xa0] sm:$0xff] }
  0x15   : > { %v380_v18 = vmax.f32 %v348_v13, 0.0  ;;  %v381_v19 = vmax.f32 %v349_v14, 0.0  ;;  %v382_v32 = vmax.f32 %v350_v24, 0.0  ;;  %v1136_v34 = vadd.f32 %v1110_v9, %v313_v21  ;;  %v291_v50 = vld [vmem:[%s1093_s8 + $0xa8] sm:$0xff]  ;;  %v292_v51 = vld [vmem:[%s1093_s8 + $0xb0] sm:$0xff]  ;;  %v293_v61 = vld [vmem:[%s1093_s8 + $0xb8] sm:$0xff] }
  0x16   : > { %v383_v33 = vmax.f32 %v351_v25, 0.0  ;;  %v1142_v36 = vadd.f32 %v1110_v9, %v314_v28  ;;  %v1147_v39 = vadd.f32 %v1110_v9, %v315_v29  ;;  %v325_v41 = vmul.f32 %v1103_v6, %v286_v31  ;;  %v294_v2 = vld [vmem:[%s1093_s8 + $0xc0] sm:$0xff]  ;;  %v295_v8 = vld [vmem:[%s1093_s8 + $0xc8] sm:$0xff]  ;;  %v280_v14 = vld [vmem:[%s1093_s8 + $0x50] sm:$0xff] }
  0x17   : > { %v412_v23 = vpack.c.bf16 %v381_v19, %v380_v18  ;;  %954 = vmatpush3.bf16.msra.mxu0 %v1021_v17  ;;  %1005 = vmatpush3.bf16.msra.mxu1 %v1021_v17  ;;  %v1153_v43 = vadd.f32 %v1110_v9, %v316_v30  ;;  %v384_v47 = vmax.f32 %v1136_v34, 0.0  ;;  %v317_v48 = vmul.f32 %v1103_v6, %v278_v37  ;;  %v281_v15 = vld [vmem:[%s1093_s8 + $0x58] sm:$0xff]  ;;  %v282_v20 = vld [vmem:[%s1093_s8 + $0x60] sm:$0xff]  ;;  %v283_v21 = vld [vmem:[%s1093_s8 + $0x68] sm:$0xff] }
  0x18   : > { %955 = vmatprep.subr.bf16.mxu0 %v1022_v27  ;;  %998 = vmatprep.subr.bf16.mxu1 %v1022_v27  ;;  %v1157_v46 = vpack.c.bf16 %v383_v33, %v382_v32  ;;  %v326_v49 = vmul.f32 %v1103_v6, %v287_v38  ;;  %v385_v53 = vmax.f32 %v1142_v36, 0.0  ;;  %v318_v54 = vmul.f32 %v1103_v6, %v279_v40  ;;  %v296_v30 = vld [vmem:[%s1093_s8 + $0xd0] sm:$0xff]  ;;  %v297_v31 = vld [vmem:[%s1093_s8 + $0xd8] sm:$0xff]  ;;  %v298_v36 = vld [vmem:[%s1093_s8 + $0xe0] sm:$0xff] }
  0x19   : > { %961 = vmatprep.mubr.bf16.mxu0 %v412_v23  ;;  %v364_v55 = vadd.f32 %v1110_v9, %v325_v41  ;;  %v327_v56 = vmul.f32 %v1103_v6, %v288_v42  ;;  %v386_v57 = vmax.f32 %v1147_v39, 0.0  ;;  %v328_v59 = vmul.f32 %v1103_v6, %v289_v44  ;;  %v299_v37 = vld [vmem:[%s1093_s8 + $0xe8] sm:$0xff] }
  0x1a   : > { %v365_v58 = vadd.f32 %v1110_v9, %v326_v49  ;;  %v329_v60 = vmul.f32 %v1103_v6, %v290_v45  ;;  %v330_v0 = vmul.f32 %v1103_v6, %v291_v50  ;;  %v331_v1 = vmul.f32 %v1103_v6, %v292_v51 }
  0x1b   : > { %956 = vmatpush3.bf16.msra.mxu0 %v1022_v27  ;;  %1006 = vmatpush3.bf16.msra.mxu1 %v1022_v27  ;;  %v396_v62 = vmax.f32 %v364_v55, 0.0  ;;  %v366_v63 = vadd.f32 %v1110_v9, %v327_v56  ;;  %v1181_v3 = vadd.f32 %v1110_v9, %v317_v48  ;;  %v367_v5 = vadd.f32 %v1110_v9, %v328_v59  ;;  %v284_v56 = vld [vmem:[%s1093_s8 + $0x70] sm:$0xff] }
  0x1c   : > { %957 = vmatprep.subr.bf16.mxu0 %v1023_v35  ;;  %999 = vmatprep.subr.bf16.mxu1 %v1023_v35  ;;  %v397_v4 = vmax.f32 %v365_v58, 0.0  ;;  %v368_v7 = vadd.f32 %v1110_v9, %v329_v60  ;;  %v357_v10 = vadd.f32 %v1110_v9, %v318_v54  ;;  %v369_v12 = vadd.f32 %v1110_v9, %v330_v0  ;;  %v285_v58 = vld [vmem:[%s1093_s8 + $0x78] sm:$0xff]  ;;  %v300_v0 = vld [vmem:[%s1093_s8 + $0xf0] sm:$0xff] }
  0x1d   : > { %v398_v11 = vmax.f32 %v366_v63, 0.0  ;;  %v332_v13 = vmul.f32 %v1103_v6, %v293_v61  ;;  %v399_v17 = vmax.f32 %v367_v5, 0.0  ;;  %v333_v19 = vmul.f32 %v1103_v6, %v294_v2 }
  0x1e   : > { %v420_v16 = vpack.c.bf16 %v397_v4, %v396_v62  ;;  %v400_v18 = vmax.f32 %v368_v7, 0.0  ;;  %v401_v22 = vmax.f32 %v369_v12, 0.0  ;;  %v370_v23 = vadd.f32 %v1110_v9, %v331_v1  ;;  %v301_v1 = vld [vmem:[%s1093_s8 + $0xf8] sm:$0xff] }
  0x1f   : > { %958 = vmatpush3.bf16.msra.mxu0 %v1023_v35  ;;  %1007 = vmatpush3.bf16.msra.mxu1 %v1023_v35  ;;  %v371_v24 = vadd.f32 %v1110_v9, %v332_v13  ;;  %v334_v25 = vmul.f32 %v1103_v6, %v295_v8  ;;  %v414_v26 = vpack.c.bf16 %v385_v53, %v384_v47  ;;  %v387_v27 = vmax.f32 %v1153_v43, 0.0 }
  0x20   : > { %959 = vmatprep.subr.bf16.mxu0 %v1024_v52  ;;  %1000 = vmatprep.subr.bf16.mxu1 %v1024_v52  ;;  %v421_v28 = vpack.c.bf16 %v399_v17, %v398_v11  ;;  %v372_v29 = vadd.f32 %v1110_v9, %v333_v19  ;;  %v319_v32 = vmul.f32 %v1103_v6, %v280_v14  ;;  %v388_v38 = vmax.f32 %v1181_v3, 0.0 }
  0x21   : > { %v320_v33 = vmul.f32 %v1103_v6, %v281_v15  ;;  %977 = vmatprep.mubr.bf16.mxu1 %v420_v16  ;;  %v422_v34 = vpack.c.bf16 %v401_v22, %v400_v18  ;;  %v373_v35 = vadd.f32 %v1110_v9, %v334_v25  ;;  %v389_v40 = vmax.f32 %v357_v10, 0.0 }
  0x22   : > { %v321_v41 = vmul.f32 %v1103_v6, %v282_v20  ;;  %v322_v42 = vmul.f32 %v1103_v6, %v283_v21  ;;  %v402_v43 = vmax.f32 %v370_v23, 0.0  ;;  %v403_v44 = vmax.f32 %v371_v24, 0.0 }
  0x23   : > { %960 = vmatpush3.bf16.msra.mxu0 %v1024_v52  ;;  %1008 = vmatpush3.bf16.msra.mxu1 %v1024_v52  ;;  %v335_v45 = vmul.f32 %v1103_v6, %v296_v30  ;;  %v336_v47 = vmul.f32 %v1103_v6, %v297_v31  ;;  %v404_v48 = vmax.f32 %v372_v29, 0.0  ;;  %v405_v49 = vmax.f32 %v373_v35, 0.0 }
  0x24   : > { %v337_v50 = vmul.f32 %v1103_v6, %v298_v36  ;;  %v338_v51 = vmul.f32 %v1103_v6, %v299_v37  ;;  %v358_v52 = vadd.f32 %v1110_v9, %v319_v32  ;;  %v359_v53 = vadd.f32 %v1110_v9, %v320_v33 }
  0x25   : > { %v360_v54 = vadd.f32 %v1110_v9, %v321_v41  ;;  %v361_v55 = vadd.f32 %v1110_v9, %v322_v42  ;;  %v423_v59 = vpack.c.bf16 %v403_v44, %v402_v43  ;;  %v374_v60 = vadd.f32 %v1110_v9, %v335_v45 }
  0x26   : > { %962 = vmatmul.mubr.bf16.vlgmr.msra.gmra.mrb[0].mxu0 %v1157_v46  ;;  %978 = vmatmul.mubr.bf16.vlgmr.msra.gmra.mrb[0].mxu1 %v421_v28  ;;  %v415_v46 = vpack.c.bf16 %v387_v27, %v386_v57  ;;  %v375_v61 = vadd.f32 %v1110_v9, %v336_v47  ;;  %v416_v62 = vpack.c.bf16 %v389_v40, %v388_v38  ;;  %v390_v2 = vmax.f32 %v358_v52, 0.0 }
  0x27   : > { %965 = vmatprep.mubr.bf16.mxu0 %v414_v26  ;;  %981 = vmatprep.mubr.bf16.mxu1 %v422_v34  ;;  %v424_v63 = vpack.c.bf16 %v405_v49, %v404_v48  ;;  %v376_v39 = vadd.f32 %v1110_v9, %v337_v50  ;;  %v377_v57 = vadd.f32 %v1110_v9, %v338_v51  ;;  %v391_v3 = vmax.f32 %v359_v53, 0.0 }
  0x28   : > { %v323_v4 = vmul.f32 %v1103_v6, %v284_v56  ;;  %v324_v5 = vmul.f32 %v1103_v6, %v285_v58  ;;  %v406_v7 = vmax.f32 %v374_v60, 0.0  ;;  %v407_v8 = vmax.f32 %v375_v61, 0.0 }
  0x29   : > { %v339_v10 = vmul.f32 %v1103_v6, %v300_v0  ;;  %v340_v11 = vmul.f32 %v1103_v6, %v301_v1  ;;  %v392_v12 = vmax.f32 %v360_v54, 0.0  ;;  %v393_v13 = vmax.f32 %v361_v55, 0.0 }
  0x2a   : > { %v408_v14 = vmax.f32 %v376_v39, 0.0  ;;  %v409_v15 = vmax.f32 %v377_v57, 0.0  ;;  %v417_v16 = vpack.c.bf16 %v391_v3, %v390_v2  ;;  %v362_v17 = vadd.f32 %v1110_v9, %v323_v4 }
  0x2b   : > { %v363_v18 = vadd.f32 %v1110_v9, %v324_v5  ;;  %v425_v19 = vpack.c.bf16 %v407_v8, %v406_v7  ;;  %v378_v20 = vadd.f32 %v1110_v9, %v339_v10  ;;  %v379_v21 = vadd.f32 %v1110_v9, %v340_v11 }
  0x2c   : > { %v418_v22 = vpack.c.bf16 %v393_v13, %v392_v12  ;;  %v426_v23 = vpack.c.bf16 %v409_v15, %v408_v14  ;;  %v394_v6 = vmax.f32 %v362_v17, 0.0 }
  0x2d   : > { %v395_v24 = vmax.f32 %v363_v18, 0.0  ;;  %v410_v25 = vmax.f32 %v378_v20, 0.0  ;;  %v411_v26 = vmax.f32 %v379_v21, 0.0 }
  0x2e   : > { %966 = vmatmul.mubr.bf16.gmra.mrb[4].mxu0 %v415_v46  ;;  %982 = vmatmul.mubr.bf16.gmra.mrb[4].mxu1 %v423_v59 }
  0x2f   : > { %969 = vmatprep.mubr.bf16.mxu0 %v416_v62  ;;  %985 = vmatprep.mubr.bf16.mxu1 %v424_v63  ;;  %v419_v27 = vpack.c.bf16 %v395_v24, %v394_v6  ;;  %v427_v28 = vpack.c.bf16 %v411_v26, %v410_v25 }
  0x36   : > { %970 = vmatmul.mubr.bf16.gmra.mrb[8].mxu0 %v417_v16  ;;  %986 = vmatmul.mubr.bf16.gmra.mrb[8].mxu1 %v425_v19 }
  0x37   : > { %973 = vmatprep.mubr.bf16.mxu0 %v418_v22  ;;  %989 = vmatprep.mubr.bf16.mxu1 %v426_v23 }
  0x3e   : > { %974 = vmatmul.mubr.bf16.gmra.mrb[12].mxu0 %v419_v27  ;;  %990 = vmatmul.mubr.bf16.gmra.mrb[12].mxu1 %v427_v28 }
  0xf9   : > { %v963_v9 = vpop.f32.mrb[0].mxu0  ;;  %v1243_v29 = vpop.f32.mrb[0].mxu1 }
  0xfa   : > { %655 = vst [vmem:[%s1241_s27 + $0x10] sm:$0xff] %v963_v9  ;;  %v526_v30 = vpop.f32.mrb[1].mxu0  ;;  %671 = vst [vmem:[%s1241_s27 + $0x90] sm:$0xff] %v1243_v29  ;;  %v1248_v31 = vpop.f32.mrb[1].mxu1  ;;  %v725_v40 = vmul.f32 %v963_v9, %v963_v9 }
  0xfb   : > { %653 = vst [vmem:[%s1241_s27] sm:$0xff] %v526_v30  ;;  %v964_v32 = vpop.f32.mrb[2].mxu0  ;;  %669 = vst [vmem:[%s1241_s27 + $0x80] sm:$0xff] %v1248_v31  ;;  %v1253_v33 = vpop.f32.mrb[2].mxu1  ;;  %v723_v36 = vmul.f32 %v526_v30, %v526_v30 }
  0xfc   : > { %656 = vst [vmem:[%s1241_s27 + $0x18] sm:$0xff] %v964_v32  ;;  %v529_v34 = vpop.f32.mrb[3].mxu0  ;;  %672 = vst [vmem:[%s1241_s27 + $0x98] sm:$0xff] %v1253_v33  ;;  %v1258_v35 = vpop.f32.mrb[3].mxu1  ;;  %v726_v43 = vmul.f32 %v964_v32, %v964_v32 }
  0xfd   : > { %654 = vst [vmem:[%s1241_s27 + $0x8] sm:$0xff] %v529_v34  ;;  %v685_v37 = vadd.f32 %v529_v34, %v526_v30  ;;  %v724_v38 = vmul.f32 %v529_v34, %v529_v34  ;;  %670 = vst [vmem:[%s1241_s27 + $0x88] sm:$0xff] %v1258_v35 }
  0xff   : > { %v686_v41 = vadd.f32 %v963_v9, %v685_v37  ;;  %v755_v42 = vadd.f32 %v724_v38, %v723_v36 }
 0x101   : > { %v756_v44 = vadd.f32 %v755_v42, %v725_v40  ;;  %v967_v45 = vpop.f32.mrb[4].mxu0  ;;  %v687_v47 = vadd.f32 %v964_v32, %v686_v41  ;;  %v1263_v48 = vpop.f32.mrb[4].mxu1 }
 0x102   : > { %659 = vst [vmem:[%s1241_s27 + $0x30] sm:$0xff] %v967_v45  ;;  %v542_v49 = vpop.f32.mrb[5].mxu0  ;;  %675 = vst [vmem:[%s1241_s27 + $0xb0] sm:$0xff] %v1263_v48  ;;  %v1268_v50 = vpop.f32.mrb[5].mxu1  ;;  %v729_v61 = vmul.f32 %v967_v45, %v967_v45 }
 0x103   : > { %657 = vst [vmem:[%s1241_s27 + $0x20] sm:$0xff] %v542_v49  ;;  %v688_v51 = vadd.f32 %v687_v47, %v542_v49  ;;  %v727_v46 = vmul.f32 %v542_v49, %v542_v49  ;;  %v757_v52 = vadd.f32 %v756_v44, %v726_v43  ;;  %v968_v53 = vpop.f32.mrb[6].mxu0  ;;  %673 = vst [vmem:[%s1241_s27 + $0xa0] sm:$0xff] %v1268_v50  ;;  %v1273_v54 = vpop.f32.mrb[6].mxu1 }
 0x104   : > { %660 = vst [vmem:[%s1241_s27 + $0x38] sm:$0xff] %v968_v53  ;;  %v545_v55 = vpop.f32.mrb[7].mxu0  ;;  %676 = vst [vmem:[%s1241_s27 + $0xb8] sm:$0xff] %v1273_v54  ;;  %v1278_v56 = vpop.f32.mrb[7].mxu1  ;;  %v730_v39 = vmul.f32 %v968_v53, %v968_v53  ;;  %v739_v47 = vmul.f32 %v1248_v31, %v1248_v31 }
 0x105   : > { %v758_v58 = vadd.f32 %v757_v52, %v727_v46  ;;  %658 = vst [vmem:[%s1241_s27 + $0x28] sm:$0xff] %v545_v55  ;;  %v689_v59 = vadd.f32 %v688_v51, %v545_v55  ;;  %v728_v60 = vmul.f32 %v545_v55, %v545_v55  ;;  %674 = vst [vmem:[%s1241_s27 + $0xa8] sm:$0xff] %v1278_v56 }
 0x106   : > { %v741_v55 = vmul.f32 %v1243_v29, %v1243_v29 }
 0x107   : > { %v690_v62 = vadd.f32 %v967_v45, %v689_v59  ;;  %v759_v63 = vadd.f32 %v758_v58, %v728_v60  ;;  %v742_v60 = vmul.f32 %v1253_v33, %v1253_v33 }
 0x109   : > { %v760_v57 = vadd.f32 %v759_v63, %v729_v61  ;;  %v971_v0 = vpop.f32.mrb[8].mxu0  ;;  %v691_v1 = vadd.f32 %v968_v53, %v690_v62  ;;  %v1283_v2 = vpop.f32.mrb[8].mxu1  ;;  %v740_v53 = vmul.f32 %v1258_v35, %v1258_v35 }
 0x10a   : > { %663 = vst [vmem:[%s1241_s27 + $0x50] sm:$0xff] %v971_v0  ;;  %v558_v3 = vpop.f32.mrb[9].mxu0  ;;  %679 = vst [vmem:[%s1241_s27 + $0xd0] sm:$0xff] %v1283_v2  ;;  %v1288_v4 = vpop.f32.mrb[9].mxu1  ;;  %v733_v17 = vmul.f32 %v971_v0, %v971_v0 }
 0x10b   : > { %661 = vst [vmem:[%s1241_s27 + $0x40] sm:$0xff] %v558_v3  ;;  %v692_v5 = vadd.f32 %v691_v1, %v558_v3  ;;  %v731_v7 = vmul.f32 %v558_v3, %v558_v3  ;;  %v761_v8 = vadd.f32 %v760_v57, %v730_v39  ;;  %v972_v10 = vpop.f32.mrb[10].mxu0  ;;  %677 = vst [vmem:[%s1241_s27 + $0xc0] sm:$0xff] %v1288_v4  ;;  %v1293_v11 = vpop.f32.mrb[10].mxu1 }
 0x10c   : > { %664 = vst [vmem:[%s1241_s27 + $0x58] sm:$0xff] %v972_v10  ;;  %v561_v12 = vpop.f32.mrb[11].mxu0  ;;  %680 = vst [vmem:[%s1241_s27 + $0xd8] sm:$0xff] %v1293_v11  ;;  %v1298_v13 = vpop.f32.mrb[11].mxu1  ;;  %v734_v20 = vmul.f32 %v972_v10, %v972_v10 }
 0x10d   : > { %v762_v14 = vadd.f32 %v761_v8, %v731_v7  ;;  %662 = vst [vmem:[%s1241_s27 + $0x48] sm:$0xff] %v561_v12  ;;  %v693_v15 = vadd.f32 %v692_v5, %v561_v12  ;;  %v732_v16 = vmul.f32 %v561_v12, %v561_v12  ;;  %678 = vst [vmem:[%s1241_s27 + $0xc8] sm:$0xff] %v1298_v13 }
 0x10f   : > { %v694_v18 = vadd.f32 %v971_v0, %v693_v15  ;;  %v763_v19 = vadd.f32 %v762_v14, %v732_v16  ;;  %v744_v0 = vmul.f32 %v1278_v56, %v1278_v56  ;;  %v748_v14 = vmul.f32 %v1298_v13, %v1298_v13 }
 0x111   : > { %v764_v21 = vadd.f32 %v763_v19, %v733_v17  ;;  %v975_v22 = vpop.f32.mrb[12].mxu0  ;;  %v695_v23 = vadd.f32 %v972_v10, %v694_v18  ;;  %v1303_v6 = vpop.f32.mrb[12].mxu1 }
 0x112   : > { %667 = vst [vmem:[%s1241_s27 + $0x70] sm:$0xff] %v975_v22  ;;  %v574_v24 = vpop.f32.mrb[13].mxu0  ;;  %683 = vst [vmem:[%s1241_s27 + $0xf0] sm:$0xff] %v1303_v6  ;;  %v638_v25 = vpop.f32.mrb[13].mxu1  ;;  %v737_v40 = vmul.f32 %v975_v22, %v975_v22 }
 0x113   : > { %665 = vst [vmem:[%s1241_s27 + $0x60] sm:$0xff] %v574_v24  ;;  %v696_v26 = vadd.f32 %v695_v23, %v574_v24  ;;  %v735_v27 = vmul.f32 %v574_v24, %v574_v24  ;;  %v765_v28 = vadd.f32 %v764_v21, %v734_v20  ;;  %v976_v9 = vpop.f32.mrb[14].mxu0  ;;  %681 = vst [vmem:[%s1241_s27 + $0xe0] sm:$0xff] %v638_v25  ;;  %v992_v30 = vpop.f32.mrb[14].mxu1 }
 0x114   : > { %668 = vst [vmem:[%s1241_s27 + $0x78] sm:$0xff] %v976_v9  ;;  %v577_v32 = vpop.f32.mrb[15].mxu0  ;;  %684 = vst [vmem:[%s1241_s27 + $0xf8] sm:$0xff] %v992_v30  ;;  %v641_v34 = vpop.f32.mrb[15].mxu1  ;;  %v738_v43 = vmul.f32 %v976_v9, %v976_v9 }
 0x115   : > { %v766_v36 = vadd.f32 %v765_v28, %v735_v27  ;;  %666 = vst [vmem:[%s1241_s27 + $0x68] sm:$0xff] %v577_v32  ;;  %v697_v37 = vadd.f32 %v696_v26, %v577_v32  ;;  %v736_v38 = vmul.f32 %v577_v32, %v577_v32  ;;  %682 = vst [vmem:[%s1241_s27 + $0xe8] sm:$0xff] %v641_v34 }
 0x116   : > { %v752_v23 = vmul.f32 %v641_v34, %v641_v34  ;;  %v754_v26 = vmul.f32 %v992_v30, %v992_v30 }
 0x117   : > { %v698_v41 = vadd.f32 %v975_v22, %v697_v37  ;;  %v767_v42 = vadd.f32 %v766_v36, %v736_v38 }
 0x119   : > { %v768_v44 = vadd.f32 %v767_v42, %v737_v40  ;;  %v699_v45 = vadd.f32 %v976_v9, %v698_v41 }
 0x11b   : > { %v700_v49 = vadd.f32 %v699_v45, %v1248_v31  ;;  %v769_v51 = vadd.f32 %v768_v44, %v738_v43  ;;  %v743_v31 = vmul.f32 %v1268_v50, %v1268_v50 }
 0x11d   : > { %v770_v46 = vadd.f32 %v769_v51, %v739_v47  ;;  %v701_v52 = vadd.f32 %v700_v49, %v1258_v35 }
 0x11f   : > { %v702_v58 = vadd.f32 %v1243_v29, %v701_v52  ;;  %v771_v59 = vadd.f32 %v770_v46, %v740_v53  ;;  %v745_v29 = vmul.f32 %v1263_v48, %v1263_v48 }
 0x121   : > { %v772_v61 = vadd.f32 %v771_v59, %v741_v55  ;;  %v703_v62 = vadd.f32 %v1253_v33, %v702_v58  ;;  %v746_v33 = vmul.f32 %v1273_v54, %v1273_v54 }
 0x123   : > { %v704_v63 = vadd.f32 %v703_v62, %v1268_v50  ;;  %v773_v39 = vadd.f32 %v772_v61, %v742_v60  ;;  %v747_v50 = vmul.f32 %v1288_v4, %v1288_v4 }
 0x125   : > { %v774_v57 = vadd.f32 %v773_v39, %v743_v31  ;;  %v705_v35 = vadd.f32 %v704_v63, %v1278_v56 }
 0x127   : > { %v706_v1 = vadd.f32 %v1263_v48, %v705_v35  ;;  %v775_v3 = vadd.f32 %v774_v57, %v744_v0  ;;  %v749_v48 = vmul.f32 %v1283_v2, %v1283_v2 }
 0x129   : > { %v776_v5 = vadd.f32 %v775_v3, %v745_v29  ;;  %v707_v7 = vadd.f32 %v1273_v54, %v706_v1  ;;  %v750_v54 = vmul.f32 %v1293_v11, %v1293_v11 }
 0x12b   : > { %v708_v8 = vadd.f32 %v707_v7, %v1288_v4  ;;  %v777_v10 = vadd.f32 %v776_v5, %v746_v33  ;;  %v751_v4 = vmul.f32 %v638_v25, %v638_v25 }
 0x12d   : > { %v778_v12 = vadd.f32 %v777_v10, %v747_v50  ;;  %v709_v56 = vadd.f32 %v708_v8, %v1298_v13  ;;  %v753_v13 = vmul.f32 %v1303_v6, %v1303_v6 }
 0x12f   : > { %v710_v15 = vadd.f32 %v1283_v2, %v709_v56  ;;  %v779_v16 = vadd.f32 %v778_v12, %v748_v14 }
 0x131   : > { %v780_v17 = vadd.f32 %v779_v16, %v749_v48  ;;  %v711_v18 = vadd.f32 %v1293_v11, %v710_v15 }
 0x133   : > { %v712_v19 = vadd.f32 %v711_v18, %v638_v25  ;;  %v781_v20 = vadd.f32 %v780_v17, %v750_v54 }
 0x135   : > { %v782_v21 = vadd.f32 %v781_v20, %v751_v4  ;;  %v713_v22 = vadd.f32 %v712_v19, %v641_v34 }
 0x137   : > { %v714_v24 = vadd.f32 %v1303_v6, %v713_v22  ;;  %v783_v2 = vadd.f32 %v782_v21, %v752_v23 }
 0x139   : > { %v715_v27 = vadd.f32 %v992_v30, %v714_v24  ;;  %v784_v28 = vadd.f32 %v783_v2, %v753_v13 }
 0x13b   : > { %v716_v9 = vrot.slane %v715_v27, 4  ;;  %v785_v32 = vadd.f32 %v784_v28, %v754_v26 }
 0x13d   : > { %v717_v11 = vadd.f32 %v716_v9, %v715_v27  ;;  %v786_v36 = vrot.slane %v785_v32, 4 }
 0x13f   : > { %v718_v25 = vrot.slane %v717_v11, 2  ;;  %v787_v37 = vadd.f32 %v786_v36, %v785_v32 }
 0x141   : > { %v719_v38 = vadd.f32 %v718_v25, %v717_v11  ;;  %v788_v40 = vrot.slane %v787_v37, 2 }
 0x143   : > { %v720_v34 = vrot.slane %v719_v38, 1  ;;  %v789_v41 = vadd.f32 %v788_v40, %v787_v37 }
 0x145   : > { %v721_v6 = vadd.f32 %v720_v34, %v719_v38  ;;  %v790_v42 = vrot.slane %v789_v41, 1 }
 0x147   : > { %722 = vst [vmem:[%s265_s30] sm:$0x1] %v721_v6  ;;  %v791_v30 = vadd.f32 %v790_v42, %v789_v41 }
 0x149   : > { %792 = vst [vmem:[%s268_s9] sm:$0x1] %v791_v30 }
 0x14a PF: > { %s17_s21 = sadd.s32 1, %s1031_s21  }
 0x14b   : > { %p14_p4 = scmp.ge.s32.totalorder %s17_s21, 4  }
 0x14d   :  { %16 = sbr.rel (!%p14_p4) target bundleno = 1 (0x1), region = 90 }

// kernel: bottleneck_pallas.4
= control target key start
LH: loop header
LB: loop body
LE: loop exit
PB: predicated region body
PF: predicated region fallthrough
CT: control target
= control target key end

     0   :  { %s892_s15 = smov 0   ;;  %s1094_s0 = inlined_call_operand.vmem [shape: f32[2,256,128], index: 0, kind: input, shape index: {}]   ;;  %s1095_s1 = inlined_call_operand.vmem [shape: bf16[128,128], index: 1, kind: input, shape index: {}]   ;;  %s1096_s2 = inlined_call_operand.vmem [shape: f32[2,256,128], index: 2, kind: output, shape index: {0}]   ;;  %s1097_s3 = inlined_call_operand.vmem [shape: f32[2,1,128], index: 3, kind: output, shape index: {1}]   ;;  %s1098_s4 = inlined_call_operand.vmem [shape: f32[2,1,128], index: 4, kind: output, shape index: {2}]  }
   0x1 LB: > { %s734_s16 = sadd.s32 4294967295, %s865_s15   ;;  %p738_p0 = scmp.ge.s32.totalorder %s865_s15, 1  ;;  %s865_s15 = sphi %s892_s15, %s15_s15  }
   0x2   : > { %p167_p1 = scmp.lt.s32.totalorder %s865_s15, 3 }
   0x4   : > { %p168_p2 = pnand %p738_p0, %p167_p1 }
   0x5   : > { %v851_v0 = vld [vmem:[%s1095_s1] sm:$0xff] (!%p168_p2)   ;;  %p199_p3 = scmp.lt.s32.totalorder (!%p168_p2), %s734_s16, 1  ;;  %v852_v1 = vld [vmem:[%s1095_s1 + $0x8] sm:$0xff] (!%p168_p2)   ;;  %v853_v2 = vld [vmem:[%s1095_s1 + $0x10] sm:$0xff] (!%p168_p2)  }
   0x6   : > { %171 = sbr.rel (%p168_p2) target bundleno = 330 (0x14a), region = 28  ;;  %779 = vmatprep.subr.bf16.mxu0 (!%p168_p2), %v851_v0  ;;  %827 = vmatprep.subr.bf16.mxu1 (!%p168_p2), %v851_v0  ;;  %v854_v3 = vld [vmem:[%s1095_s1 + $0x18] sm:$0xff] (!%p168_p2)   ;;  %v855_v7 = vld [vmem:[%s1095_s1 + $0x20] sm:$0xff] (!%p168_p2)   ;;  %v856_v11 = vld [vmem:[%s1095_s1 + $0x28] sm:$0xff] (!%p168_p2)  }
   0x7   : > { %780 = vmatpush3.bf16.msra.mxu0 (!%p168_p2), %v851_v0  ;;  %835 = vmatpush3.bf16.msra.mxu1 (!%p168_p2), %v851_v0  ;;  %v857_v12 = vld [vmem:[%s1095_s1 + $0x30] sm:$0xff] (!%p168_p2)   ;;  %v858_v13 = vld [vmem:[%s1095_s1 + $0x38] sm:$0xff] (!%p168_p2)  }
   0x8   : > { %781 = vmatprep.subr.bf16.mxu0 (!%p168_p2), %v852_v1  ;;  %828 = vmatprep.subr.bf16.mxu1 (!%p168_p2), %v852_v1 }
   0xb   : > { %782 = vmatpush3.bf16.msra.mxu0 (!%p168_p2), %v852_v1  ;;  %836 = vmatpush3.bf16.msra.mxu1 (!%p168_p2), %v852_v1 }
   0xc   : > { %783 = vmatprep.subr.bf16.mxu0 (!%p168_p2), %v853_v2  ;;  %829 = vmatprep.subr.bf16.mxu1 (!%p168_p2), %v853_v2 }
   0xd   : > { %s1100_s16 = smov (!%p199_p3, %s734_s16), 1 }
   0xe   : > { %s753_s23 = sshll.u32 %s1100_s16, 8  ;;  %s211_s18 = scalar_lea.vmem %s1097_s3, %s1100_s16 }
   0xf   : > { %s917_s26 = scalar_lea.vmem %s1094_s0, %s753_s23  ;;  %784 = vmatpush3.bf16.msra.mxu0 %v853_v2  ;;  %837 = vmatpush3.bf16.msra.mxu1 %v853_v2  ;;  %s971_s13 = scalar_lea.vmem %s1096_s2, %s753_s23 }
  0x10   : > { %v216_v4 = vld [vmem:[%s917_s26] sm:$0xff]  ;;  %v217_v5 = vld [vmem:[%s917_s26 + $0x8] sm:$0xff]  ;;  %785 = vmatprep.subr.bf16.mxu0 %v854_v3  ;;  %830 = vmatprep.subr.bf16.mxu1 %v854_v3  ;;  %v218_v14 = vld [vmem:[%s917_s26 + $0x10] sm:$0xff]  ;;  %s214_s21 = scalar_lea.vmem %s1098_s4, %s1100_s16 }
  0x11   : > { %v248_v6 = vpack.c.bf16 %v217_v5, %v216_v4  ;;  %v232_v8 = vld [vmem:[%s917_s26 + $0x80] sm:$0xff]  ;;  %v233_v9 = vld [vmem:[%s917_s26 + $0x88] sm:$0xff]  ;;  %v219_v15 = vld [vmem:[%s917_s26 + $0x18] sm:$0xff] }
  0x12   : > { %v256_v10 = vpack.c.bf16 %v233_v9, %v232_v8  ;;  %v220_v16 = vld [vmem:[%s917_s26 + $0x20] sm:$0xff]  ;;  %v221_v17 = vld [vmem:[%s917_s26 + $0x28] sm:$0xff]  ;;  %v234_v18 = vld [vmem:[%s917_s26 + $0x90] sm:$0xff]  ;;  %v249_v22 = vpack.c.bf16 %v219_v15, %v218_v14 }
  0x13   : > { %795 = vmatprep.mubr.bf16.mxu0 %v248_v6  ;;  %786 = vmatpush3.bf16.msra.mxu0 %v854_v3  ;;  %v235_v19 = vld [vmem:[%s917_s26 + $0x98] sm:$0xff]  ;;  %v236_v20 = vld [vmem:[%s917_s26 + $0xa0] sm:$0xff]  ;;  %v237_v21 = vld [vmem:[%s917_s26 + $0xa8] sm:$0xff]  ;;  %v250_v23 = vpack.c.bf16 %v221_v17, %v220_v16 }
  0x14   : > { %787 = vmatprep.subr.bf16.mxu0 %v855_v7  ;;  %838 = vmatpush3.bf16.msra.mxu1 %v854_v3  ;;  %v257_v24 = vpack.c.bf16 %v235_v19, %v234_v18  ;;  %v258_v25 = vpack.c.bf16 %v237_v21, %v236_v20  ;;  %v222_v26 = vld [vmem:[%s917_s26 + $0x30] sm:$0xff]  ;;  %v223_v27 = vld [vmem:[%s917_s26 + $0x38] sm:$0xff]  ;;  %v224_v28 = vld [vmem:[%s917_s26 + $0x40] sm:$0xff] }
  0x15   : > { %831 = vmatprep.subr.bf16.mxu1 %v855_v7  ;;  %811 = vmatprep.mubr.bf16.mxu1 %v256_v10  ;;  %v225_v29 = vld [vmem:[%s917_s26 + $0x48] sm:$0xff]  ;;  %v238_v30 = vld [vmem:[%s917_s26 + $0xb0] sm:$0xff]  ;;  %v239_v31 = vld [vmem:[%s917_s26 + $0xb8] sm:$0xff]  ;;  %v251_v34 = vpack.c.bf16 %v223_v27, %v222_v26 }
  0x16   : > { %v240_v32 = vld [vmem:[%s917_s26 + $0xc0] sm:$0xff]  ;;  %v241_v33 = vld [vmem:[%s917_s26 + $0xc8] sm:$0xff]  ;;  %v252_v35 = vpack.c.bf16 %v225_v29, %v224_v28  ;;  %v259_v36 = vpack.c.bf16 %v239_v31, %v238_v30  ;;  %v226_v38 = vld [vmem:[%s917_s26 + $0x50] sm:$0xff] }
  0x17   : > { %788 = vmatpush3.bf16.msra.mxu0 %v855_v7  ;;  %v260_v37 = vpack.c.bf16 %v241_v33, %v240_v32  ;;  %v227_v39 = vld [vmem:[%s917_s26 + $0x58] sm:$0xff]  ;;  %v228_v40 = vld [vmem:[%s917_s26 + $0x60] sm:$0xff]  ;;  %v229_v41 = vld [vmem:[%s917_s26 + $0x68] sm:$0xff] }
  0x18   : > { %789 = vmatprep.subr.bf16.mxu0 %v856_v11  ;;  %839 = vmatpush3.bf16.msra.mxu1 %v855_v7  ;;  %v242_v42 = vld [vmem:[%s917_s26 + $0xd0] sm:$0xff]  ;;  %v243_v43 = vld [vmem:[%s917_s26 + $0xd8] sm:$0xff]  ;;  %v244_v44 = vld [vmem:[%s917_s26 + $0xe0] sm:$0xff]  ;;  %v253_v46 = vpack.c.bf16 %v227_v39, %v226_v38  ;;  %v254_v47 = vpack.c.bf16 %v229_v41, %v228_v40 }
  0x19   : > { %832 = vmatprep.subr.bf16.mxu1 %v856_v11  ;;  %v245_v45 = vld [vmem:[%s917_s26 + $0xe8] sm:$0xff]  ;;  %v261_v48 = vpack.c.bf16 %v243_v43, %v242_v42  ;;  %v230_v50 = vld [vmem:[%s917_s26 + $0x70] sm:$0xff]  ;;  %v231_v51 = vld [vmem:[%s917_s26 + $0x78] sm:$0xff] }
  0x1a   : > { %v262_v49 = vpack.c.bf16 %v245_v45, %v244_v44  ;;  %v246_v52 = vld [vmem:[%s917_s26 + $0xf0] sm:$0xff]  ;;  %v247_v53 = vld [vmem:[%s917_s26 + $0xf8] sm:$0xff]  ;;  %v255_v54 = vpack.c.bf16 %v231_v51, %v230_v50 }
  0x1b   : > { %790 = vmatpush3.bf16.msra.mxu0 %v856_v11  ;;  %v263_v55 = vpack.c.bf16 %v247_v53, %v246_v52 }
  0x1c   : > { %791 = vmatprep.subr.bf16.mxu0 %v857_v12  ;;  %840 = vmatpush3.bf16.msra.mxu1 %v856_v11 }
  0x1d   : > { %833 = vmatprep.subr.bf16.mxu1 %v857_v12 }
  0x1f   : > { %792 = vmatpush3.bf16.msra.mxu0 %v857_v12 }
  0x20   : > { %793 = vmatprep.subr.bf16.mxu0 %v858_v13  ;;  %841 = vmatpush3.bf16.msra.mxu1 %v857_v12 }
  0x21   : > { %834 = vmatprep.subr.bf16.mxu1 %v858_v13 }
  0x23   : > { %794 = vmatpush3.bf16.msra.mxu0 %v858_v13 }
  0x24   : > { %842 = vmatpush3.bf16.msra.mxu1 %v858_v13 }
  0x26   : > { %796 = vmatmul.mubr.bf16.vlgmr.msra.gmra.mrb[0].mxu0 %v249_v22 }
  0x27   : > { %799 = vmatprep.mubr.bf16.mxu0 %v250_v23  ;;  %812 = vmatmul.mubr.bf16.vlgmr.msra.gmra.mrb[0].mxu1 %v257_v24 }
  0x28   : > { %815 = vmatprep.mubr.bf16.mxu1 %v258_v25 }
  0x2e   : > { %800 = vmatmul.mubr.bf16.gmra.mrb[4].mxu0 %v251_v34 }
  0x2f   : > { %803 = vmatprep.mubr.bf16.mxu0 %v252_v35  ;;  %816 = vmatmul.mubr.bf16.gmra.mrb[4].mxu1 %v259_v36 }
  0x30   : > { %819 = vmatprep.mubr.bf16.mxu1 %v260_v37 }
  0x36   : > { %804 = vmatmul.mubr.bf16.gmra.mrb[8].mxu0 %v253_v46 }
  0x37   : > { %807 = vmatprep.mubr.bf16.mxu0 %v254_v47  ;;  %820 = vmatmul.mubr.bf16.gmra.mrb[8].mxu1 %v261_v48 }
  0x38   : > { %823 = vmatprep.mubr.bf16.mxu1 %v262_v49 }
  0x3e   : > { %808 = vmatmul.mubr.bf16.gmra.mrb[12].mxu0 %v255_v54 }
  0x3f   : > { %824 = vmatmul.mubr.bf16.gmra.mrb[12].mxu1 %v263_v55 }
  0xf9   : > { %v797_v56 = vpop.f32.mrb[0].mxu0 }
  0xfa   : > { %491 = vst [vmem:[%s971_s13 + $0x10] sm:$0xff] %v797_v56  ;;  %v362_v57 = vpop.f32.mrb[1].mxu0  ;;  %v974_v58 = vpop.f32.mrb[0].mxu1  ;;  %v561_v3 = vmul.f32 %v797_v56, %v797_v56 }
  0xfb   : > { %489 = vst [vmem:[%s971_s13] sm:$0xff] %v362_v57  ;;  %v798_v59 = vpop.f32.mrb[2].mxu0  ;;  %507 = vst [vmem:[%s971_s13 + $0x90] sm:$0xff] %v974_v58  ;;  %v979_v60 = vpop.f32.mrb[1].mxu1  ;;  %v559_v63 = vmul.f32 %v362_v57, %v362_v57 }
  0xfc   : > { %492 = vst [vmem:[%s971_s13 + $0x18] sm:$0xff] %v798_v59  ;;  %v365_v61 = vpop.f32.mrb[3].mxu0  ;;  %505 = vst [vmem:[%s971_s13 + $0x80] sm:$0xff] %v979_v60  ;;  %v984_v62 = vpop.f32.mrb[2].mxu1  ;;  %v562_v6 = vmul.f32 %v798_v59, %v798_v59 }
  0xfd   : > { %490 = vst [vmem:[%s971_s13 + $0x8] sm:$0xff] %v365_v61  ;;  %v521_v0 = vadd.f32 %v365_v61, %v362_v57  ;;  %v560_v1 = vmul.f32 %v365_v61, %v365_v61  ;;  %508 = vst [vmem:[%s971_s13 + $0x98] sm:$0xff] %v984_v62  ;;  %v989_v2 = vpop.f32.mrb[3].mxu1 }
  0xfe   : > { %506 = vst [vmem:[%s971_s13 + $0x88] sm:$0xff] %v989_v2 }
  0xff   : > { %v522_v4 = vadd.f32 %v797_v56, %v521_v0  ;;  %v591_v5 = vadd.f32 %v560_v1, %v559_v63 }
 0x101   : > { %v592_v7 = vadd.f32 %v591_v5, %v561_v3  ;;  %v801_v8 = vpop.f32.mrb[4].mxu0  ;;  %v523_v9 = vadd.f32 %v798_v59, %v522_v4 }
 0x102   : > { %495 = vst [vmem:[%s971_s13 + $0x30] sm:$0xff] %v801_v8  ;;  %v378_v10 = vpop.f32.mrb[5].mxu0  ;;  %v994_v11 = vpop.f32.mrb[4].mxu1  ;;  %v565_v23 = vmul.f32 %v801_v8, %v801_v8 }
 0x103   : > { %493 = vst [vmem:[%s971_s13 + $0x20] sm:$0xff] %v378_v10  ;;  %v524_v12 = vadd.f32 %v523_v9, %v378_v10  ;;  %v563_v13 = vmul.f32 %v378_v10, %v378_v10  ;;  %v593_v14 = vadd.f32 %v592_v7, %v562_v6  ;;  %v802_v15 = vpop.f32.mrb[6].mxu0  ;;  %511 = vst [vmem:[%s971_s13 + $0xb0] sm:$0xff] %v994_v11  ;;  %v999_v16 = vpop.f32.mrb[5].mxu1 }
 0x104   : > { %496 = vst [vmem:[%s971_s13 + $0x38] sm:$0xff] %v802_v15  ;;  %v381_v17 = vpop.f32.mrb[7].mxu0  ;;  %509 = vst [vmem:[%s971_s13 + $0xa0] sm:$0xff] %v999_v16  ;;  %v1004_v18 = vpop.f32.mrb[6].mxu1  ;;  %v566_v26 = vmul.f32 %v802_v15, %v802_v15  ;;  %v575_v9 = vmul.f32 %v979_v60, %v979_v60 }
 0x105   : > { %v594_v19 = vadd.f32 %v593_v14, %v563_v13  ;;  %494 = vst [vmem:[%s971_s13 + $0x28] sm:$0xff] %v381_v17  ;;  %v525_v20 = vadd.f32 %v524_v12, %v381_v17  ;;  %v564_v21 = vmul.f32 %v381_v17, %v381_v17  ;;  %512 = vst [vmem:[%s971_s13 + $0xb8] sm:$0xff] %v1004_v18  ;;  %v1009_v22 = vpop.f32.mrb[7].mxu1 }
 0x106   : > { %510 = vst [vmem:[%s971_s13 + $0xa8] sm:$0xff] %v1009_v22  ;;  %v577_v17 = vmul.f32 %v974_v58, %v974_v58 }
 0x107   : > { %v526_v24 = vadd.f32 %v801_v8, %v525_v20  ;;  %v595_v25 = vadd.f32 %v594_v19, %v564_v21  ;;  %v578_v21 = vmul.f32 %v984_v62, %v984_v62 }
 0x109   : > { %v596_v27 = vadd.f32 %v595_v25, %v565_v23  ;;  %v805_v28 = vpop.f32.mrb[8].mxu0  ;;  %v527_v29 = vadd.f32 %v802_v15, %v526_v24  ;;  %v576_v15 = vmul.f32 %v989_v2, %v989_v2 }
 0x10a   : > { %499 = vst [vmem:[%s971_s13 + $0x50] sm:$0xff] %v805_v28  ;;  %v394_v30 = vpop.f32.mrb[9].mxu0  ;;  %v1014_v31 = vpop.f32.mrb[8].mxu1  ;;  %v569_v43 = vmul.f32 %v805_v28, %v805_v28 }
 0x10b   : > { %497 = vst [vmem:[%s971_s13 + $0x40] sm:$0xff] %v394_v30  ;;  %v528_v32 = vadd.f32 %v527_v29, %v394_v30  ;;  %v567_v33 = vmul.f32 %v394_v30, %v394_v30  ;;  %v597_v34 = vadd.f32 %v596_v27, %v566_v26  ;;  %v806_v35 = vpop.f32.mrb[10].mxu0  ;;  %515 = vst [vmem:[%s971_s13 + $0xd0] sm:$0xff] %v1014_v31  ;;  %v1019_v36 = vpop.f32.mrb[9].mxu1 }
 0x10c   : > { %500 = vst [vmem:[%s971_s13 + $0x58] sm:$0xff] %v806_v35  ;;  %v397_v37 = vpop.f32.mrb[11].mxu0  ;;  %513 = vst [vmem:[%s971_s13 + $0xc0] sm:$0xff] %v1019_v36  ;;  %v1024_v38 = vpop.f32.mrb[10].mxu1  ;;  %v570_v46 = vmul.f32 %v806_v35, %v806_v35 }
 0x10d   : > { %v598_v39 = vadd.f32 %v597_v34, %v567_v33  ;;  %498 = vst [vmem:[%s971_s13 + $0x48] sm:$0xff] %v397_v37  ;;  %v529_v40 = vadd.f32 %v528_v32, %v397_v37  ;;  %v568_v41 = vmul.f32 %v397_v37, %v397_v37  ;;  %516 = vst [vmem:[%s971_s13 + $0xd8] sm:$0xff] %v1024_v38  ;;  %v1029_v42 = vpop.f32.mrb[11].mxu1 }
 0x10e   : > { %514 = vst [vmem:[%s971_s13 + $0xc8] sm:$0xff] %v1029_v42 }
 0x10f   : > { %v530_v44 = vadd.f32 %v805_v28, %v529_v40  ;;  %v599_v45 = vadd.f32 %v598_v39, %v568_v41  ;;  %v580_v28 = vmul.f32 %v1009_v22, %v1009_v22  ;;  %v584_v39 = vmul.f32 %v1029_v42, %v1029_v42 }
 0x111   : > { %v600_v47 = vadd.f32 %v599_v45, %v569_v43  ;;  %v809_v48 = vpop.f32.mrb[12].mxu0  ;;  %v531_v49 = vadd.f32 %v806_v35, %v530_v44 }
 0x112   : > { %503 = vst [vmem:[%s971_s13 + $0x70] sm:$0xff] %v809_v48  ;;  %v410_v50 = vpop.f32.mrb[13].mxu0  ;;  %v1034_v51 = vpop.f32.mrb[12].mxu1  ;;  %v573_v3 = vmul.f32 %v809_v48, %v809_v48 }
 0x113   : > { %501 = vst [vmem:[%s971_s13 + $0x60] sm:$0xff] %v410_v50  ;;  %v532_v52 = vadd.f32 %v531_v49, %v410_v50  ;;  %v571_v53 = vmul.f32 %v410_v50, %v410_v50  ;;  %v601_v54 = vadd.f32 %v600_v47, %v570_v46  ;;  %v810_v55 = vpop.f32.mrb[14].mxu0  ;;  %519 = vst [vmem:[%s971_s13 + $0xf0] sm:$0xff] %v1034_v51  ;;  %v474_v56 = vpop.f32.mrb[13].mxu1 }
 0x114   : > { %504 = vst [vmem:[%s971_s13 + $0x78] sm:$0xff] %v810_v55  ;;  %v413_v57 = vpop.f32.mrb[15].mxu0  ;;  %517 = vst [vmem:[%s971_s13 + $0xe0] sm:$0xff] %v474_v56  ;;  %v826_v59 = vpop.f32.mrb[14].mxu1  ;;  %v574_v6 = vmul.f32 %v810_v55, %v810_v55 }
 0x115   : > { %v602_v61 = vadd.f32 %v601_v54, %v571_v53  ;;  %502 = vst [vmem:[%s971_s13 + $0x68] sm:$0xff] %v413_v57  ;;  %v533_v63 = vadd.f32 %v532_v52, %v413_v57  ;;  %v572_v0 = vmul.f32 %v413_v57, %v413_v57  ;;  %520 = vst [vmem:[%s971_s13 + $0xf8] sm:$0xff] %v826_v59  ;;  %v477_v1 = vpop.f32.mrb[15].mxu1 }
 0x116   : > { %518 = vst [vmem:[%s971_s13 + $0xe8] sm:$0xff] %v477_v1  ;;  %v588_v49 = vmul.f32 %v477_v1, %v477_v1  ;;  %v590_v52 = vmul.f32 %v826_v59, %v826_v59 }
 0x117   : > { %v534_v4 = vadd.f32 %v809_v48, %v533_v63  ;;  %v603_v5 = vadd.f32 %v602_v61, %v572_v0 }
 0x119   : > { %v604_v7 = vadd.f32 %v603_v5, %v573_v3  ;;  %v535_v8 = vadd.f32 %v810_v55, %v534_v4 }
 0x11b   : > { %v536_v10 = vadd.f32 %v535_v8, %v979_v60  ;;  %v605_v12 = vadd.f32 %v604_v7, %v574_v6  ;;  %v579_v60 = vmul.f32 %v999_v16, %v999_v16 }
 0x11d   : > { %v606_v13 = vadd.f32 %v605_v12, %v575_v9  ;;  %v537_v14 = vadd.f32 %v536_v10, %v989_v2 }
 0x11f   : > { %v538_v19 = vadd.f32 %v974_v58, %v537_v14  ;;  %v607_v20 = vadd.f32 %v606_v13, %v576_v15  ;;  %v581_v58 = vmul.f32 %v994_v11, %v994_v11 }
 0x121   : > { %v608_v23 = vadd.f32 %v607_v20, %v577_v17  ;;  %v539_v24 = vadd.f32 %v984_v62, %v538_v19  ;;  %v582_v62 = vmul.f32 %v1004_v18, %v1004_v18 }
 0x123   : > { %v540_v25 = vadd.f32 %v539_v24, %v999_v16  ;;  %v609_v26 = vadd.f32 %v608_v23, %v578_v21  ;;  %v583_v16 = vmul.f32 %v1019_v36, %v1019_v36 }
 0x125   : > { %v610_v27 = vadd.f32 %v609_v26, %v579_v60  ;;  %v541_v2 = vadd.f32 %v540_v25, %v1009_v22 }
 0x127   : > { %v542_v29 = vadd.f32 %v994_v11, %v541_v2  ;;  %v611_v30 = vadd.f32 %v610_v27, %v580_v28  ;;  %v585_v11 = vmul.f32 %v1014_v31, %v1014_v31 }
 0x129   : > { %v612_v32 = vadd.f32 %v611_v30, %v581_v58  ;;  %v543_v33 = vadd.f32 %v1004_v18, %v542_v29  ;;  %v586_v18 = vmul.f32 %v1024_v38, %v1024_v38 }
 0x12b   : > { %v544_v34 = vadd.f32 %v543_v33, %v1019_v36  ;;  %v613_v35 = vadd.f32 %v612_v32, %v582_v62  ;;  %v587_v36 = vmul.f32 %v474_v56, %v474_v56 }
 0x12d   : > { %v614_v37 = vadd.f32 %v613_v35, %v583_v16  ;;  %v545_v22 = vadd.f32 %v544_v34, %v1029_v42  ;;  %v589_v42 = vmul.f32 %v1034_v51, %v1034_v51 }
 0x12f   : > { %v546_v40 = vadd.f32 %v1014_v31, %v545_v22  ;;  %v615_v41 = vadd.f32 %v614_v37, %v584_v39 }
 0x131   : > { %v616_v43 = vadd.f32 %v615_v41, %v585_v11  ;;  %v547_v44 = vadd.f32 %v1024_v38, %v546_v40 }
 0x133   : > { %v548_v45 = vadd.f32 %v547_v44, %v474_v56  ;;  %v617_v46 = vadd.f32 %v616_v43, %v586_v18 }
 0x135   : > { %v618_v47 = vadd.f32 %v617_v46, %v587_v36  ;;  %v549_v48 = vadd.f32 %v548_v45, %v477_v1 }
 0x137   : > { %v550_v50 = vadd.f32 %v1034_v51, %v549_v48  ;;  %v619_v31 = vadd.f32 %v618_v47, %v588_v49 }
 0x139   : > { %v551_v53 = vadd.f32 %v826_v59, %v550_v50  ;;  %v620_v54 = vadd.f32 %v619_v31, %v589_v42 }
 0x13b   : > { %v552_v55 = vrot.slane %v551_v53, 4  ;;  %v621_v57 = vadd.f32 %v620_v54, %v590_v52 }
 0x13d   : > { %v553_v38 = vadd.f32 %v552_v55, %v551_v53  ;;  %v622_v61 = vrot.slane %v621_v57, 4 }
 0x13f   : > { %v554_v56 = vrot.slane %v553_v38, 2  ;;  %v623_v63 = vadd.f32 %v622_v61, %v621_v57 }
 0x141   : > { %v555_v0 = vadd.f32 %v554_v56, %v553_v38  ;;  %v624_v3 = vrot.slane %v623_v63, 2 }
 0x143   : > { %v556_v1 = vrot.slane %v555_v0, 1  ;;  %v625_v4 = vadd.f32 %v624_v3, %v623_v63 }
 0x145   : > { %v557_v51 = vadd.f32 %v556_v1, %v555_v0  ;;  %v626_v5 = vrot.slane %v625_v4, 1 }
 0x147   : > { %558 = vst [vmem:[%s211_s18] sm:$0x1] %v557_v51  ;;  %v627_v59 = vadd.f32 %v626_v5, %v625_v4 }
 0x149   : > { %628 = vst [vmem:[%s214_s21] sm:$0x1] %v627_v59 }
 0x14a PF: > { %s15_s15 = sadd.s32 1, %s865_s15  }
 0x14b   : > { %p12_p4 = scmp.ge.s32.totalorder %s15_s15, 4  }
 0x14d   :  { %14 = sbr.rel (!%p12_p4) target bundleno = 1 (0x1), region = 82 }

// kernel: bottleneck_pallas.5
= control target key start
LH: loop header
LB: loop body
LE: loop exit
PB: predicated region body
PF: predicated region fallthrough
CT: control target
= control target key end

     0   :  { %s3584_s21 = smov 0   ;;  %s4666_s0 = inlined_call_operand.vmem [shape: f32[2,256,128], index: 0, kind: input, shape index: {}]   ;;  %s4667_s1 = inlined_call_operand.vmem [shape: f32[1,128], index: 1, kind: input, shape index: {}]   ;;  %s4668_s2 = inlined_call_operand.vmem [shape: f32[1,128], index: 2, kind: input, shape index: {}]   ;;  %s4669_s3 = inlined_call_operand.vmem [shape: bf16[1152,128], index: 3, kind: input, shape index: {}]   ;;  %s4670_s4 = inlined_call_operand.vmem [shape: f32[2,256,128], index: 4, kind: output, shape index: {0}]   ;;  %s4671_s5 = inlined_call_operand.vmem [shape: f32[2,1,128], index: 5, kind: output, shape index: {1}]   ;;  %s4672_s6 = inlined_call_operand.vmem [shape: f32[2,1,128], index: 6, kind: output, shape index: {2}]  }
   0x1 LB: > { %s2835_s22 = sadd.s32 4294967295, %s3546_s21   ;;  %p2839_p0 = scmp.ge.s32.totalorder %s3546_s21, 1  ;;  %s3546_s21 = sphi %s3584_s21, %s17_s21  }
   0x2   : > { %p217_p1 = scmp.lt.s32.totalorder %s3546_s21, 3 }
   0x4   : > { %p218_p2 = pnand %p2839_p0, %p217_p1 }
   0x5   : > { %v3467_v0 = vld [vmem:[%s4669_s3 + $0x40] sm:$0xff] (!%p218_p2)   ;;  %v3548_v2 = vmov (!%p218_p2), 0.0   ;;  %v3469_v3 = vld [vmem:[%s4669_s3 + $0x48] sm:$0xff] (!%p218_p2)   ;;  %p253_p3 = scmp.lt.s32.totalorder (!%p218_p2), %s2835_s22, 1  ;;  %v3471_v5 = vld [vmem:[%s4669_s3 + $0x50] sm:$0xff] (!%p218_p2)  }
   0x6   : > { %221 = sbr.rel (%p218_p2) target bundleno = 557 (0x22d), region = 36  ;;  %v3468_v1 = vld [vmem:[%s4669_s3] sm:$0xff] (!%p218_p2)   ;;  %270 = vst [vmem:[#allocation2] sm:$0xff] (!%p218_p2), %v3548_v2  ;;  %271 = vst [vmem:[#allocation2 + $0x8] sm:$0xff] (!%p218_p2), %v3548_v2  ;;  %2922 = vmatprep.subr.bf16.mxu0 (!%p218_p2), %v3467_v0  ;;  %3442 = vmatprep.subr.bf16.mxu1 (!%p218_p2), %v3467_v0  ;;  %v3470_v4 = vld [vmem:[%s4669_s3 + $0x8] sm:$0xff] (!%p218_p2)  }
   0x7   : > { %272 = vst [vmem:[#allocation2 + $0x10] sm:$0x3] (!%p218_p2), %v3548_v2  ;;  %274 = vst [vmem:[#allocation2 + $0x198] sm:$0xff] (!%p218_p2), %v3548_v2  ;;  %2923 = vmatpush3.bf16.msra.mxu0 (!%p218_p2), %v3468_v1  ;;  %3450 = vmatpush3.bf16.msra.mxu1 (!%p218_p2), %v3468_v1  ;;  %v3472_v6 = vld [vmem:[%s4669_s3 + $0x10] sm:$0xff] (!%p218_p2)   ;;  %v3473_v7 = vld [vmem:[%s4669_s3 + $0x58] sm:$0xff] (!%p218_p2)  }
   0x8   : > { %275 = vst [vmem:[#allocation2 + $0x1a0] sm:$0xff] (!%p218_p2), %v3548_v2  ;;  %276 = vst [vmem:[#allocation2 + $0x1a8] sm:$0x3] (!%p218_p2), %v3548_v2  ;;  %2924 = vmatprep.subr.bf16.mxu0 (!%p218_p2), %v3469_v3  ;;  %3443 = vmatprep.subr.bf16.mxu1 (!%p218_p2), %v3469_v3  ;;  %v3474_v8 = vld [vmem:[%s4669_s3 + $0x18] sm:$0xff] (!%p218_p2)   ;;  %v3475_v9 = vld [vmem:[%s4669_s3 + $0x60] sm:$0xff] (!%p218_p2)  }
   0x9   : > { %278 = vst [vmem:[#allocation2 + $0x18] sm:$0x1] (!%p218_p2), %v3548_v2  ;;  %279 = vst [vmem:[#allocation2 + $0x30] sm:$0x1] (!%p218_p2), %v3548_v2  ;;  %v3476_v10 = vld [vmem:[%s4669_s3 + $0x20] sm:$0xff] (!%p218_p2)   ;;  %v3477_v11 = vld [vmem:[%s4669_s3 + $0x68] sm:$0xff] (!%p218_p2)  }
   0xa   : > { %280 = vst [vmem:[#allocation2 + $0x48] sm:$0x1] (!%p218_p2), %v3548_v2  ;;  %281 = vst [vmem:[#allocation2 + $0x60] sm:$0x1] (!%p218_p2), %v3548_v2  ;;  %v3686_v17 = vld [vmem:[%s4667_s1] ss:$0 sm:$0xff] (!%p218_p2) }
   0xb   : > { %282 = vst [vmem:[#allocation2 + $0x78] sm:$0x1] (!%p218_p2), %v3548_v2  ;;  %283 = vst [vmem:[#allocation2 + $0x90] sm:$0x1] (!%p218_p2), %v3548_v2  ;;  %2925 = vmatpush3.bf16.msra.mxu0 (!%p218_p2), %v3470_v4  ;;  %3451 = vmatpush3.bf16.msra.mxu1 (!%p218_p2), %v3470_v4  ;;  %v3691_v18 = vld [vmem:[%s4668_s2] ss:$0 sm:$0xff] (!%p218_p2) }
   0xc   : > { %284 = vst [vmem:[#allocation2 + $0xa8] sm:$0x1] (!%p218_p2), %v3548_v2  ;;  %285 = vst [vmem:[#allocation2 + $0xc0] sm:$0x1] (!%p218_p2), %v3548_v2  ;;  %2926 = vmatprep.subr.bf16.mxu0 (!%p218_p2), %v3471_v5  ;;  %3444 = vmatprep.subr.bf16.mxu1 (!%p218_p2), %v3471_v5  ;;  %v3478_v21 = vld [vmem:[%s4669_s3 + $0x28] sm:$0xff] (!%p218_p2)   ;;  %v3479_v22 = vld [vmem:[%s4669_s3 + $0x70] sm:$0xff] (!%p218_p2)  }
   0xd   : > { %286 = vst [vmem:[#allocation2 + $0xd8] sm:$0x1] %v3548_v2  ;;  %287 = vst [vmem:[#allocation2 + $0xf0] sm:$0x1] %v3548_v2  ;;  %s4674_s22 = smov (!%p253_p3, %s2835_s22), 1  ;;  %v552_v12 = vld [vmem:[#allocation2 + $0x1] sm:$0xff] }
   0xe   : > { %288 = vst [vmem:[#allocation2 + $0x108] sm:$0x1] %v3548_v2  ;;  %289 = vst [vmem:[#allocation2 + $0x120] sm:$0x1] %v3548_v2  ;;  %s2920_s13 = sshll.u32 %s4674_s22, 8  ;;  %v553_v13 = vld [vmem:[#allocation2 + $0x9] sm:$0xff]  ;;  %s265_s12 = scalar_lea.vmem %s4671_s5, %s4674_s22 }
   0xf   : > { %290 = vst [vmem:[#allocation2 + $0x138] sm:$0x1] %v3548_v2  ;;  %291 = vst [vmem:[#allocation2 + $0x150] sm:$0x1] %v3548_v2  ;;  %2927 = vmatpush3.bf16.msra.mxu0 %v3472_v6  ;;  %3452 = vmatpush3.bf16.msra.mxu1 %v3472_v6  ;;  %s3673_s20 = scalar_lea.vmem %s4666_s0, %s2920_s13  ;;  %v584_v15 = vpack.c.bf16 %v553_v13, %v552_v12  ;;  %v3480_v25 = vld [vmem:[%s4669_s3 + $0x30] sm:$0xff]   ;;  %v3481_v28 = vld [vmem:[%s4669_s3 + $0x78] sm:$0xff]   ;;  %s4571_s10 = scalar_lea.vmem %s4670_s4, %s2920_s13 }
  0x10   : > { %292 = vst [vmem:[#allocation2 + $0x168] sm:$0x1] %v3548_v2  ;;  %293 = vst [vmem:[#allocation2 + $0x180] sm:$0x1] %v3548_v2  ;;  %2928 = vmatprep.subr.bf16.mxu0 %v3473_v7  ;;  %3445 = vmatprep.subr.bf16.mxu1 %v3473_v7  ;;  %v335_v14 = vld [vmem:[%s3673_s20 + $0xb0] sm:$0xff]  ;;  %v336_v16 = vld [vmem:[%s3673_s20 + $0xb8] sm:$0xff] }
  0x11   : > { %296 = vst [vmem:[#allocation2 + $0x29] sm:$0x1] %v3548_v2  ;;  %297 = vst [vmem:[#allocation2 + $0x41] sm:$0x1] %v3548_v2  ;;  %v374_v19 = vmul.f32 %v3686_v17, %v335_v14  ;;  %v375_v20 = vmul.f32 %v3686_v17, %v336_v16  ;;  %1817 = vmatprep.mubr.bf16.mxu0 %v584_v15  ;;  %v313_v30 = vld [vmem:[%s3673_s20] sm:$0xff]  ;;  %v314_v31 = vld [vmem:[%s3673_s20 + $0x8] sm:$0xff] }
  0x12   : > { %298 = vst [vmem:[#allocation2 + $0x59] sm:$0x1] %v3548_v2  ;;  %299 = vst [vmem:[#allocation2 + $0x71] sm:$0x1] %v3548_v2  ;;  %v3482_v32 = vld [vmem:[%s4669_s3 + $0x38] sm:$0xff]   ;;  %v352_v33 = vmul.f32 %v3686_v17, %v313_v30  ;;  %v353_v34 = vmul.f32 %v3686_v17, %v314_v31  ;;  %v337_v35 = vld [vmem:[%s3673_s20 + $0xc0] sm:$0xff] }
  0x13   : > { %300 = vst [vmem:[#allocation2 + $0x89] sm:$0x1] %v3548_v2  ;;  %301 = vst [vmem:[#allocation2 + $0xa1] sm:$0x1] %v3548_v2  ;;  %2929 = vmatpush3.bf16.msra.mxu0 %v3474_v8  ;;  %3453 = vmatpush3.bf16.msra.mxu1 %v3474_v8  ;;  %v413_v23 = vadd.f32 %v3691_v18, %v374_v19  ;;  %v414_v24 = vadd.f32 %v3691_v18, %v375_v20  ;;  %v338_v36 = vld [vmem:[%s3673_s20 + $0xc8] sm:$0xff]  ;;  %v3483_v40 = vld [vmem:[%s4669_s3 + $0xc0] sm:$0xff]  }
  0x14   : > { %302 = vst [vmem:[#allocation2 + $0xb9] sm:$0x1] %v3548_v2  ;;  %303 = vst [vmem:[#allocation2 + $0xd1] sm:$0x1] %v3548_v2  ;;  %2930 = vmatprep.subr.bf16.mxu0 %v3475_v9  ;;  %3446 = vmatprep.subr.bf16.mxu1 %v3475_v9  ;;  %v376_v38 = vmul.f32 %v3686_v17, %v337_v35  ;;  %v377_v39 = vmul.f32 %v3686_v17, %v338_v36  ;;  %v3484_v43 = vld [vmem:[%s4669_s3 + $0x140] sm:$0xff]   ;;  %v3487_v51 = vld [vmem:[%s4669_s3 + $0xc8] sm:$0xff]  }
  0x15   : > { %304 = vst [vmem:[#allocation2 + $0xe9] sm:$0x1] %v3548_v2  ;;  %305 = vst [vmem:[#allocation2 + $0x101] sm:$0x1] %v3548_v2  ;;  %v445_v26 = vmax.f32 %v413_v23, 0.0  ;;  %v446_v27 = vmax.f32 %v414_v24, 0.0  ;;  %v391_v41 = vadd.f32 %v3691_v18, %v352_v33  ;;  %v392_v42 = vadd.f32 %v3691_v18, %v353_v34 }
  0x16   : > { %306 = vst [vmem:[#allocation2 + $0x119] sm:$0x1] %v3548_v2  ;;  %307 = vst [vmem:[#allocation2 + $0x131] sm:$0x1] %v3548_v2  ;;  %v415_v44 = vadd.f32 %v3691_v18, %v376_v38  ;;  %v416_v45 = vadd.f32 %v3691_v18, %v377_v39  ;;  %v3485_v46 = vld [vmem:[%s4669_s3 + $0x80] sm:$0xff]   ;;  %v3492_v58 = vld [vmem:[%s4669_s3 + $0x148] sm:$0xff]  }
  0x17   : > { %308 = vst [vmem:[#allocation2 + $0x149] sm:$0x1] %v3548_v2  ;;  %309 = vst [vmem:[#allocation2 + $0x161] sm:$0x1] %v3548_v2  ;;  %2931 = vmatpush3.bf16.msra.mxu0 %v3476_v10  ;;  %3454 = vmatpush3.bf16.msra.mxu1 %v3476_v10  ;;  %v596_v29 = vpack.c.bf16 %v446_v27, %v445_v26  ;;  %v3486_v47 = vld [vmem:[%s4669_s3 + $0x100] sm:$0xff]   ;;  %v423_v48 = vmax.f32 %v391_v41, 0.0 }
  0x18   : > { %310 = vst [vmem:[#allocation2 + $0x179] sm:$0x1] %v3548_v2  ;;  %311 = vst [vmem:[#allocation2 + $0x191] sm:$0x1] %v3548_v2  ;;  %2932 = vmatprep.subr.bf16.mxu0 %v3477_v11  ;;  %3447 = vmatprep.subr.bf16.mxu1 %v3477_v11  ;;  %v424_v49 = vmax.f32 %v392_v42, 0.0  ;;  %v447_v52 = vmax.f32 %v415_v44, 0.0 }
  0x19   : > { %295 = vst [vmem:[#allocation2 + $0x11] sm:$0x1] %v3548_v2  ;;  %277 = vst [vmem:[#allocation2] sm:$0x1] %v3548_v2  ;;  %1913 = vmatprep.mubr.bf16.mxu1 %v596_v29  ;;  %v448_v53 = vmax.f32 %v416_v45, 0.0  ;;  %v315_v59 = vld [vmem:[%s3673_s20 + $0x10] sm:$0xff] }
  0x1a   : > { %294 = vst [vmem:[#allocation2 + $0x198] sm:$0x1] %v3548_v2  ;;  %312 = vst [vmem:[#allocation2 + $0x1a9] sm:$0x1] %v3548_v2  ;;  %v3740_v57 = vpack.c.bf16 %v424_v49, %v423_v48  ;;  %v316_v61 = vld [vmem:[%s3673_s20 + $0x18] sm:$0xff]  ;;  %v354_v62 = vmul.f32 %v3686_v17, %v315_v59  ;;  %v339_v63 = vld [vmem:[%s3673_s20 + $0xd0] sm:$0xff] }
  0x1b   : > { %2933 = vmatpush3.bf16.msra.mxu0 %v3478_v21  ;;  %3455 = vmatpush3.bf16.msra.mxu1 %v3478_v21  ;;  %478 = vst [vmem:[#allocation2 + $0x121] sm:$0xff] %v445_v26  ;;  %479 = vst [vmem:[#allocation2 + $0x129] sm:$0xff] %v446_v27  ;;  %v597_v60 = vpack.c.bf16 %v448_v53, %v447_v52  ;;  %v340_v0 = vld [vmem:[%s3673_s20 + $0xd8] sm:$0xff]  ;;  %v3488_v1 = vld [vmem:[%s4669_s3 + $0x88] sm:$0xff]   ;;  %v378_v3 = vmul.f32 %v3686_v17, %v339_v63 }
  0x1c   : > { %2934 = vmatprep.subr.bf16.mxu0 %v3479_v22  ;;  %3448 = vmatprep.subr.bf16.mxu1 %v3479_v22  ;;  %456 = vst [vmem:[#allocation2 + $0x19] sm:$0xff] %v423_v48  ;;  %457 = vst [vmem:[#allocation2 + $0x21] sm:$0xff] %v424_v49  ;;  %v379_v4 = vmul.f32 %v3686_v17, %v340_v0  ;;  %v3494_v5 = vld [vmem:[%s4669_s3 + $0x108] sm:$0xff]   ;;  %v393_v6 = vadd.f32 %v3691_v18, %v354_v62  ;;  %v3489_v7 = vld [vmem:[%s4669_s3 + $0xd0] sm:$0xff]  }
  0x1d   : > { %480 = vst [vmem:[#allocation2 + $0x139] sm:$0xff] %v447_v52  ;;  %481 = vst [vmem:[#allocation2 + $0x141] sm:$0xff] %v448_v53  ;;  %v417_v9 = vadd.f32 %v3691_v18, %v378_v3  ;;  %v3490_v11 = vld [vmem:[%s4669_s3 + $0x90] sm:$0xff]   ;;  %v3491_v15 = vld [vmem:[%s4669_s3 + $0xd8] sm:$0xff]  }
  0x1e   : > { %v418_v10 = vadd.f32 %v3691_v18, %v379_v4  ;;  %v425_v12 = vmax.f32 %v393_v6, 0.0  ;;  %v317_v21 = vld [vmem:[%s3673_s20 + $0x20] sm:$0xff]  ;;  %v3493_v33 = vld [vmem:[%s4669_s3 + $0x98] sm:$0xff]   ;;  %v3500_v38 = vld [vmem:[%s4669_s3 + $0x150] sm:$0xff]  }
  0x1f   : > { %2935 = vmatpush3.bf16.msra.mxu0 %v3480_v25  ;;  %3456 = vmatpush3.bf16.msra.mxu1 %v3480_v25  ;;  %v449_v19 = vmax.f32 %v417_v9, 0.0  ;;  %v318_v25 = vld [vmem:[%s3673_s20 + $0x28] sm:$0xff]  ;;  %v356_v26 = vmul.f32 %v3686_v17, %v317_v21  ;;  %v341_v31 = vld [vmem:[%s3673_s20 + $0xe0] sm:$0xff]  ;;  %v3502_v44 = vld [vmem:[%s4669_s3 + $0x110] sm:$0xff]  }
  0x20   : > { %v488_v37 = vld [vmem:[#allocation2] sm:$0xff]  ;;  %2936 = vmatprep.subr.bf16.mxu0 %v3481_v28  ;;  %3449 = vmatprep.subr.bf16.mxu1 %v3481_v28  ;;  %v450_v20 = vmax.f32 %v418_v10, 0.0  ;;  %458 = vst [vmem:[#allocation2 + $0x31] sm:$0xff] %v425_v12  ;;  %v357_v30 = vmul.f32 %v3686_v17, %v318_v25  ;;  %v380_v35 = vmul.f32 %v3686_v17, %v341_v31  ;;  %v320_v59 = vld [vmem:[%s3673_s20 + $0x38] sm:$0xff]  ;;  %v3498_v62 = vld [vmem:[%s4669_s3 + $0xa8] sm:$0xff]  }
  0x21   : > { %v520_v50 = vpack.c.bf16 %v3548_v2, %v488_v37  ;;  %v355_v2 = vmul.f32 %v3686_v17, %v316_v61  ;;  %482 = vst [vmem:[#allocation2 + $0x151] sm:$0xff] %v449_v19  ;;  %v395_v34 = vadd.f32 %v3691_v18, %v356_v26  ;;  %v3495_v39 = vld [vmem:[%s4669_s3 + $0xe0] sm:$0xff]   ;;  %v359_v61 = vmul.f32 %v3686_v17, %v320_v59  ;;  %v3499_v63 = vld [vmem:[%s4669_s3 + $0xf0] sm:$0xff]   ;;  %v3507_v3 = vld [vmem:[%s4669_s3 + $0x158] sm:$0xff]  }
  0x22   : > { %v512_v54 = vld [vmem:[#allocation2 + $0x120] sm:$0xff]  ;;  %v513_v55 = vld [vmem:[#allocation2 + $0x128] sm:$0xff]  ;;  %483 = vst [vmem:[#allocation2 + $0x159] sm:$0xff] %v450_v20  ;;  %v598_v29 = vpack.c.bf16 %v450_v20, %v449_v19  ;;  %v396_v37 = vadd.f32 %v3691_v18, %v357_v30  ;;  %v419_v41 = vadd.f32 %v3691_v18, %v380_v35  ;;  %v3503_v19 = vld [vmem:[%s4669_s3 + $0xf8] sm:$0xff]  }
  0x23   : > { %2937 = vmatpush3.bf16.msra.mxu0 %v3482_v32  ;;  %3457 = vmatpush3.bf16.msra.mxu1 %v3482_v32  ;;  %v532_v56 = vpack.c.bf16 %v513_v55, %v512_v54  ;;  %v394_v8 = vadd.f32 %v3691_v18, %v355_v2  ;;  %v490_v13 = vld [vmem:[#allocation2 + $0x18] sm:$0xff]  ;;  %v491_v14 = vld [vmem:[#allocation2 + $0x20] sm:$0xff]  ;;  %v342_v32 = vld [vmem:[%s3673_s20 + $0xe8] sm:$0xff] }
  0x24   : > { %3034 = vmatprep.subr.bf16.mxu1 %v3483_v40  ;;  %3146 = vmatprep.subr.bf16.mxu0 %v3484_v43  ;;  %v3774_v22 = vpack.c.bf16 %v491_v14, %v490_v13  ;;  %v514_v23 = vld [vmem:[#allocation2 + $0x138] sm:$0xff]  ;;  %v515_v24 = vld [vmem:[#allocation2 + $0x140] sm:$0xff]  ;;  %v381_v36 = vmul.f32 %v3686_v17, %v342_v32  ;;  %v427_v40 = vmax.f32 %v395_v34, 0.0  ;;  %v428_v43 = vmax.f32 %v396_v37, 0.0  ;;  %v3497_v55 = vld [vmem:[%s4669_s3 + $0xe8] sm:$0xff]  }
  0x25   : > { %v426_v16 = vmax.f32 %v394_v8, 0.0  ;;  %v3778_v27 = vpack.c.bf16 %v515_v24, %v514_v23  ;;  %v3496_v45 = vld [vmem:[%s4669_s3 + $0xa0] sm:$0xff]   ;;  %v3501_v13 = vld [vmem:[%s4669_s3 + $0xb0] sm:$0xff]   ;;  %v324_v23 = vld [vmem:[%s3673_s20 + $0x58] sm:$0xff] }
  0x26   : > { %1818 = vmatmul.mubr.bf16.vlgmr.msra.gmra.mrb[0].mxu0 %v520_v50  ;;  %1914 = vmatmul.mubr.bf16.vlgmr.msra.gmra.mrb[0].mxu1 %v532_v56  ;;  %v420_v42 = vadd.f32 %v3691_v18, %v381_v36  ;;  %460 = vst [vmem:[#allocation2 + $0x49] sm:$0xff] %v427_v40  ;;  %461 = vst [vmem:[#allocation2 + $0x51] sm:$0xff] %v428_v43  ;;  %v3809_v52 = vpack.c.bf16 %v428_v43, %v427_v40  ;;  %v323_v21 = vld [vmem:[%s3673_s20 + $0x50] sm:$0xff]  ;;  %v3504_v24 = vld [vmem:[%s4669_s3 + $0xb8] sm:$0xff]  }
  0x27   : > { %3035 = vmatpush3.bf16.msra.mxu1 %v3485_v46  ;;  %3147 = vmatpush3.bf16.msra.mxu0 %v3486_v47  ;;  %459 = vst [vmem:[#allocation2 + $0x39] sm:$0xff] %v426_v16  ;;  %v3780_v28 = vpack.c.bf16 %v426_v16, %v425_v12  ;;  %v451_v46 = vmax.f32 %v419_v41, 0.0  ;;  %v492_v48 = vld [vmem:[#allocation2 + $0x30] sm:$0xff]  ;;  %v616_v25 = vld [vmem:[#allocation2 + $0x2] sm:$0xff]  ;;  %v362_v30 = vmul.f32 %v3686_v17, %v323_v21 }
  0x28   : > { %3036 = vmatprep.subr.bf16.mxu1 %v3487_v51  ;;  %1825 = vmatprep.mubr.bf16.mxu0 %v3740_v57  ;;  %v452_v47 = vmax.f32 %v420_v42, 0.0  ;;  %v516_v50 = vld [vmem:[#allocation2 + $0x150] sm:$0xff]  ;;  %v363_v31 = vmul.f32 %v3686_v17, %v324_v23  ;;  %v3505_v34 = vld [vmem:[%s4669_s3 + $0x1c0] sm:$0xff]   ;;  %v326_v43 = vld [vmem:[%s3673_s20 + $0x68] sm:$0xff] }
  0x29   : > { %1921 = vmatprep.mubr.bf16.mxu1 %v597_v60  ;;  %3148 = vmatprep.subr.bf16.mxu0 %v3492_v58  ;;  %v517_v51 = vld [vmem:[#allocation2 + $0x158] sm:$0xff]  ;;  %484 = vst [vmem:[#allocation2 + $0x169] sm:$0xff] %v451_v46  ;;  %v319_v58 = vld [vmem:[%s3673_s20 + $0x30] sm:$0xff]  ;;  %v3874_v36 = vadd.f32 %v3691_v18, %v362_v30  ;;  %v325_v42 = vld [vmem:[%s3673_s20 + $0x60] sm:$0xff] }
  0x2a   : > { %485 = vst [vmem:[#allocation2 + $0x171] sm:$0xff] %v452_v47  ;;  %v3813_v54 = vpack.c.bf16 %v517_v51, %v516_v50  ;;  %v599_v56 = vpack.c.bf16 %v452_v47, %v451_v46  ;;  %v358_v60 = vmul.f32 %v3686_v17, %v319_v58  ;;  %v617_v26 = vld [vmem:[#allocation2 + $0xa] sm:$0xff]  ;;  %v402_v37 = vadd.f32 %v3691_v18, %v363_v31  ;;  %v618_v51 = vld [vmem:[#allocation2 + $0x1a] sm:$0xff] }
  0x2b   : > { %3037 = vmatpush3.bf16.msra.mxu1 %v3488_v1  ;;  %3149 = vmatpush3.bf16.msra.mxu0 %v3494_v5  ;;  %v398_v1 = vadd.f32 %v3691_v18, %v359_v61  ;;  %v433_v40 = vmax.f32 %v3874_v36, 0.0  ;;  %v648_v46 = vpack.c.bf16 %v617_v26, %v616_v25  ;;  %v365_v47 = vmul.f32 %v3686_v17, %v326_v43  ;;  %v3513_v59 = vld [vmem:[%s4669_s3 + $0x168] sm:$0xff]   ;;  %v328_v61 = vld [vmem:[%s3673_s20 + $0x78] sm:$0xff]  ;;  %v3516_v23 = vld [vmem:[%s4669_s3 + $0x190] sm:$0xff]  }
  0x2c   : > { %3038 = vmatprep.subr.bf16.mxu1 %v3489_v7  ;;  %3150 = vmatprep.subr.bf16.mxu0 %v3500_v38  ;;  %v397_v0 = vadd.f32 %v3691_v18, %v358_v60  ;;  %v3508_v7 = vld [vmem:[%s4669_s3 + $0x118] sm:$0xff]   ;;  %v434_v41 = vmax.f32 %v402_v37, 0.0  ;;  %v327_v60 = vld [vmem:[%s3673_s20 + $0x70] sm:$0xff] }
  0x2d   : > { %v494_v2 = vld [vmem:[#allocation2 + $0x48] sm:$0xff]  ;;  %v495_v4 = vld [vmem:[#allocation2 + $0x50] sm:$0xff]  ;;  %v430_v6 = vmax.f32 %v398_v1, 0.0  ;;  %466 = vst [vmem:[#allocation2 + $0x91] sm:$0xff] %v433_v40  ;;  %v3900_v58 = vadd.f32 %v3691_v18, %v365_v47  ;;  %v3519_v43 = vld [vmem:[%s4669_s3 + $0x1d8] sm:$0xff]  }
  0x2e   : > { %1826 = vmatmul.mubr.bf16.gmra.mrb[4].mxu0 %v3774_v22  ;;  %1922 = vmatmul.mubr.bf16.gmra.mrb[4].mxu1 %v3778_v27  ;;  %v493_v49 = vld [vmem:[#allocation2 + $0x38] sm:$0xff]  ;;  %v429_v5 = vmax.f32 %v397_v0, 0.0  ;;  %v3839_v8 = vpack.c.bf16 %v495_v4, %v494_v2  ;;  %467 = vst [vmem:[#allocation2 + $0x99] sm:$0xff] %v434_v41  ;;  %v3514_v1 = vld [vmem:[%s4669_s3 + $0x128] sm:$0xff]   ;;  %v366_v2 = vmul.f32 %v3686_v17, %v327_v60  ;;  %v3517_v26 = vld [vmem:[%s4669_s3 + $0x170] sm:$0xff]  }
  0x2f   : > { %3039 = vmatpush3.bf16.msra.mxu1 %v3490_v11  ;;  %1833 = vmatprep.mubr.bf16.mxu0 %v3780_v28  ;;  %v3811_v53 = vpack.c.bf16 %v493_v49, %v492_v48  ;;  %v321_v11 = vld [vmem:[%s3673_s20 + $0x40] sm:$0xff]  ;;  %463 = vst [vmem:[#allocation2 + $0x69] sm:$0xff] %v430_v6  ;;  %v436_v0 = vmax.f32 %v3900_v58, 0.0  ;;  %v3512_v4 = vld [vmem:[%s4669_s3 + $0x188] sm:$0xff]   ;;  %v3942_v21 = vpack.c.bf16 %v434_v41, %v433_v40  ;;  %v3518_v30 = vld [vmem:[%s4669_s3 + $0x130] sm:$0xff]  }
  0x30   : > { %3040 = vmatprep.subr.bf16.mxu1 %v3491_v15  ;;  %1929 = vmatprep.mubr.bf16.mxu1 %v598_v29  ;;  %v518_v9 = vld [vmem:[#allocation2 + $0x168] sm:$0xff]  ;;  %462 = vst [vmem:[#allocation2 + $0x61] sm:$0xff] %v429_v5  ;;  %v3847_v14 = vpack.c.bf16 %v430_v6, %v429_v5  ;;  %v360_v16 = vmul.f32 %v3686_v17, %v321_v11  ;;  %v3506_v49 = vld [vmem:[%s4669_s3 + $0x180] sm:$0xff]   ;;  %v331_v31 = vld [vmem:[%s3673_s20 + $0x90] sm:$0xff] }
  0x31   : > { %3151 = vmatpush3.bf16.msra.mxu0 %v3502_v44  ;;  %v519_v10 = vld [vmem:[#allocation2 + $0x170] sm:$0xff]  ;;  %v322_v15 = vld [vmem:[%s3673_s20 + $0x48] sm:$0xff]  ;;  %469 = vst [vmem:[#allocation2 + $0xb1] sm:$0xff] %v436_v0  ;;  %v3925_v6 = vadd.f32 %v3691_v18, %v366_v2  ;;  %v329_v11 = vld [vmem:[%s3673_s20 + $0x80] sm:$0xff]  ;;  %v370_v36 = vmul.f32 %v3686_v17, %v331_v31 }
  0x32   : > { %3152 = vmatprep.subr.bf16.mxu0 %v3507_v3  ;;  %v3842_v12 = vpack.c.bf16 %v519_v10, %v518_v9  ;;  %v361_v20 = vmul.f32 %v3686_v17, %v322_v15  ;;  %v399_v29 = vadd.f32 %v3691_v18, %v360_v16  ;;  %v367_v3 = vmul.f32 %v3686_v17, %v328_v61  ;;  %v3515_v9 = vld [vmem:[%s4669_s3 + $0x1d0] sm:$0xff]   ;;  %v3521_v47 = vld [vmem:[%s4669_s3 + $0x178] sm:$0xff]  }
  0x33   : > { %3041 = vmatpush3.bf16.msra.mxu1 %v3493_v33  ;;  %v3509_v33 = vld [vmem:[%s4669_s3 + $0x160] sm:$0xff]   ;;  %v437_v16 = vmax.f32 %v3925_v6, 0.0  ;;  %v3977_v41 = vadd.f32 %v3691_v18, %v370_v36  ;;  %v622_v61 = vld [vmem:[#allocation2 + $0x4a] sm:$0xff] }
  0x34   : > { %3042 = vmatprep.subr.bf16.mxu1 %v3495_v39  ;;  %v400_v32 = vadd.f32 %v3691_v18, %v361_v20  ;;  %v431_v35 = vmax.f32 %v399_v29, 0.0  ;;  %v3511_v39 = vld [vmem:[%s4669_s3 + $0x120] sm:$0xff]   ;;  %v368_v20 = vmul.f32 %v3686_v17, %v329_v11 }
  0x35   : > { %3153 = vmatpush3.bf16.msra.mxu0 %v3508_v7  ;;  %v3928_v7 = vadd.f32 %v3691_v18, %v367_v3  ;;  %470 = vst [vmem:[#allocation2 + $0xc1] sm:$0xff] %v437_v16  ;;  %v4032_v3 = vld [vmem:[%s4669_s3 + $0x200] sm:$0xff]  }
  0x36   : > { %1834 = vmatmul.mubr.bf16.gmra.mrb[8].mxu0 %v3811_v53  ;;  %1930 = vmatmul.mubr.bf16.gmra.mrb[8].mxu1 %v3813_v54  ;;  %v432_v38 = vmax.f32 %v400_v32, 0.0  ;;  %464 = vst [vmem:[#allocation2 + $0x79] sm:$0xff] %v431_v35  ;;  %v3953_v25 = vadd.f32 %v3691_v18, %v368_v20  ;;  %v332_v32 = vld [vmem:[%s3673_s20 + $0x98] sm:$0xff]  ;;  %v3526_v20 = vld [vmem:[%s4669_s3 + $0x1e8] sm:$0xff]  }
  0x37   : > { %3043 = vmatpush3.bf16.msra.mxu1 %v3496_v45  ;;  %1841 = vmatprep.mubr.bf16.mxu0 %v3809_v52  ;;  %v496_v44 = vld [vmem:[#allocation2 + $0x60] sm:$0xff]  ;;  %v497_v45 = vld [vmem:[#allocation2 + $0x68] sm:$0xff]  ;;  %v371_v37 = vmul.f32 %v3686_v17, %v332_v32  ;;  %v3531_v32 = vld [vmem:[%s4669_s3 + $0x1b0] sm:$0xff]  }
  0x38   : > { %3044 = vmatprep.subr.bf16.mxu1 %v3497_v55  ;;  %1937 = vmatprep.mubr.bf16.mxu1 %v599_v56  ;;  %465 = vst [vmem:[#allocation2 + $0x81] sm:$0xff] %v432_v38  ;;  %v3886_v48 = vpack.c.bf16 %v497_v45, %v496_v44  ;;  %v3891_v50 = vpack.c.bf16 %v432_v38, %v431_v35  ;;  %v3510_v55 = vld [vmem:[%s4669_s3 + $0x1c8] sm:$0xff]   ;;  %v439_v35 = vmax.f32 %v3953_v25, 0.0  ;;  %v500_v38 = vld [vmem:[#allocation2 + $0x90] sm:$0xff]  ;;  %v3532_v25 = vld [vmem:[%s4669_s3 + $0x1f8] sm:$0xff]  }
  0x39   : > { %3154 = vmatprep.subr.bf16.mxu0 %v3509_v33  ;;  %v620_v33 = vld [vmem:[#allocation2 + $0x32] sm:$0xff]  ;;  %v624_v6 = vld [vmem:[#allocation2 + $0x62] sm:$0xff] }
  0x3a   : > { %3155 = vmatpush3.bf16.msra.mxu0 %v3511_v39  ;;  %v501_v39 = vld [vmem:[#allocation2 + $0x98] sm:$0xff]  ;;  %472 = vst [vmem:[#allocation2 + $0xd9] sm:$0xff] %v439_v35 }
  0x3b   : > { %3045 = vmatpush3.bf16.msra.mxu1 %v3498_v62  ;;  %v619_v62 = vld [vmem:[#allocation2 + $0x22] sm:$0xff]  ;;  %3156 = vmatprep.subr.bf16.mxu0 %v3513_v59  ;;  %v3990_v44 = vpack.c.bf16 %v501_v39, %v500_v38  ;;  %v344_v38 = vld [vmem:[%s3673_s20 + $0xf8] sm:$0xff] }
  0x3c   : > { %3046 = vmatprep.subr.bf16.mxu1 %v3499_v63  ;;  %v334_v59 = vld [vmem:[%s3673_s20 + $0xa8] sm:$0xff] }
  0x3d   : > { %v498_v5 = vld [vmem:[#allocation2 + $0x78] sm:$0xff]  ;;  %v373_v58 = vmul.f32 %v3686_v17, %v334_v59 }
  0x3e   : > { %1842 = vmatmul.mubr.bf16.gmra.mrb[12].mxu0 %v3839_v8  ;;  %1938 = vmatmul.mubr.bf16.gmra.mrb[12].mxu1 %v3842_v12 }
  0x3f   : > { %3047 = vmatpush3.bf16.msra.mxu1 %v3501_v13  ;;  %1849 = vmatprep.mubr.bf16.mxu0 %v3847_v14  ;;  %v499_v10 = vld [vmem:[#allocation2 + $0x80] sm:$0xff]  ;;  %v330_v13 = vld [vmem:[%s3673_s20 + $0x88] sm:$0xff]  ;;  %v4027_v2 = vadd.f32 %v3691_v18, %v373_v58 }
  0x40   : > { %3048 = vmatprep.subr.bf16.mxu1 %v3503_v19  ;;  %1978 = vmatprep.mubr.bf16.mxu1 %v3774_v22  ;;  %v364_v22 = vmul.f32 %v3686_v17, %v325_v42  ;;  %v3937_v15 = vpack.c.bf16 %v499_v10, %v498_v5  ;;  %v438_v19 = vmax.f32 %v3928_v7, 0.0  ;;  %v3980_v42 = vadd.f32 %v3691_v18, %v371_v37  ;;  %v3528_v7 = vld [vmem:[%s4669_s3 + $0x1a8] sm:$0xff]   ;;  %v343_v37 = vld [vmem:[%s3673_s20 + $0xf0] sm:$0xff] }
  0x41   : > { %3157 = vmatpush3.bf16.msra.mxu0 %v3514_v1  ;;  %v444_v5 = vmax.f32 %v4027_v2, 0.0  ;;  %v627_v36 = vld [vmem:[#allocation2 + $0x82] sm:$0xff]  ;;  %v382_v39 = vmul.f32 %v3686_v17, %v343_v37 }
  0x42   : > { %v3897_v56 = vadd.f32 %v3691_v18, %v364_v22  ;;  %471 = vst [vmem:[#allocation2 + $0xc9] sm:$0xff] %v438_v19  ;;  %3158 = vmatprep.subr.bf16.mxu0 %v3517_v26  ;;  %v442_v22 = vmax.f32 %v3980_v42, 0.0  ;;  %v629_v42 = vld [vmem:[#allocation2 + $0x9a] sm:$0xff] }
  0x43   : > { %3049 = vmatpush3.bf16.msra.mxu1 %v3504_v24  ;;  %v369_v24 = vmul.f32 %v3686_v17, %v330_v13  ;;  %v4048_v13 = vpack.c.bf16 %v438_v19, %v437_v16  ;;  %477 = vst [vmem:[#allocation2 + $0x111] sm:$0xff] %v444_v5  ;;  %v504_v16 = vld [vmem:[#allocation2 + $0xc0] sm:$0xff] }
  0x44   : > { %3258 = vmatprep.subr.bf16.mxu1 %v3505_v34  ;;  %v435_v63 = vmax.f32 %v3897_v56, 0.0  ;;  %v621_v34 = vld [vmem:[#allocation2 + $0x3a] sm:$0xff]  ;;  %475 = vst [vmem:[#allocation2 + $0xf9] sm:$0xff] %v442_v22 }
  0x45   : > { %v3959_v29 = vadd.f32 %v3691_v18, %v369_v24  ;;  %3159 = vmatpush3.bf16.msra.mxu0 %v3518_v30  ;;  %v3992_v45 = vpack.c.bf16 %v621_v34, %v620_v33  ;;  %v3529_v24 = vld [vmem:[%s4669_s3 + $0x1f0] sm:$0xff]   ;;  %v506_v33 = vld [vmem:[#allocation2 + $0xd8] sm:$0xff] }
  0x46   : > { %1850 = vmatmul.mubr.bf16.gmra.mrb[16].mxu0 %v3886_v48  ;;  %1979 = vmatmul.mubr.bf16.vlgmr.msra.gmra.mrb[16].mxu1 %v648_v46  ;;  %468 = vst [vmem:[#allocation2 + $0xa9] sm:$0xff] %v435_v63  ;;  %v441_v46 = vmax.f32 %v3977_v41, 0.0  ;;  %v626_v34 = vld [vmem:[#allocation2 + $0x7a] sm:$0xff] }
  0x47   : > { %3259 = vmatpush3.bf16.msra.mxu1 %v3506_v49  ;;  %1857 = vmatprep.mubr.bf16.mxu0 %v3891_v50  ;;  %v440_v40 = vmax.f32 %v3959_v29, 0.0  ;;  %v3522_v49 = vld [vmem:[%s4669_s3 + $0x138] sm:$0xff]  }
  0x48   : > { %1986 = vmatprep.mubr.bf16.mxu1 %v3811_v53  ;;  %3260 = vmatprep.subr.bf16.mxu1 %v3510_v55  ;;  %v3933_v53 = vpack.c.bf16 %v619_v62, %v618_v51  ;;  %v4006_v51 = vpack.c.bf16 %v436_v0, %v435_v63  ;;  %474 = vst [vmem:[#allocation2 + $0xf1] sm:$0xff] %v441_v46  ;;  %v333_v55 = vld [vmem:[%s3673_s20 + $0xa0] sm:$0xff]  ;;  %v623_v62 = vld [vmem:[#allocation2 + $0x52] sm:$0xff]  ;;  %s268_s20 = scalar_lea.vmem %s4672_s6, %s4674_s22 }
  0x49   : > { %473 = vst [vmem:[#allocation2 + $0xe1] sm:$0xff] %v440_v40  ;;  %3160 = vmatprep.subr.bf16.mxu0 %v3521_v47  ;;  %v372_v56 = vmul.f32 %v3686_v17, %v333_v55  ;;  %v3523_v63 = vld [vmem:[%s4669_s3 + $0x1e0] sm:$0xff]   ;;  %v4041_v11 = vpack.c.bf16 %v623_v62, %v622_v61  ;;  %v505_v19 = vld [vmem:[#allocation2 + $0xc8] sm:$0xff]  ;;  %v4075_v31 = vpack.c.bf16 %v440_v40, %v439_v35  ;;  %v3534_v35 = vld [vmem:[%s4669_s3 + $0x1b8] sm:$0xff]  }
  0x4a   : > { %3161 = vmatpush3.bf16.msra.mxu0 %v3522_v49  ;;  %v4067_v26 = vpack.c.bf16 %v505_v19, %v504_v16  ;;  %v4102_v47 = vpack.c.bf16 %v442_v22, %v441_v46  ;;  %v421_v49 = vadd.f32 %v3691_v18, %v382_v39  ;;  %v632_v2 = vld [vmem:[#allocation2 + $0xc2] sm:$0xff] }
  0x4b   : > { %3261 = vmatpush3.bf16.msra.mxu1 %v3512_v4  ;;  %v4024_v1 = vadd.f32 %v3691_v18, %v372_v56  ;;  %3394 = vmatprep.subr.bf16.mxu0 %v4032_v3  ;;  %v702_v19 = vld [vmem:[#allocation2 + $0x120] sm:$0xff] }
  0x4c   : > { %3262 = vmatprep.subr.bf16.mxu1 %v3515_v9  ;;  %v3525_v9 = vld [vmem:[%s4669_s3 + $0x1a0] sm:$0xff]   ;;  %v453_v59 = vmax.f32 %v421_v49, 0.0 }
  0x4d   : > { %v502_v60 = vld [vmem:[#allocation2 + $0xa8] sm:$0xff]  ;;  %v503_v0 = vld [vmem:[#allocation2 + $0xb0] sm:$0xff]  ;;  %v443_v4 = vmax.f32 %v4024_v1, 0.0  ;;  %v645_v49 = vld [vmem:[#allocation2 + $0x15a] sm:$0xff] }
  0x4e   : > { %1858 = vmatmul.mubr.bf16.gmra.mrb[20].mxu0 %v3937_v15  ;;  %1987 = vmatmul.mubr.bf16.gmra.mrb[20].mxu1 %v3933_v53  ;;  %v4039_v10 = vpack.c.bf16 %v503_v0, %v502_v60  ;;  %v628_v60 = vld [vmem:[#allocation2 + $0x92] sm:$0xff]  ;;  %486 = vst [vmem:[#allocation2 + $0x181] sm:$0xff] %v453_v59  ;;  %v630_v62 = vld [vmem:[#allocation2 + $0xaa] sm:$0xff]  ;;  %v643_v39 = vld [vmem:[#allocation2 + $0x142] sm:$0xff] }
  0x4f   : > { %1865 = vmatprep.mubr.bf16.mxu0 %v3942_v21  ;;  %1994 = vmatprep.mubr.bf16.mxu1 %v3839_v8  ;;  %v3520_v8 = vld [vmem:[%s4669_s3 + $0x198] sm:$0xff]   ;;  %476 = vst [vmem:[#allocation2 + $0x109] sm:$0xff] %v443_v4  ;;  %v4112_v22 = vpack.c.bf16 %v629_v42, %v628_v60 }
  0x50   : > { %3263 = vmatpush3.bf16.msra.mxu1 %v3516_v23  ;;  %v625_v23 = vld [vmem:[#allocation2 + $0x6a] sm:$0xff]  ;;  %v507_v29 = vld [vmem:[#allocation2 + $0xe0] sm:$0xff]  ;;  %v509_v41 = vld [vmem:[#allocation2 + $0xf8] sm:$0xff] }
  0x51   : > { %3264 = vmatprep.subr.bf16.mxu1 %v3519_v43  ;;  %v4069_v30 = vpack.c.bf16 %v625_v23, %v624_v6  ;;  %v4093_v40 = vpack.c.bf16 %v507_v29, %v506_v33  ;;  %v4095_v43 = vpack.c.bf16 %v627_v36, %v626_v34  ;;  %v634_v6 = vld [vmem:[#allocation2 + $0xda] sm:$0xff]  ;;  %v703_v23 = vld [vmem:[#allocation2 + $0x128] sm:$0xff]  ;;  %v639_v34 = vld [vmem:[#allocation2 + $0x112] sm:$0xff] }
  0x52   : > { %v4161_v33 = vpack.c.bf16 %v703_v23, %v702_v19  ;;  %v3537_v36 = vld [vmem:[%s4669_s3 + $0x230] sm:$0xff]   ;;  %v640_v29 = vld [vmem:[#allocation2 + $0x122] sm:$0xff] }
  0x53   : > { %v769_v19 = vld [vmem:[#allocation2 + $0x141] sm:$0xff] }
  0x54   : > { %3265 = vmatpush3.bf16.msra.mxu1 %v3520_v8  ;;  %v383_v8 = vmul.f32 %v3686_v17, %v344_v38  ;;  %v508_v17 = vld [vmem:[#allocation2 + $0xf0] sm:$0xff]  ;;  %v642_v38 = vld [vmem:[#allocation2 + $0x13a] sm:$0xff] }
  0x55   : > { %3266 = vmatprep.subr.bf16.mxu1 %v3523_v63  ;;  %v4110_v46 = vpack.c.bf16 %v509_v41, %v508_v17  ;;  %v631_v63 = vld [vmem:[#allocation2 + $0xb2] sm:$0xff] }
  0x56   : > { %1866 = vmatmul.mubr.bf16.gmra.mrb[24].mxu0 %v3990_v44  ;;  %1995 = vmatmul.mubr.bf16.gmra.mrb[24].mxu1 %v3992_v45  ;;  %v422_v55 = vadd.f32 %v3691_v18, %v383_v8  ;;  %v4118_v18 = vpack.c.bf16 %v444_v5, %v443_v4  ;;  %v510_v56 = vld [vmem:[#allocation2 + $0x108] sm:$0xff]  ;;  %v511_v58 = vld [vmem:[#allocation2 + $0x110] sm:$0xff]  ;;  %v938_v41 = vld [vmem:[#allocation2 + $0x39] sm:$0xff] }
  0x57   : > { %1873 = vmatprep.mubr.bf16.mxu0 %v4006_v51  ;;  %2002 = vmatprep.mubr.bf16.mxu1 %v3886_v48  ;;  %v4124_v0 = vpack.c.bf16 %v511_v58, %v510_v56  ;;  %v633_v4 = vld [vmem:[#allocation2 + $0xca] sm:$0xff]  ;;  %v644_v8 = vld [vmem:[#allocation2 + $0x152] sm:$0xff] }
  0x58   : > { %3267 = vmatpush3.bf16.msra.mxu1 %v3525_v9  ;;  %v454_v61 = vmax.f32 %v422_v55, 0.0  ;;  %v4126_v9 = vpack.c.bf16 %v631_v63, %v630_v62  ;;  %v4134_v5 = vpack.c.bf16 %v633_v4, %v632_v2  ;;  %v710_v55 = vld [vmem:[#allocation2 + $0x180] sm:$0xff]  ;;  %v4194_v60 = vpack.c.bf16 %v645_v49, %v644_v8  ;;  %v937_v17 = vld [vmem:[#allocation2 + $0x31] sm:$0xff]  ;;  %v939_v63 = vld [vmem:[#allocation2 + $0x49] sm:$0xff] }
  0x59   : > { %3268 = vmatprep.subr.bf16.mxu1 %v3526_v20  ;;  %v3527_v20 = vld [vmem:[%s4669_s3 + $0x208] sm:$0xff]   ;;  %v969_v62 = vpack.c.bf16 %v938_v41, %v937_v17  ;;  %v873_v56 = vld [vmem:[#allocation2 + $0x30] sm:$0xff]  ;;  %v874_v58 = vld [vmem:[#allocation2 + $0x38] sm:$0xff] }
  0x5a   : > { %487 = vst [vmem:[#allocation2 + $0x189] sm:$0xff] %v454_v61  ;;  %v4128_v1 = vpack.c.bf16 %v454_v61, %v453_v59  ;;  %v646_v61 = vld [vmem:[#allocation2 + $0x16a] sm:$0xff]  ;;  %v905_v4 = vpack.c.bf16 %v874_v58, %v873_v56 }
  0x5b   : > { %v940_v2 = vld [vmem:[#allocation2 + $0x51] sm:$0xff] }
  0x5c   : > { %3269 = vmatpush3.bf16.msra.mxu1 %v3528_v7  ;;  %v635_v7 = vld [vmem:[#allocation2 + $0xe2] sm:$0xff] }
  0x5d   : > { %3270 = vmatprep.subr.bf16.mxu1 %v3529_v24  ;;  %v4147_v16 = vpack.c.bf16 %v635_v7, %v634_v6  ;;  %v3535_v24 = vld [vmem:[%s4669_s3 + $0x220] sm:$0xff]   ;;  %v875_v6 = vld [vmem:[#allocation2 + $0x48] sm:$0xff]  ;;  %v876_v7 = vld [vmem:[#allocation2 + $0x50] sm:$0xff] }
  0x5e   : > { %1874 = vmatmul.mubr.bf16.gmra.mrb[28].mxu0 %v4039_v10  ;;  %2003 = vmatmul.mubr.bf16.gmra.mrb[28].mxu1 %v4041_v11 }
  0x5f   : > { %1881 = vmatprep.mubr.bf16.mxu0 %v4048_v13  ;;  %2010 = vmatprep.mubr.bf16.mxu1 %v3937_v15 }
  0x60   : > { %3271 = vmatpush3.bf16.msra.mxu1 %v3531_v32 }
  0x61   : > { %3272 = vmatprep.subr.bf16.mxu1 %v3532_v25  ;;  %v711_v59 = vld [vmem:[#allocation2 + $0x188] sm:$0xff] }
  0x64   : > { %3273 = vmatpush3.bf16.msra.mxu1 %v3534_v35  ;;  %v641_v35 = vld [vmem:[#allocation2 + $0x12a] sm:$0xff] }
  0x65   : > { %v4182_v37 = vpack.c.bf16 %v641_v35, %v640_v29 }
  0x66   : > { %1882 = vmatmul.mubr.bf16.gmra.mrb[32].mxu0 %v4067_v26  ;;  %2011 = vmatmul.mubr.bf16.gmra.mrb[32].mxu1 %v4069_v30 }
  0x67   : > { %1889 = vmatprep.mubr.bf16.mxu0 %v4075_v31  ;;  %2018 = vmatprep.mubr.bf16.mxu1 %v3990_v44 }
  0x6e   : > { %1890 = vmatmul.mubr.bf16.gmra.mrb[36].mxu0 %v4093_v40  ;;  %2019 = vmatmul.mubr.bf16.gmra.mrb[36].mxu1 %v4095_v43 }
  0x6f   : > { %1897 = vmatprep.mubr.bf16.mxu0 %v4102_v47  ;;  %2026 = vmatprep.mubr.bf16.mxu1 %v4039_v10 }
  0x76   : > { %1898 = vmatmul.mubr.bf16.gmra.mrb[40].mxu0 %v4110_v46  ;;  %2027 = vmatmul.mubr.bf16.gmra.mrb[40].mxu1 %v4112_v22 }
  0x77   : > { %1905 = vmatprep.mubr.bf16.mxu0 %v4118_v18  ;;  %2034 = vmatprep.mubr.bf16.mxu1 %v4067_v26 }
  0x7e   : > { %1906 = vmatmul.mubr.bf16.gmra.mrb[44].mxu0 %v4124_v0  ;;  %2035 = vmatmul.mubr.bf16.gmra.mrb[44].mxu1 %v4126_v9 }
  0x7f   : > { %2042 = vmatprep.mubr.bf16.mxu1 %v4093_v40  ;;  %2139 = vmatprep.mubr.bf16.mxu0 %v3933_v53  ;;  %v3530_v53 = vld [vmem:[%s4669_s3 + $0x210] sm:$0xff]  }
  0x86   : > { %2043 = vmatmul.mubr.bf16.gmra.mrb[48].mxu1 %v4134_v5  ;;  %2140 = vmatmul.mubr.bf16.vlgmr.msra.gmra.mrb[48].mxu0 %v3740_v57  ;;  %v3533_v57 = vld [vmem:[%s4669_s3 + $0x218] sm:$0xff]  }
  0x87   : > { %3395 = vmatpush3.bf16.msra.mxu0 %v4032_v3  ;;  %2050 = vmatprep.mubr.bf16.mxu1 %v4110_v46  ;;  %v637_v3 = vld [vmem:[#allocation2 + $0xfa] sm:$0xff] }
  0x88   : > { %2147 = vmatprep.mubr.bf16.mxu0 %v3992_v45  ;;  %3396 = vmatprep.subr.bf16.mxu0 %v3527_v20  ;;  %v636_v45 = vld [vmem:[#allocation2 + $0xf2] sm:$0xff] }
  0x89   : > { %v4159_v32 = vpack.c.bf16 %v637_v3, %v636_v45  ;;  %v767_v45 = vld [vmem:[#allocation2 + $0x129] sm:$0xff] }
  0x8b   : > { %3397 = vmatpush3.bf16.msra.mxu0 %v3527_v20  ;;  %v970_v20 = vpack.c.bf16 %v940_v2, %v939_v63 }
  0x8c   : > { %3398 = vmatprep.subr.bf16.mxu0 %v3530_v53 }
  0x8e   : > { %2051 = vmatmul.mubr.bf16.gmra.mrb[52].mxu1 %v4147_v16  ;;  %2148 = vmatmul.mubr.bf16.gmra.mrb[52].mxu0 %v3780_v28  ;;  %v3536_v28 = vld [vmem:[%s4669_s3 + $0x228] sm:$0xff]  }
  0x8f   : > { %2058 = vmatprep.mubr.bf16.mxu1 %v4124_v0  ;;  %2155 = vmatprep.mubr.bf16.mxu0 %v4041_v11  ;;  %v638_v11 = vld [vmem:[#allocation2 + $0x10a] sm:$0xff] }
  0x90   : > { %3399 = vmatpush3.bf16.msra.mxu0 %v3530_v53  ;;  %v4173_v25 = vpack.c.bf16 %v639_v34, %v638_v11  ;;  %v906_v53 = vpack.c.bf16 %v876_v7, %v875_v6 }
  0x91   : > { %3400 = vmatprep.subr.bf16.mxu0 %v3533_v57 }
  0x94   : > { %3401 = vmatpush3.bf16.msra.mxu0 %v3533_v57  ;;  %v766_v57 = vld [vmem:[#allocation2 + $0x121] sm:$0xff] }
  0x95   : > { %3402 = vmatprep.subr.bf16.mxu0 %v3535_v24  ;;  %v4216_v3 = vpack.c.bf16 %v767_v45, %v766_v57 }
  0x96   : > { %2059 = vmatmul.mubr.bf16.gmra.mrb[56].mxu1 %v4159_v32  ;;  %2156 = vmatmul.mubr.bf16.gmra.mrb[56].mxu0 %v3809_v52  ;;  %v3538_v52 = vld [vmem:[%s4669_s3 + $0x238] sm:$0xff]  }
  0x97   : > { %2066 = vmatprep.mubr.bf16.mxu1 %v4161_v33  ;;  %2163 = vmatprep.mubr.bf16.mxu0 %v4069_v30 }
  0x98   : > { %3403 = vmatpush3.bf16.msra.mxu0 %v3535_v24 }
  0x99   : > { %3404 = vmatprep.subr.bf16.mxu0 %v3536_v28 }
  0x9c   : > { %3405 = vmatpush3.bf16.msra.mxu0 %v3536_v28  ;;  %v838_v28 = vld [vmem:[#allocation2 + $0x182] sm:$0xff] }
  0x9d   : > { %3406 = vmatprep.subr.bf16.mxu0 %v3537_v36 }
  0x9e   : > { %2067 = vmatmul.mubr.bf16.gmra.mrb[60].mxu1 %v4173_v25  ;;  %2164 = vmatmul.mubr.bf16.gmra.mrb[60].mxu0 %v3847_v14 }
  0x9f   : > { %2074 = vmatprep.mubr.bf16.mxu1 %v3778_v27  ;;  %2171 = vmatprep.mubr.bf16.mxu0 %v4095_v43  ;;  %v4188_v27 = vpack.c.bf16 %v643_v39, %v642_v38 }
  0xa0   : > { %3407 = vmatpush3.bf16.msra.mxu0 %v3537_v36 }
  0xa1   : > { %3408 = vmatprep.subr.bf16.mxu0 %v3538_v52 }
  0xa4   : > { %3409 = vmatpush3.bf16.msra.mxu0 %v3538_v52 }
  0xa6   : > { %2075 = vmatmul.mubr.bf16.gmra.mrb[64].mxu1 %v4182_v37  ;;  %2172 = vmatmul.mubr.bf16.gmra.mrb[64].mxu0 %v3891_v50 }
  0xa7   : > { %2082 = vmatprep.mubr.bf16.mxu1 %v3813_v54  ;;  %2179 = vmatprep.mubr.bf16.mxu0 %v4112_v22  ;;  %v4196_v54 = vpack.c.bf16 %v711_v59, %v710_v55 }
  0xae   : > { %2083 = vmatmul.mubr.bf16.gmra.mrb[68].mxu1 %v4188_v27  ;;  %2180 = vmatmul.mubr.bf16.gmra.mrb[68].mxu0 %v3942_v21 }
  0xaf   : > { %2090 = vmatprep.mubr.bf16.mxu1 %v3842_v12  ;;  %2187 = vmatprep.mubr.bf16.mxu0 %v4126_v9  ;;  %v647_v12 = vld [vmem:[#allocation2 + $0x172] sm:$0xff] }
  0xb0   : > { %v4202_v42 = vpack.c.bf16 %v647_v12, %v646_v61  ;;  %v1004_v12 = vld [vmem:[#allocation2 + $0x52] sm:$0xff] }
  0xb6   : > { %2091 = vmatmul.mubr.bf16.gmra.mrb[72].mxu1 %v4194_v60  ;;  %2188 = vmatmul.mubr.bf16.gmra.mrb[72].mxu0 %v4006_v51 }
  0xb7   : > { %2098 = vmatprep.mubr.bf16.mxu1 %v4196_v54  ;;  %2195 = vmatprep.mubr.bf16.mxu0 %v4134_v5 }
  0xbe   : > { %2099 = vmatmul.mubr.bf16.gmra.mrb[76].mxu1 %v4202_v42  ;;  %2196 = vmatmul.mubr.bf16.gmra.mrb[76].mxu0 %v4048_v13 }
  0xbf   : > { %2203 = vmatprep.mubr.bf16.mxu0 %v4147_v16  ;;  %2300 = vmatprep.mubr.bf16.mxu1 %v969_v62 }
  0xc6   : > { %2204 = vmatmul.mubr.bf16.gmra.mrb[80].mxu0 %v4075_v31  ;;  %2301 = vmatmul.mubr.bf16.vlgmr.msra.gmra.mrb[80].mxu1 %v905_v4 }
  0xc7   : > { %2211 = vmatprep.mubr.bf16.mxu0 %v4159_v32  ;;  %2308 = vmatprep.mubr.bf16.mxu1 %v970_v20 }
  0xce   : > { %2212 = vmatmul.mubr.bf16.gmra.mrb[84].mxu0 %v4102_v47  ;;  %2309 = vmatmul.mubr.bf16.gmra.mrb[84].mxu1 %v906_v53 }
  0xcf   : > { %2219 = vmatprep.mubr.bf16.mxu0 %v4173_v25  ;;  %2316 = vmatprep.mubr.bf16.mxu1 %v3847_v14  ;;  %v768_v14 = vld [vmem:[#allocation2 + $0x139] sm:$0xff] }
  0xd0   : > { %v4222_v23 = vpack.c.bf16 %v769_v19, %v768_v14 }
  0xd6   : > { %2220 = vmatmul.mubr.bf16.gmra.mrb[88].mxu0 %v4118_v18  ;;  %2317 = vmatmul.mubr.bf16.gmra.mrb[88].mxu1 %v3886_v48  ;;  %v770_v48 = vld [vmem:[#allocation2 + $0x151] sm:$0xff] }
  0xd7   : > { %2227 = vmatprep.mubr.bf16.mxu0 %v4182_v37  ;;  %2324 = vmatprep.mubr.bf16.mxu1 %v3891_v50  ;;  %v771_v50 = vld [vmem:[#allocation2 + $0x159] sm:$0xff] }
  0xd8   : > { %v4228_v24 = vpack.c.bf16 %v771_v50, %v770_v48 }
  0xde   : > { %2228 = vmatmul.mubr.bf16.gmra.mrb[92].mxu0 %v4216_v3  ;;  %2325 = vmatmul.mubr.bf16.gmra.mrb[92].mxu1 %v3937_v15  ;;  %v772_v15 = vld [vmem:[#allocation2 + $0x169] sm:$0xff] }
  0xdf   : > { %2235 = vmatprep.mubr.bf16.mxu0 %v4188_v27  ;;  %2332 = vmatprep.mubr.bf16.mxu1 %v3942_v21  ;;  %v773_v21 = vld [vmem:[#allocation2 + $0x171] sm:$0xff] }
  0xe0   : > { %v4234_v11 = vpack.c.bf16 %v773_v21, %v772_v15 }
  0xe6   : > { %2236 = vmatmul.mubr.bf16.gmra.mrb[96].mxu0 %v4222_v23  ;;  %2333 = vmatmul.mubr.bf16.gmra.mrb[96].mxu1 %v3990_v44  ;;  %v839_v44 = vld [vmem:[#allocation2 + $0x18a] sm:$0xff] }
  0xe7   : > { %2243 = vmatprep.mubr.bf16.mxu0 %v4194_v60  ;;  %2340 = vmatprep.mubr.bf16.mxu1 %v4006_v51  ;;  %v4236_v34 = vpack.c.bf16 %v839_v44, %v838_v28  ;;  %v1001_v51 = vld [vmem:[#allocation2 + $0x32] sm:$0xff] }
  0xee   : > { %2244 = vmatmul.mubr.bf16.gmra.mrb[100].mxu0 %v4228_v24  ;;  %2341 = vmatmul.mubr.bf16.gmra.mrb[100].mxu1 %v4039_v10  ;;  %v1002_v10 = vld [vmem:[#allocation2 + $0x3a] sm:$0xff] }
  0xef   : > { %2251 = vmatprep.mubr.bf16.mxu0 %v4202_v42  ;;  %2348 = vmatprep.mubr.bf16.mxu1 %v4048_v13  ;;  %v1033_v49 = vpack.c.bf16 %v1002_v10, %v1001_v51 }
  0xf6   : > { %2252 = vmatmul.mubr.bf16.gmra.mrb[104].mxu0 %v4234_v11  ;;  %2349 = vmatmul.mubr.bf16.gmra.mrb[104].mxu1 %v4067_v26 }
  0xf7   : > { %2259 = vmatprep.mubr.bf16.mxu0 %v4236_v34  ;;  %2356 = vmatprep.mubr.bf16.mxu1 %v4075_v31  ;;  %v1003_v31 = vld [vmem:[#allocation2 + $0x4a] sm:$0xff] }
  0xf8   : > { %v1034_v58 = vpack.c.bf16 %v1004_v12, %v1003_v31 }
  0xf9   : > { %v2938_v36 = vpop.f32.mrb[0].mxu0  ;;  %v3010_v13 = vpop.f32.mrb[0].mxu1 }
  0xfa   : > { %v2939_v52 = vpop.f32.mrb[1].mxu0  ;;  %v3011_v29 = vpop.f32.mrb[1].mxu1 }
  0xfb   : > { %v4242_v35 = vadd.f32 %v2939_v52, %v2938_v36  ;;  %v4244_v38 = vadd.f32 %v3011_v29, %v3010_v13  ;;  %v2941_v39 = vpop.f32.mrb[2].mxu0  ;;  %v3013_v8 = vpop.f32.mrb[2].mxu1 }
  0xfc   : > { %v2942_v55 = vpop.f32.mrb[3].mxu0  ;;  %v3014_v59 = vpop.f32.mrb[3].mxu1 }
  0xfd   : > { %v4246_v26 = vadd.f32 %v2942_v55, %v2941_v39  ;;  %v4248_v61 = vadd.f32 %v3014_v59, %v3013_v8 }
  0xfe   : > { %2260 = vmatmul.mubr.bf16.gmra.mrb[108].mxu0 %v4128_v1  ;;  %2357 = vmatmul.mubr.bf16.gmra.mrb[108].mxu1 %v4093_v40 }
  0xff   : > { %2364 = vmatprep.mubr.bf16.mxu1 %v4102_v47  ;;  %3410 = vmatprep.mubr.bf16.mxu0 %v1033_v49 }
 0x101   : > { %v2944_v17 = vpop.f32.mrb[4].mxu0  ;;  %v3016_v41 = vpop.f32.mrb[4].mxu1 }
 0x102   : > { %v2945_v62 = vpop.f32.mrb[5].mxu0  ;;  %v3017_v56 = vpop.f32.mrb[5].mxu1 }
 0x103   : > { %v4253_v63 = vadd.f32 %v2945_v62, %v2944_v17  ;;  %v4255_v2 = vadd.f32 %v3017_v56, %v3016_v41  ;;  %v2947_v4 = vpop.f32.mrb[6].mxu0  ;;  %v3019_v20 = vpop.f32.mrb[6].mxu1 }
 0x104   : > { %v2948_v6 = vpop.f32.mrb[7].mxu0  ;;  %v3020_v7 = vpop.f32.mrb[7].mxu1 }
 0x105   : > { %v4257_v53 = vadd.f32 %v2948_v6, %v2947_v4  ;;  %v4259_v40 = vadd.f32 %v3020_v7, %v3019_v20  ;;  %v897_v20 = vld [vmem:[#allocation2 + $0x150] sm:$0xff]  ;;  %v898_v6 = vld [vmem:[#allocation2 + $0x158] sm:$0xff] }
 0x106   : > { %2365 = vmatmul.mubr.bf16.gmra.mrb[112].mxu1 %v4110_v46  ;;  %3411 = vmatmul.mubr.bf16.vlgmr.msra.gmra.mrb[112].mxu0 %v1034_v58 }
 0x107   : > { %2372 = vmatprep.mubr.bf16.mxu1 %v4118_v18  ;;  %3414 = vmatprep.mubr.bf16.mxu0 %v4069_v30 }
 0x109   : > { %v2950_v47 = vpop.f32.mrb[8].mxu0  ;;  %v3022_v57 = vpop.f32.mrb[8].mxu1 }
 0x10a   : > { %v2951_v45 = vpop.f32.mrb[9].mxu0  ;;  %v3023_v14 = vpop.f32.mrb[9].mxu1 }
 0x10b   : > { %v4264_v19 = vadd.f32 %v2951_v45, %v2950_v47  ;;  %v4266_v48 = vadd.f32 %v3023_v14, %v3022_v57  ;;  %v2953_v50 = vpop.f32.mrb[10].mxu0  ;;  %v3025_v15 = vpop.f32.mrb[10].mxu1  ;;  %v917_v45 = vpack.c.bf16 %v898_v6, %v897_v20 }
 0x10c   : > { %v2954_v21 = vpop.f32.mrb[11].mxu0  ;;  %v3026_v28 = vpop.f32.mrb[11].mxu1 }
 0x10d   : > { %v4268_v44 = vadd.f32 %v2954_v21, %v2953_v50  ;;  %v4270_v46 = vadd.f32 %v3026_v28, %v3025_v15 }
 0x10e   : > { %2373 = vmatmul.mubr.bf16.gmra.mrb[116].mxu1 %v4124_v0  ;;  %3415 = vmatmul.mubr.bf16.gmra.mrb[116].mxu0 %v4095_v43  ;;  %v895_v43 = vld [vmem:[#allocation2 + $0x138] sm:$0xff] }
 0x10f   : > { %2380 = vmatprep.mubr.bf16.mxu1 %v4216_v3  ;;  %3418 = vmatprep.mubr.bf16.mxu0 %v4112_v22  ;;  %v896_v22 = vld [vmem:[#allocation2 + $0x140] sm:$0xff] }
 0x110   : > { %v916_v12 = vpack.c.bf16 %v896_v22, %v895_v43 }
 0x111   : > { %v2956_v30 = vpop.f32.mrb[12].mxu0  ;;  %v3028_v18 = vpop.f32.mrb[12].mxu1 }
 0x112   : > { %v2957_v51 = vpop.f32.mrb[13].mxu0  ;;  %v3029_v10 = vpop.f32.mrb[13].mxu1 }
 0x113   : > { %v4276_v36 = vadd.f32 %v2957_v51, %v2956_v30  ;;  %v4278_v13 = vadd.f32 %v3029_v10, %v3028_v18  ;;  %v2959_v52 = vpop.f32.mrb[14].mxu0  ;;  %v3031_v29 = vpop.f32.mrb[14].mxu1  ;;  %v899_v18 = vld [vmem:[#allocation2 + $0x168] sm:$0xff]  ;;  %v900_v51 = vld [vmem:[#allocation2 + $0x170] sm:$0xff] }
 0x114   : > { %v2960_v39 = vpop.f32.mrb[15].mxu0  ;;  %v3032_v8 = vpop.f32.mrb[15].mxu1 }
 0x115   : > { %v4280_v49 = vadd.f32 %v2960_v39, %v2959_v52  ;;  %v4282_v0 = vadd.f32 %v3032_v8, %v3031_v29  ;;  %v918_v39 = vpack.c.bf16 %v900_v51, %v899_v18 }
 0x116   : > { %2381 = vmatmul.mubr.bf16.gmra.mrb[120].mxu1 %v4161_v33  ;;  %3419 = vmatmul.mubr.bf16.gmra.mrb[120].mxu0 %v4126_v9 }
 0x117   : > { %2388 = vmatprep.mubr.bf16.mxu1 %v4222_v23  ;;  %3422 = vmatprep.mubr.bf16.mxu0 %v4134_v5 }
 0x119   : > { %v2962_v3 = vpop.f32.mrb[16].mxu0  ;;  %v3050_v55 = vpop.f32.mrb[16].mxu1 }
 0x11a   : > { %v2963_v59 = vpop.f32.mrb[17].mxu0  ;;  %v3051_v31 = vpop.f32.mrb[17].mxu1 }
 0x11b   : > { %v4288_v17 = vadd.f32 %v2963_v59, %v2962_v3  ;;  %v3052_v41 = vadd.f32 %v3051_v31, %v3050_v55  ;;  %v2965_v62 = vpop.f32.mrb[18].mxu0  ;;  %v3053_v56 = vpop.f32.mrb[18].mxu1  ;;  %v967_v31 = vld [vmem:[#allocation2 + $0x199] sm:$0xff] }
 0x11c   : > { %v2966_v58 = vpop.f32.mrb[19].mxu0  ;;  %v3054_v33 = vpop.f32.mrb[19].mxu1 }
 0x11d   : > { %v4291_v9 = vadd.f32 %v3052_v41, %v4242_v35  ;;  %v4293_v23 = vadd.f32 %v2966_v58, %v2965_v62  ;;  %v3055_v5 = vadd.f32 %v3054_v33, %v3053_v56 }
 0x11e   : > { %2389 = vmatmul.mubr.bf16.gmra.mrb[124].mxu1 %v916_v12  ;;  %3423 = vmatmul.mubr.bf16.gmra.mrb[124].mxu0 %v4147_v16  ;;  %v968_v12 = vld [vmem:[#allocation2 + $0x1a1] sm:$0xff] }
 0x11f   : > { %v4297_v4 = vadd.f32 %v3055_v5, %v4246_v26  ;;  %2396 = vmatprep.mubr.bf16.mxu1 %v4228_v24  ;;  %3426 = vmatprep.mubr.bf16.mxu0 %v4159_v32  ;;  %v984_v6 = vpack.c.bf16 %v968_v12, %v967_v31 }
 0x121   : > { %v2968_v7 = vpop.f32.mrb[20].mxu0  ;;  %v3056_v47 = vpop.f32.mrb[20].mxu1 }
 0x122   : > { %v2969_v57 = vpop.f32.mrb[21].mxu0  ;;  %v3057_v35 = vpop.f32.mrb[21].mxu1 }
 0x123   : > { %v4301_v14 = vadd.f32 %v2969_v57, %v2968_v7  ;;  %v3058_v50 = vadd.f32 %v3057_v35, %v3056_v47  ;;  %v2971_v15 = vpop.f32.mrb[22].mxu0  ;;  %v3059_v21 = vpop.f32.mrb[22].mxu1  ;;  %v903_v57 = vld [vmem:[#allocation2 + $0x198] sm:$0xff] }
 0x124   : > { %v2972_v16 = vpop.f32.mrb[23].mxu0  ;;  %v3060_v28 = vpop.f32.mrb[23].mxu1  ;;  %v1031_v35 = vld [vmem:[#allocation2 + $0x19a] sm:$0xff] }
 0x125   : > { %v4304_v26 = vadd.f32 %v3058_v50, %v4253_v63  ;;  %v4306_v24 = vadd.f32 %v2972_v16, %v2971_v15  ;;  %v3061_v32 = vadd.f32 %v3060_v28, %v3059_v21  ;;  %v3539_v16 = vld [vmem:[#allocation2 + $0x8] sm:$0xff] }
 0x126   : > { %2397 = vmatmul.mubr.bf16.gmra.mrb[128].mxu1 %v917_v45  ;;  %3427 = vmatmul.mubr.bf16.gmra.mrb[128].mxu0 %v4173_v25  ;;  %v1032_v45 = vld [vmem:[#allocation2 + $0x1a2] sm:$0xff]  ;;  %v920_v28 = vpack.c.bf16 %v3539_v16, %v903_v57 }
 0x127   : > { %v4310_v30 = vadd.f32 %v3061_v32, %v4257_v53  ;;  %2404 = vmatprep.mubr.bf16.mxu1 %v4234_v11  ;;  %3430 = vmatprep.mubr.bf16.mxu0 %v4182_v37  ;;  %v1048_v32 = vpack.c.bf16 %v1032_v45, %v1031_v35 }
 0x129   : > { %v2974_v10 = vpop.f32.mrb[24].mxu0  ;;  %v3062_v52 = vpop.f32.mrb[24].mxu1 }
 0x12a   : > { %v2975_v29 = vpop.f32.mrb[25].mxu0  ;;  %v3063_v63 = vpop.f32.mrb[25].mxu1 }
 0x12b   : > { %v4314_v8 = vadd.f32 %v2975_v29, %v2974_v10  ;;  %v3064_v43 = vadd.f32 %v3063_v63, %v3062_v52  ;;  %v2977_v22 = vpop.f32.mrb[26].mxu0  ;;  %v3065_v3 = vpop.f32.mrb[26].mxu1 }
 0x12c   : > { %v2978_v25 = vpop.f32.mrb[27].mxu0  ;;  %v3066_v55 = vpop.f32.mrb[27].mxu1 }
 0x12d   : > { %v4317_v53 = vadd.f32 %v3064_v43, %v4264_v19  ;;  %v4319_v11 = vadd.f32 %v2978_v25, %v2977_v22  ;;  %v3067_v37 = vadd.f32 %v3066_v55, %v3065_v3 }
 0x12e   : > { %2405 = vmatmul.mubr.bf16.gmra.mrb[132].mxu1 %v918_v39  ;;  %3431 = vmatmul.mubr.bf16.gmra.mrb[132].mxu0 %v4188_v27 }
 0x12f   : > { %v4323_v59 = vadd.f32 %v3067_v37, %v4268_v44  ;;  %2412 = vmatprep.mubr.bf16.mxu1 %v4128_v1  ;;  %3434 = vmatprep.mubr.bf16.mxu0 %v4194_v60 }
 0x131   : > { %v2980_v41 = vpop.f32.mrb[28].mxu0  ;;  %v3068_v62 = vpop.f32.mrb[28].mxu1 }
 0x132   : > { %v2981_v56 = vpop.f32.mrb[29].mxu0  ;;  %v3069_v19 = vpop.f32.mrb[29].mxu1 }
 0x133   : > { %v4327_v58 = vadd.f32 %v2981_v56, %v2980_v41  ;;  %v3070_v33 = vadd.f32 %v3069_v19, %v3068_v62  ;;  %v2983_v5 = vpop.f32.mrb[30].mxu0  ;;  %v3071_v20 = vpop.f32.mrb[30].mxu1 }
 0x134   : > { %v2984_v27 = vpop.f32.mrb[31].mxu0  ;;  %v3072_v7 = vpop.f32.mrb[31].mxu1 }
 0x135   : > { %v4330_v44 = vadd.f32 %v3070_v33, %v4276_v36  ;;  %v4332_v1 = vadd.f32 %v2984_v27, %v2983_v5  ;;  %v3073_v60 = vadd.f32 %v3072_v7, %v3071_v20 }
 0x136   : > { %2413 = vmatmul.mubr.bf16.gmra.mrb[136].mxu1 %v4196_v54  ;;  %3435 = vmatmul.mubr.bf16.gmra.mrb[136].mxu0 %v4202_v42 }
 0x137   : > { %v4337_v47 = vadd.f32 %v3073_v60, %v4280_v49  ;;  %2420 = vmatprep.mubr.bf16.mxu1 %v984_v6  ;;  %3438 = vmatprep.mubr.bf16.mxu0 %v4236_v34 }
 0x139   : > { %v2986_v50 = vpop.f32.mrb[32].mxu0  ;;  %v3074_v15 = vpop.f32.mrb[32].mxu1 }
 0x13a   : > { %v2987_v36 = vpop.f32.mrb[33].mxu0  ;;  %v3075_v21 = vpop.f32.mrb[33].mxu1 }
 0x13b   : > { %v4340_v18 = vadd.f32 %v2987_v36, %v2986_v50  ;;  %v3076_v54 = vadd.f32 %v3075_v21, %v3074_v15  ;;  %v2989_v42 = vpop.f32.mrb[34].mxu0  ;;  %v3077_v51 = vpop.f32.mrb[34].mxu1 }
 0x13c   : > { %v2990_v49 = vpop.f32.mrb[35].mxu0  ;;  %v3078_v10 = vpop.f32.mrb[35].mxu1 }
 0x13d   : > { %v4343_v52 = vadd.f32 %v3076_v54, %v4288_v17  ;;  %v2991_v34 = vadd.f32 %v2990_v49, %v2989_v42  ;;  %v3079_v29 = vadd.f32 %v3078_v10, %v3077_v51 }
 0x13e   : > { %2421 = vmatmul.mubr.bf16.gmra.mrb[140].mxu1 %v920_v28  ;;  %3439 = vmatmul.mubr.bf16.gmra.mrb[140].mxu0 %v1048_v32 }
 0x13f   : > { %v4346_v63 = vadd.f32 %v3079_v29, %v4293_v23 }
 0x141   : > { %v2992_v39 = vpop.f32.mrb[36].mxu0  ;;  %v3080_v43 = vpop.f32.mrb[36].mxu1 }
 0x142   : > { %v2993_v22 = vpop.f32.mrb[37].mxu0  ;;  %v3081_v3 = vpop.f32.mrb[37].mxu1 }
 0x143   : > { %v4348_v25 = vadd.f32 %v2993_v22, %v2992_v39  ;;  %v3082_v55 = vadd.f32 %v3081_v3, %v3080_v43  ;;  %v2995_v37 = vpop.f32.mrb[38].mxu0  ;;  %v3083_v31 = vpop.f32.mrb[38].mxu1 }
 0x144   : > { %v2996_v12 = vpop.f32.mrb[39].mxu0  ;;  %v3084_v41 = vpop.f32.mrb[39].mxu1 }
 0x145   : > { %v4351_v17 = vadd.f32 %v3082_v55, %v4301_v14  ;;  %v2997_v62 = vadd.f32 %v2996_v12, %v2995_v37  ;;  %v3085_v56 = vadd.f32 %v3084_v41, %v3083_v31 }
 0x147   : > { %v4354_v19 = vadd.f32 %v3085_v56, %v4306_v24 }
 0x149   : > { %v2998_v23 = vpop.f32.mrb[40].mxu0  ;;  %v3086_v33 = vpop.f32.mrb[40].mxu1 }
 0x14a   : > { %v2999_v5 = vpop.f32.mrb[41].mxu0  ;;  %v3087_v20 = vpop.f32.mrb[41].mxu1 }
 0x14b   : > { %v4356_v6 = vadd.f32 %v2999_v5, %v2998_v23  ;;  %v3088_v27 = vadd.f32 %v3087_v20, %v3086_v33  ;;  %v3001_v7 = vpop.f32.mrb[42].mxu0  ;;  %v3089_v60 = vpop.f32.mrb[42].mxu1 }
 0x14c   : > { %v3002_v57 = vpop.f32.mrb[43].mxu0  ;;  %v3090_v35 = vpop.f32.mrb[43].mxu1 }
 0x14d   : > { %v4359_v45 = vadd.f32 %v3088_v27, %v4314_v8  ;;  %v4361_v14 = vadd.f32 %v3002_v57, %v3001_v7  ;;  %v3091_v50 = vadd.f32 %v3090_v35, %v3089_v60 }
 0x14f   : > { %v4364_v24 = vadd.f32 %v3091_v50, %v4319_v11 }
 0x151   : > { %v3004_v15 = vpop.f32.mrb[44].mxu0  ;;  %v3092_v36 = vpop.f32.mrb[44].mxu1 }
 0x152   : > { %v3005_v21 = vpop.f32.mrb[45].mxu0  ;;  %v3093_v16 = vpop.f32.mrb[45].mxu1 }
 0x153   : > { %v4366_v28 = vadd.f32 %v3005_v21, %v3004_v15  ;;  %v3094_v32 = vadd.f32 %v3093_v16, %v3092_v36  ;;  %v3007_v54 = vpop.f32.mrb[46].mxu0  ;;  %v3095_v42 = vpop.f32.mrb[46].mxu1 }
 0x154   : > { %v3008_v51 = vpop.f32.mrb[47].mxu0  ;;  %v3096_v49 = vpop.f32.mrb[47].mxu1 }
 0x155   : > { %v4369_v8 = vadd.f32 %v3094_v32, %v4327_v58  ;;  %v4371_v10 = vadd.f32 %v3008_v51, %v3007_v54  ;;  %v3097_v29 = vadd.f32 %v3096_v49, %v3095_v42 }
 0x157   : > { %v4374_v11 = vadd.f32 %v3097_v29, %v4332_v1 }
 0x159   : > { %v3098_v39 = vpop.f32.mrb[48].mxu1  ;;  %v3162_v43 = vpop.f32.mrb[48].mxu0 }
 0x15a   : > { %v3099_v22 = vpop.f32.mrb[49].mxu1  ;;  %v3163_v3 = vpop.f32.mrb[49].mxu0 }
 0x15b   : > { %v3100_v55 = vadd.f32 %v3099_v22, %v3098_v39  ;;  %v3164_v37 = vadd.f32 %v3163_v3, %v3162_v43  ;;  %v3101_v31 = vpop.f32.mrb[50].mxu1  ;;  %v3165_v12 = vpop.f32.mrb[50].mxu0 }
 0x15c   : > { %v3102_v41 = vpop.f32.mrb[51].mxu1  ;;  %v3166_v56 = vpop.f32.mrb[51].mxu0 }
 0x15d   : > { %v4377_v23 = vadd.f32 %v3100_v55, %v4340_v18  ;;  %v4380_v58 = vadd.f32 %v3164_v37, %v4291_v9  ;;  %v3103_v33 = vadd.f32 %v3102_v41, %v3101_v31  ;;  %v3167_v5 = vadd.f32 %v3166_v56, %v3165_v12 }
 0x15f   : > { %v4382_v1 = vadd.f32 %v3103_v33, %v2991_v34  ;;  %v4385_v20 = vadd.f32 %v3167_v5, %v4297_v4 }
 0x161   : > { %v3104_v27 = vpop.f32.mrb[52].mxu1  ;;  %v3168_v7 = vpop.f32.mrb[52].mxu0 }
 0x162   : > { %v3105_v60 = vpop.f32.mrb[53].mxu1  ;;  %v3169_v57 = vpop.f32.mrb[53].mxu0 }
 0x163   : > { %v3106_v35 = vadd.f32 %v3105_v60, %v3104_v27  ;;  %v3170_v50 = vadd.f32 %v3169_v57, %v3168_v7  ;;  %v3107_v15 = vpop.f32.mrb[54].mxu1  ;;  %v3171_v36 = vpop.f32.mrb[54].mxu0 }
 0x164   : > { %v3108_v18 = vpop.f32.mrb[55].mxu1  ;;  %v3172_v21 = vpop.f32.mrb[55].mxu0 }
 0x165   : > { %v4388_v9 = vadd.f32 %v3106_v35, %v4348_v25  ;;  %v4391_v16 = vadd.f32 %v3170_v50, %v4304_v26  ;;  %v3109_v34 = vadd.f32 %v3108_v18, %v3107_v15  ;;  %v3173_v32 = vadd.f32 %v3172_v21, %v3171_v36 }
 0x167   : > { %v4393_v4 = vadd.f32 %v3109_v34, %v2997_v62  ;;  %v4396_v54 = vadd.f32 %v3173_v32, %v4310_v30 }
 0x169   : > { %v3110_v42 = vpop.f32.mrb[56].mxu1  ;;  %v3174_v51 = vpop.f32.mrb[56].mxu0 }
 0x16a   : > { %v3111_v49 = vpop.f32.mrb[57].mxu1  ;;  %v3175_v29 = vpop.f32.mrb[57].mxu0 }
 0x16b   : > { %v3112_v39 = vadd.f32 %v3111_v49, %v3110_v42  ;;  %v3176_v43 = vadd.f32 %v3175_v29, %v3174_v51  ;;  %v3113_v22 = vpop.f32.mrb[58].mxu1  ;;  %v3177_v3 = vpop.f32.mrb[58].mxu0 }
 0x16c   : > { %v3114_v25 = vpop.f32.mrb[59].mxu1  ;;  %v3178_v55 = vpop.f32.mrb[59].mxu0 }
 0x16d   : > { %v4399_v26 = vadd.f32 %v3112_v39, %v4356_v6  ;;  %v4402_v37 = vadd.f32 %v3176_v43, %v4317_v53  ;;  %v3115_v62 = vadd.f32 %v3114_v25, %v3113_v22  ;;  %v3179_v31 = vadd.f32 %v3178_v55, %v3177_v3 }
 0x16f   : > { %v4405_v30 = vadd.f32 %v3115_v62, %v4361_v14  ;;  %v4408_v12 = vadd.f32 %v3179_v31, %v4323_v59 }
 0x171   : > { %v3116_v41 = vpop.f32.mrb[60].mxu1  ;;  %v3180_v56 = vpop.f32.mrb[60].mxu0 }
 0x172   : > { %v3117_v33 = vpop.f32.mrb[61].mxu1  ;;  %v3181_v5 = vpop.f32.mrb[61].mxu0 }
 0x173   : > { %v3118_v27 = vadd.f32 %v3117_v33, %v3116_v41  ;;  %v3182_v7 = vadd.f32 %v3181_v5, %v3180_v56  ;;  %v3119_v60 = vpop.f32.mrb[62].mxu1  ;;  %v3183_v6 = vpop.f32.mrb[62].mxu0 }
 0x174   : > { %v3120_v57 = vpop.f32.mrb[63].mxu1  ;;  %v3184_v35 = vpop.f32.mrb[63].mxu0 }
 0x175   : > { %v4411_v53 = vadd.f32 %v3118_v27, %v4366_v28  ;;  %v4414_v50 = vadd.f32 %v3182_v7, %v4330_v44  ;;  %v3121_v14 = vadd.f32 %v3120_v57, %v3119_v60  ;;  %v3185_v15 = vadd.f32 %v3184_v35, %v3183_v6 }
 0x177   : > { %v4417_v59 = vadd.f32 %v3121_v14, %v4371_v10  ;;  %v4420_v36 = vadd.f32 %v3185_v15, %v4337_v47 }
 0x179   : > { %v3122_v18 = vpop.f32.mrb[64].mxu1  ;;  %v3186_v21 = vpop.f32.mrb[64].mxu0 }
 0x17a   : > { %v3123_v34 = vpop.f32.mrb[65].mxu1  ;;  %v3187_v32 = vpop.f32.mrb[65].mxu0 }
 0x17b   : > { %v3124_v42 = vadd.f32 %v3123_v34, %v3122_v18  ;;  %v3188_v51 = vadd.f32 %v3187_v32, %v3186_v21  ;;  %v3125_v49 = vpop.f32.mrb[66].mxu1  ;;  %v3189_v28 = vpop.f32.mrb[66].mxu0 }
 0x17c   : > { %v3126_v29 = vpop.f32.mrb[67].mxu1  ;;  %v3190_v39 = vpop.f32.mrb[67].mxu0 }
 0x17d   : > { %v4423_v44 = vadd.f32 %v3124_v42, %v4244_v38  ;;  %v4426_v43 = vadd.f32 %v3188_v51, %v4343_v52  ;;  %v3127_v10 = vadd.f32 %v3126_v29, %v3125_v49  ;;  %v3191_v22 = vadd.f32 %v3190_v39, %v3189_v28 }
 0x17f   : > { %v4429_v47 = vadd.f32 %v3127_v10, %v4248_v61  ;;  %v4432_v3 = vadd.f32 %v3191_v22, %v4346_v63 }
 0x181   : > { %v3128_v25 = vpop.f32.mrb[68].mxu1  ;;  %v3192_v55 = vpop.f32.mrb[68].mxu0 }
 0x182   : > { %v3129_v62 = vpop.f32.mrb[69].mxu1  ;;  %v3193_v31 = vpop.f32.mrb[69].mxu0 }
 0x183   : > { %v3130_v41 = vadd.f32 %v3129_v62, %v3128_v25  ;;  %v3194_v56 = vadd.f32 %v3193_v31, %v3192_v55  ;;  %v3131_v33 = vpop.f32.mrb[70].mxu1  ;;  %v3195_v38 = vpop.f32.mrb[70].mxu0 }
 0x184   : > { %v3132_v5 = vpop.f32.mrb[71].mxu1  ;;  %v3196_v27 = vpop.f32.mrb[71].mxu0 }
 0x185   : > { %v4435_v52 = vadd.f32 %v3130_v41, %v4255_v2  ;;  %v4438_v7 = vadd.f32 %v3194_v56, %v4351_v17  ;;  %v3133_v61 = vadd.f32 %v3132_v5, %v3131_v33  ;;  %v3197_v60 = vadd.f32 %v3196_v27, %v3195_v38 }
 0x187   : > { %v4441_v63 = vadd.f32 %v3133_v61, %v4259_v40  ;;  %v4444_v6 = vadd.f32 %v3197_v60, %v4354_v19 }
 0x189   : > { %v3134_v57 = vpop.f32.mrb[72].mxu1  ;;  %v3198_v35 = vpop.f32.mrb[72].mxu0 }
 0x18a   : > { %v3135_v14 = vpop.f32.mrb[73].mxu1  ;;  %v3199_v15 = vpop.f32.mrb[73].mxu0 }
 0x18b   : > { %v3136_v18 = vadd.f32 %v3135_v14, %v3134_v57  ;;  %v3200_v21 = vadd.f32 %v3199_v15, %v3198_v35  ;;  %v3137_v34 = vpop.f32.mrb[74].mxu1  ;;  %v3201_v2 = vpop.f32.mrb[74].mxu0 }
 0x18c   : > { %v3138_v32 = vpop.f32.mrb[75].mxu1  ;;  %v3202_v42 = vpop.f32.mrb[75].mxu0 }
 0x18d   : > { %v4447_v17 = vadd.f32 %v3136_v18, %v4266_v48  ;;  %v4450_v51 = vadd.f32 %v3200_v21, %v4359_v45  ;;  %v3139_v40 = vadd.f32 %v3138_v32, %v3137_v34  ;;  %v3203_v49 = vadd.f32 %v3202_v42, %v3201_v2 }
 0x18f   : > { %v4453_v19 = vadd.f32 %v3139_v40, %v4270_v46  ;;  %v4456_v28 = vadd.f32 %v3203_v49, %v4364_v24 }
 0x191   : > { %v3140_v29 = vpop.f32.mrb[76].mxu1  ;;  %v3204_v39 = vpop.f32.mrb[76].mxu0 }
 0x192   : > { %v3141_v10 = vpop.f32.mrb[77].mxu1  ;;  %v3205_v22 = vpop.f32.mrb[77].mxu0 }
 0x193   : > { %v3142_v25 = vadd.f32 %v3141_v10, %v3140_v29  ;;  %v3206_v55 = vadd.f32 %v3205_v22, %v3204_v39  ;;  %v3143_v62 = vpop.f32.mrb[78].mxu1  ;;  %v3207_v48 = vpop.f32.mrb[78].mxu0 }
 0x194   : > { %v3144_v31 = vpop.f32.mrb[79].mxu1  ;;  %v3208_v41 = vpop.f32.mrb[79].mxu0 }
 0x195   : > { %v4459_v45 = vadd.f32 %v3142_v25, %v4278_v13  ;;  %v4462_v56 = vadd.f32 %v3206_v55, %v4369_v8  ;;  %v3145_v46 = vadd.f32 %v3144_v31, %v3143_v62  ;;  %v3209_v33 = vadd.f32 %v3208_v41, %v3207_v48 }
 0x197   : > { %v4465_v24 = vadd.f32 %v3145_v46, %v4282_v0  ;;  %v4468_v38 = vadd.f32 %v3209_v33, %v4374_v11 }
 0x199   : > { %v3210_v5 = vpop.f32.mrb[80].mxu0  ;;  %v3274_v27 = vpop.f32.mrb[80].mxu1 }
 0x19a   : > { %v3211_v61 = vpop.f32.mrb[81].mxu0  ;;  %v3275_v60 = vpop.f32.mrb[81].mxu1 }
 0x19b   : > { %v3212_v57 = vadd.f32 %v3211_v61, %v3210_v5  ;;  %v3276_v35 = vadd.f32 %v3275_v60, %v3274_v27  ;;  %v3213_v14 = vpop.f32.mrb[82].mxu0  ;;  %v3277_v13 = vpop.f32.mrb[82].mxu1 }
 0x19c   : > { %v3214_v15 = vpop.f32.mrb[83].mxu0  ;;  %v3278_v18 = vpop.f32.mrb[83].mxu1 }
 0x19d   : > { %v4471_v8 = vadd.f32 %v3212_v57, %v4377_v23  ;;  %v3215_v21 = vadd.f32 %v3214_v15, %v3213_v14  ;;  %v3279_v34 = vadd.f32 %v3278_v18, %v3277_v13  ;;  %v4474_v0 = vadd.f32 %v3276_v35, %v4380_v58 }
 0x19f   : > { %v4477_v11 = vadd.f32 %v3215_v21, %v4382_v1  ;;  %v4480_v2 = vadd.f32 %v3279_v34, %v4385_v20 }
 0x1a1   : > { %v3216_v32 = vpop.f32.mrb[84].mxu0  ;;  %v3280_v42 = vpop.f32.mrb[84].mxu1 }
 0x1a2   : > { %v3217_v40 = vpop.f32.mrb[85].mxu0  ;;  %v3281_v49 = vpop.f32.mrb[85].mxu1 }
 0x1a3   : > { %v3218_v29 = vadd.f32 %v3217_v40, %v3216_v32  ;;  %v3282_v39 = vadd.f32 %v3281_v49, %v3280_v42  ;;  %v3219_v10 = vpop.f32.mrb[86].mxu0  ;;  %v3283_v23 = vpop.f32.mrb[86].mxu1 }
 0x1a4   : > { %v3220_v22 = vpop.f32.mrb[87].mxu0  ;;  %v3284_v25 = vpop.f32.mrb[87].mxu1 }
 0x1a5   : > { %v4483_v55 = vadd.f32 %v3218_v29, %v4388_v9  ;;  %v3221_v58 = vadd.f32 %v3220_v22, %v3219_v10  ;;  %v3285_v62 = vadd.f32 %v3284_v25, %v3283_v23  ;;  %v4486_v1 = vadd.f32 %v3282_v39, %v4391_v16 }
 0x1a7   : > { %v4489_v20 = vadd.f32 %v3221_v58, %v4393_v4  ;;  %v4492_v48 = vadd.f32 %v3285_v62, %v4396_v54 }
 0x1a9   : > { %v3222_v31 = vpop.f32.mrb[88].mxu0  ;;  %v3286_v41 = vpop.f32.mrb[88].mxu1 }
 0x1aa   : > { %v3223_v46 = vpop.f32.mrb[89].mxu0  ;;  %v3287_v33 = vpop.f32.mrb[89].mxu1 }
 0x1ab   : > { %v3224_v5 = vadd.f32 %v3223_v46, %v3222_v31  ;;  %v3288_v27 = vadd.f32 %v3287_v33, %v3286_v41  ;;  %v3225_v61 = vpop.f32.mrb[90].mxu0  ;;  %v3289_v9 = vpop.f32.mrb[90].mxu1 }
 0x1ac   : > { %v3226_v60 = vpop.f32.mrb[91].mxu0  ;;  %v3290_v57 = vpop.f32.mrb[91].mxu1 }
 0x1ad   : > { %v4495_v35 = vadd.f32 %v3224_v5, %v4399_v26  ;;  %v3227_v16 = vadd.f32 %v3226_v60, %v3225_v61  ;;  %v3291_v14 = vadd.f32 %v3290_v57, %v3289_v9  ;;  %v4498_v4 = vadd.f32 %v3288_v27, %v4402_v37 }
 0x1af   : > { %v4501_v54 = vadd.f32 %v3227_v16, %v4405_v30  ;;  %v4504_v13 = vadd.f32 %v3291_v14, %v4408_v12 }
 0x1b1   : > { %v3228_v15 = vpop.f32.mrb[92].mxu0  ;;  %v3292_v18 = vpop.f32.mrb[92].mxu1 }
 0x1b2   : > { %v3229_v21 = vpop.f32.mrb[93].mxu0  ;;  %v3293_v34 = vpop.f32.mrb[93].mxu1 }
 0x1b3   : > { %v3230_v32 = vadd.f32 %v3229_v21, %v3228_v15  ;;  %v3294_v42 = vadd.f32 %v3293_v34, %v3292_v18  ;;  %v3231_v40 = vpop.f32.mrb[94].mxu0  ;;  %v3295_v26 = vpop.f32.mrb[94].mxu1 }
 0x1b4   : > { %v3232_v49 = vpop.f32.mrb[95].mxu0  ;;  %v3296_v29 = vpop.f32.mrb[95].mxu1 }
 0x1b5   : > { %v4507_v39 = vadd.f32 %v3230_v32, %v4411_v53  ;;  %v3233_v37 = vadd.f32 %v3232_v49, %v3231_v40  ;;  %v3297_v10 = vadd.f32 %v3296_v29, %v3295_v26  ;;  %v4510_v30 = vadd.f32 %v3294_v42, %v4414_v50 }
 0x1b7   : > { %v4513_v12 = vadd.f32 %v3233_v37, %v4417_v59  ;;  %v4516_v23 = vadd.f32 %v3297_v10, %v4420_v36 }
 0x1b9   : > { %v3234_v22 = vpop.f32.mrb[96].mxu0  ;;  %v3298_v25 = vpop.f32.mrb[96].mxu1 }
 0x1ba   : > { %v3235_v58 = vpop.f32.mrb[97].mxu0  ;;  %v3299_v62 = vpop.f32.mrb[97].mxu1 }
 0x1bb   : > { %v3236_v31 = vadd.f32 %v3235_v58, %v3234_v22  ;;  %v3300_v41 = vadd.f32 %v3299_v62, %v3298_v25  ;;  %v3237_v46 = vpop.f32.mrb[98].mxu0  ;;  %v3301_v53 = vpop.f32.mrb[98].mxu1 }
 0x1bc   : > { %v3238_v33 = vpop.f32.mrb[99].mxu0  ;;  %v3302_v5 = vpop.f32.mrb[99].mxu1 }
 0x1bd   : > { %v4519_v27 = vadd.f32 %v3236_v31, %v4423_v44  ;;  %v3239_v50 = vadd.f32 %v3238_v33, %v3237_v46  ;;  %v3303_v61 = vadd.f32 %v3302_v5, %v3301_v53  ;;  %v4522_v59 = vadd.f32 %v3300_v41, %v4426_v43 }
 0x1bf   : > { %v4525_v36 = vadd.f32 %v3239_v50, %v4429_v47  ;;  %v4528_v9 = vadd.f32 %v3303_v61, %v4432_v3 }
 0x1c1   : > { %v3240_v60 = vpop.f32.mrb[100].mxu0  ;;  %v3304_v57 = vpop.f32.mrb[100].mxu1 }
 0x1c2   : > { %v3241_v16 = vpop.f32.mrb[101].mxu0  ;;  %v3305_v14 = vpop.f32.mrb[101].mxu1 }
 0x1c3   : > { %v3242_v15 = vadd.f32 %v3241_v16, %v3240_v60  ;;  %v3306_v18 = vadd.f32 %v3305_v14, %v3304_v57  ;;  %v3243_v21 = vpop.f32.mrb[102].mxu0  ;;  %v3307_v44 = vpop.f32.mrb[102].mxu1 }
 0x1c4   : > { %v3244_v34 = vpop.f32.mrb[103].mxu0  ;;  %v3308_v32 = vpop.f32.mrb[103].mxu1 }
 0x1c5   : > { %v4531_v42 = vadd.f32 %v3242_v15, %v4435_v52  ;;  %v3245_v43 = vadd.f32 %v3244_v34, %v3243_v21  ;;  %v3309_v40 = vadd.f32 %v3308_v32, %v3307_v44  ;;  %v4534_v47 = vadd.f32 %v3306_v18, %v4438_v7 }
 0x1c7   : > { %v4537_v3 = vadd.f32 %v3245_v43, %v4441_v63  ;;  %v4540_v26 = vadd.f32 %v3309_v40, %v4444_v6 }
 0x1c9   : > { %v3246_v49 = vpop.f32.mrb[104].mxu0  ;;  %v3310_v29 = vpop.f32.mrb[104].mxu1 }
 0x1ca   : > { %v3247_v37 = vpop.f32.mrb[105].mxu0  ;;  %v3311_v10 = vpop.f32.mrb[105].mxu1 }
 0x1cb   : > { %v3248_v22 = vadd.f32 %v3247_v37, %v3246_v49  ;;  %v3312_v25 = vadd.f32 %v3311_v10, %v3310_v29  ;;  %v3249_v58 = vpop.f32.mrb[106].mxu0  ;;  %v3313_v52 = vpop.f32.mrb[106].mxu1 }
 0x1cc   : > { %v3250_v62 = vpop.f32.mrb[107].mxu0  ;;  %v3314_v31 = vpop.f32.mrb[107].mxu1 }
 0x1cd   : > { %v4543_v41 = vadd.f32 %v3248_v22, %v4447_v17  ;;  %v3251_v7 = vadd.f32 %v3250_v62, %v3249_v58  ;;  %v3315_v46 = vadd.f32 %v3314_v31, %v3313_v52  ;;  %v4546_v63 = vadd.f32 %v3312_v25, %v4450_v51 }
 0x1cf   : > { %v4549_v6 = vadd.f32 %v3251_v7, %v4453_v19  ;;  %v4552_v53 = vadd.f32 %v3315_v46, %v4456_v28 }
 0x1d1   : > { %v3252_v33 = vpop.f32.mrb[108].mxu0  ;;  %v3316_v5 = vpop.f32.mrb[108].mxu1 }
 0x1d2   : > { %v3253_v50 = vpop.f32.mrb[109].mxu0  ;;  %v3317_v61 = vpop.f32.mrb[109].mxu1 }
 0x1d3   : > { %v3254_v60 = vadd.f32 %v3253_v50, %v3252_v33  ;;  %v3318_v57 = vadd.f32 %v3317_v61, %v3316_v5  ;;  %v3255_v17 = vpop.f32.mrb[110].mxu0  ;;  %v3319_v16 = vpop.f32.mrb[110].mxu1 }
 0x1d4   : > { %v3256_v14 = vpop.f32.mrb[111].mxu0  ;;  %v3320_v15 = vpop.f32.mrb[111].mxu1 }
 0x1d5   : > { %v4555_v51 = vadd.f32 %v3254_v60, %v4459_v45  ;;  %v3257_v18 = vadd.f32 %v3256_v14, %v3255_v17  ;;  %v3321_v19 = vadd.f32 %v3320_v15, %v3319_v16  ;;  %v4558_v21 = vadd.f32 %v3318_v57, %v4462_v56 }
 0x1d7   : > { %v4561_v28 = vadd.f32 %v3257_v18, %v4465_v24  ;;  %v4564_v44 = vadd.f32 %v3321_v19, %v4468_v38 }
 0x1d9   : > { %v3322_v34 = vpop.f32.mrb[112].mxu1  ;;  %v3412_v45 = vpop.f32.mrb[112].mxu0 }
 0x1da   : > { %v2472_v56 = vadd.f32 %v3412_v45, %v4486_v1  ;;  %v3323_v32 = vpop.f32.mrb[113].mxu1  ;;  %v2463_v24 = vpop.f32.mrb[113].mxu0 }
 0x1db   : > { %v3324_v43 = vadd.f32 %v3323_v32, %v3322_v34  ;;  %v2464_v38 = vadd.f32 %v2463_v24, %v4474_v0  ;;  %v3325_v40 = vpop.f32.mrb[114].mxu1  ;;  %v3413_v49 = vpop.f32.mrb[114].mxu0 }
 0x1dc   : > { %2592 = vst [vmem:[%s4571_s10 + $0x10] sm:$0xff] %v2472_v56  ;;  %v2475_v29 = vadd.f32 %v3413_v49, %v4492_v48  ;;  %v3326_v37 = vpop.f32.mrb[115].mxu1  ;;  %v2466_v10 = vpop.f32.mrb[115].mxu0  ;;  %v2662_v31 = vmul.f32 %v2472_v56, %v2472_v56 }
 0x1dd   : > { %2590 = vst [vmem:[%s4571_s10] sm:$0xff] %v2464_v38  ;;  %v3327_v22 = vadd.f32 %v3326_v37, %v3325_v40  ;;  %v2467_v25 = vadd.f32 %v2466_v10, %v4480_v2  ;;  %v4580_v58 = vadd.f32 %v3324_v43, %v4471_v8  ;;  %v2660_v1 = vmul.f32 %v2464_v38, %v2464_v38 }
 0x1de   : > { %2593 = vst [vmem:[%s4571_s10 + $0x18] sm:$0xff] %v2475_v29  ;;  %v2663_v5 = vmul.f32 %v2475_v29, %v2475_v29 }
 0x1df   : > { %2591 = vst [vmem:[%s4571_s10 + $0x8] sm:$0xff] %v2467_v25  ;;  %v2622_v52 = vadd.f32 %v2467_v25, %v2464_v38  ;;  %v2661_v62 = vmul.f32 %v2467_v25, %v2467_v25  ;;  %v4585_v0 = vadd.f32 %v3327_v22, %v4477_v11 }
 0x1e1   : > { %v2623_v48 = vadd.f32 %v2622_v52, %v2472_v56  ;;  %v2692_v7 = vadd.f32 %v2661_v62, %v2660_v1  ;;  %v3328_v46 = vpop.f32.mrb[116].mxu1  ;;  %v3416_v33 = vpop.f32.mrb[116].mxu0 }
 0x1e2   : > { %v2488_v2 = vadd.f32 %v3416_v33, %v4510_v30  ;;  %v3329_v8 = vpop.f32.mrb[117].mxu1  ;;  %v2479_v50 = vpop.f32.mrb[117].mxu0 }
 0x1e3   : > { %v2693_v61 = vadd.f32 %v2692_v7, %v2662_v31  ;;  %v3330_v60 = vadd.f32 %v3329_v8, %v3328_v46  ;;  %v2480_v57 = vadd.f32 %v2479_v50, %v4498_v4  ;;  %v2624_v17 = vadd.f32 %v2623_v48, %v2475_v29  ;;  %v3331_v11 = vpop.f32.mrb[118].mxu1  ;;  %v3417_v16 = vpop.f32.mrb[118].mxu0 }
 0x1e4   : > { %2596 = vst [vmem:[%s4571_s10 + $0x30] sm:$0xff] %v2488_v2  ;;  %v2491_v14 = vadd.f32 %v3417_v16, %v4516_v23  ;;  %v3332_v15 = vpop.f32.mrb[119].mxu1  ;;  %v2482_v18 = vpop.f32.mrb[119].mxu0  ;;  %v2666_v49 = vmul.f32 %v2488_v2, %v2488_v2 }
 0x1e5   : > { %2594 = vst [vmem:[%s4571_s10 + $0x20] sm:$0xff] %v2480_v57  ;;  %v2625_v19 = vadd.f32 %v2624_v17, %v2480_v57  ;;  %v2664_v34 = vmul.f32 %v2480_v57, %v2480_v57  ;;  %v2694_v30 = vadd.f32 %v2693_v61, %v2663_v5  ;;  %v3333_v45 = vadd.f32 %v3332_v15, %v3331_v11 }
 0x1e6   : > { %2597 = vst [vmem:[%s4571_s10 + $0x38] sm:$0xff] %v2491_v14  ;;  %v2483_v56 = vadd.f32 %v2482_v18, %v4504_v13  ;;  %v4595_v32 = vadd.f32 %v3330_v60, %v4483_v55  ;;  %v2667_v52 = vmul.f32 %v2491_v14, %v2491_v14 }
 0x1e7   : > { %v2695_v4 = vadd.f32 %v2694_v30, %v2664_v34  ;;  %v4598_v24 = vadd.f32 %v3333_v45, %v4489_v20 }
 0x1e8   : > { %2595 = vst [vmem:[%s4571_s10 + $0x28] sm:$0xff] %v2483_v56  ;;  %v2626_v43 = vadd.f32 %v2625_v19, %v2483_v56  ;;  %v2665_v23 = vmul.f32 %v2483_v56, %v2483_v56 }
 0x1e9   : > { %v3334_v38 = vpop.f32.mrb[120].mxu1  ;;  %v3420_v40 = vpop.f32.mrb[120].mxu0 }
 0x1ea   : > { %v2627_v29 = vadd.f32 %v2626_v43, %v2488_v2  ;;  %v2696_v37 = vadd.f32 %v2695_v4, %v2665_v23  ;;  %v2504_v10 = vadd.f32 %v3420_v40, %v4534_v47  ;;  %v3335_v13 = vpop.f32.mrb[121].mxu1  ;;  %v2495_v22 = vpop.f32.mrb[121].mxu0 }
 0x1eb   : > { %v3336_v55 = vadd.f32 %v3335_v13, %v3334_v38  ;;  %v2496_v25 = vadd.f32 %v2495_v22, %v4522_v59  ;;  %v3337_v1 = vpop.f32.mrb[122].mxu1  ;;  %v3421_v20 = vpop.f32.mrb[122].mxu0 }
 0x1ec   : > { %v2697_v62 = vadd.f32 %v2696_v37, %v2666_v49  ;;  %2600 = vst [vmem:[%s4571_s10 + $0x50] sm:$0xff] %v2504_v10  ;;  %v2628_v31 = vadd.f32 %v2627_v29, %v2491_v14  ;;  %v2507_v48 = vadd.f32 %v3421_v20, %v4540_v26  ;;  %v3338_v7 = vpop.f32.mrb[123].mxu1  ;;  %v2498_v46 = vpop.f32.mrb[123].mxu0  ;;  %v2670_v11 = vmul.f32 %v2504_v10, %v2504_v10 }
 0x1ed   : > { %2598 = vst [vmem:[%s4571_s10 + $0x40] sm:$0xff] %v2496_v25  ;;  %v2668_v33 = vmul.f32 %v2496_v25, %v2496_v25  ;;  %v3339_v47 = vadd.f32 %v3338_v7, %v3337_v1  ;;  %v2499_v5 = vadd.f32 %v2498_v46, %v4528_v9  ;;  %v4608_v2 = vadd.f32 %v3336_v55, %v4495_v35 }
 0x1ee   : > { %v2629_v59 = vadd.f32 %v2628_v31, %v2496_v25  ;;  %v2698_v8 = vadd.f32 %v2697_v62, %v2667_v52  ;;  %2601 = vst [vmem:[%s4571_s10 + $0x58] sm:$0xff] %v2507_v48  ;;  %v2671_v30 = vmul.f32 %v2507_v48, %v2507_v48 }
 0x1ef   : > { %2599 = vst [vmem:[%s4571_s10 + $0x48] sm:$0xff] %v2499_v5  ;;  %v2669_v50 = vmul.f32 %v2499_v5, %v2499_v5  ;;  %v4613_v61 = vadd.f32 %v3339_v47, %v4501_v54 }
 0x1f0   : > { %v2699_v60 = vadd.f32 %v2698_v8, %v2668_v33  ;;  %v2630_v26 = vadd.f32 %v2629_v59, %v2499_v5 }
 0x1f1   : > { %v3340_v57 = vpop.f32.mrb[124].mxu1  ;;  %v3424_v17 = vpop.f32.mrb[124].mxu0 }
 0x1f2   : > { %v2631_v16 = vadd.f32 %v2630_v26, %v2504_v10  ;;  %v2700_v9 = vadd.f32 %v2699_v60, %v2669_v50  ;;  %v2520_v35 = vadd.f32 %v3424_v17, %v4558_v21  ;;  %v3341_v14 = vpop.f32.mrb[125].mxu1  ;;  %v2511_v15 = vpop.f32.mrb[125].mxu0 }
 0x1f3   : > { %v3342_v18 = vadd.f32 %v3341_v14, %v3340_v57  ;;  %v2512_v19 = vadd.f32 %v2511_v15, %v4546_v63  ;;  %v3343_v34 = vpop.f32.mrb[126].mxu1  ;;  %v3425_v54 = vpop.f32.mrb[126].mxu0 }
 0x1f4   : > { %v2701_v45 = vadd.f32 %v2700_v9, %v2670_v11  ;;  %2604 = vst [vmem:[%s4571_s10 + $0x70] sm:$0xff] %v2520_v35  ;;  %v2632_v56 = vadd.f32 %v2631_v16, %v2507_v48  ;;  %v2523_v4 = vadd.f32 %v3425_v54, %v4564_v44  ;;  %v3344_v43 = vpop.f32.mrb[127].mxu1  ;;  %v2514_v23 = vpop.f32.mrb[127].mxu0  ;;  %v2674_v25 = vmul.f32 %v2520_v35, %v2520_v35 }
 0x1f5   : > { %2602 = vst [vmem:[%s4571_s10 + $0x60] sm:$0xff] %v2512_v19  ;;  %v2672_v38 = vmul.f32 %v2512_v19, %v2512_v19  ;;  %v3345_v21 = vadd.f32 %v3344_v43, %v3343_v34  ;;  %v2515_v40 = vadd.f32 %v2514_v23, %v4552_v53  ;;  %v2391_v49 = vadd.f32 %v3342_v18, %v4507_v39 }
 0x1f6   : > { %v2633_v63 = vadd.f32 %v2632_v56, %v2512_v19  ;;  %v2702_v29 = vadd.f32 %v2701_v45, %v2671_v30  ;;  %2605 = vst [vmem:[%s4571_s10 + $0x78] sm:$0xff] %v2523_v4 }
 0x1f7   : > { %2603 = vst [vmem:[%s4571_s10 + $0x68] sm:$0xff] %v2515_v40  ;;  %v2673_v37 = vmul.f32 %v2515_v40, %v2515_v40  ;;  %v2394_v10 = vadd.f32 %v3345_v21, %v4513_v12  ;;  %v2675_v12 = vmul.f32 %v2523_v4, %v2523_v4 }
 0x1f8   : > { %v2703_v13 = vadd.f32 %v2702_v29, %v2672_v38  ;;  %v2634_v22 = vadd.f32 %v2633_v63, %v2515_v40 }
 0x1f9   : > { %v3346_v44 = vpop.f32.mrb[128].mxu1  ;;  %v3428_v55 = vpop.f32.mrb[128].mxu0 }
 0x1fa   : > { %v2635_v1 = vadd.f32 %v2634_v22, %v2520_v35  ;;  %v2704_v20 = vadd.f32 %v2703_v13, %v2673_v37  ;;  %v2536_v53 = vadd.f32 %v3428_v55, %v4595_v32  ;;  %v3347_v52 = vpop.f32.mrb[129].mxu1  ;;  %v2527_v39 = vpop.f32.mrb[129].mxu0 }
 0x1fb   : > { %v3348_v62 = vadd.f32 %v3347_v52, %v3346_v44  ;;  %v2528_v31 = vadd.f32 %v2527_v39, %v4580_v58  ;;  %v3349_v48 = vpop.f32.mrb[130].mxu1  ;;  %v3429_v7 = vpop.f32.mrb[130].mxu0 }
 0x1fc   : > { %v2705_v46 = vadd.f32 %v2704_v20, %v2674_v25  ;;  %2608 = vst [vmem:[%s4571_s10 + $0x90] sm:$0xff] %v2536_v53  ;;  %v2636_v33 = vadd.f32 %v2635_v1, %v2523_v4  ;;  %v2539_v47 = vadd.f32 %v3429_v7, %v4598_v24  ;;  %v3350_v5 = vpop.f32.mrb[131].mxu1  ;;  %v2530_v59 = vpop.f32.mrb[131].mxu0  ;;  %v2678_v35 = vmul.f32 %v2536_v53, %v2536_v53 }
 0x1fd   : > { %2606 = vst [vmem:[%s4571_s10 + $0x80] sm:$0xff] %v2528_v31  ;;  %v2676_v8 = vmul.f32 %v2528_v31, %v2528_v31  ;;  %v3351_v32 = vadd.f32 %v3350_v5, %v3349_v48  ;;  %v2531_v50 = vadd.f32 %v2530_v59, %v4585_v0  ;;  %v2399_v60 = vadd.f32 %v3348_v62, %v4519_v27 }
 0x1fe   : > { %v2637_v58 = vadd.f32 %v2636_v33, %v2528_v31  ;;  %v2706_v26 = vadd.f32 %v2705_v46, %v2675_v12  ;;  %2609 = vst [vmem:[%s4571_s10 + $0x98] sm:$0xff] %v2539_v47 }
 0x1ff   : > { %2607 = vst [vmem:[%s4571_s10 + $0x88] sm:$0xff] %v2531_v50  ;;  %v2677_v57 = vmul.f32 %v2531_v50, %v2531_v50  ;;  %v2402_v17 = vadd.f32 %v3351_v32, %v4525_v36  ;;  %v2679_v36 = vmul.f32 %v2539_v47, %v2539_v47 }
 0x200   : > { %v2707_v11 = vadd.f32 %v2706_v26, %v2676_v8  ;;  %v2638_v16 = vadd.f32 %v2637_v58, %v2531_v50 }
 0x201   : > { %v3352_v24 = vpop.f32.mrb[132].mxu1  ;;  %v3432_v9 = vpop.f32.mrb[132].mxu0 }
 0x202   : > { %v2639_v14 = vadd.f32 %v2638_v16, %v2536_v53  ;;  %v2708_v15 = vadd.f32 %v2707_v11, %v2677_v57  ;;  %v2552_v18 = vadd.f32 %v3432_v9, %v2391_v49  ;;  %v3353_v0 = vpop.f32.mrb[133].mxu1  ;;  %v2543_v19 = vpop.f32.mrb[133].mxu0 }
 0x203   : > { %v3354_v27 = vadd.f32 %v3353_v0, %v3352_v24  ;;  %v2544_v34 = vadd.f32 %v2543_v19, %v4608_v2  ;;  %v3355_v54 = vpop.f32.mrb[134].mxu1  ;;  %v3433_v30 = vpop.f32.mrb[134].mxu0 }
 0x204   : > { %v2709_v45 = vadd.f32 %v2708_v15, %v2678_v35  ;;  %2612 = vst [vmem:[%s4571_s10 + $0xb0] sm:$0xff] %v2552_v18  ;;  %v2640_v56 = vadd.f32 %v2639_v14, %v2539_v47  ;;  %v2555_v4 = vadd.f32 %v3433_v30, %v2394_v10  ;;  %v3356_v43 = vpop.f32.mrb[135].mxu1  ;;  %v2546_v23 = vpop.f32.mrb[135].mxu0  ;;  %v2682_v55 = vmul.f32 %v2552_v18, %v2552_v18 }
 0x205   : > { %2610 = vst [vmem:[%s4571_s10 + $0xa0] sm:$0xff] %v2544_v34  ;;  %v2680_v38 = vmul.f32 %v2544_v34, %v2544_v34  ;;  %v3357_v21 = vadd.f32 %v3356_v43, %v3355_v54  ;;  %v2547_v40 = vadd.f32 %v2546_v23, %v4613_v61  ;;  %v2407_v49 = vadd.f32 %v3354_v27, %v4531_v42 }
 0x206   : > { %v2641_v63 = vadd.f32 %v2640_v56, %v2544_v34  ;;  %v2710_v2 = vadd.f32 %v2709_v45, %v2679_v36  ;;  %2613 = vst [vmem:[%s4571_s10 + $0xb8] sm:$0xff] %v2555_v4  ;;  %v2683_v31 = vmul.f32 %v2555_v4, %v2555_v4 }
 0x207   : > { %2611 = vst [vmem:[%s4571_s10 + $0xa8] sm:$0xff] %v2547_v40  ;;  %v2681_v29 = vmul.f32 %v2547_v40, %v2547_v40  ;;  %v2410_v37 = vadd.f32 %v3357_v21, %v4537_v3 }
 0x208   : > { %v2711_v13 = vadd.f32 %v2710_v2, %v2680_v38  ;;  %v2642_v22 = vadd.f32 %v2641_v63, %v2547_v40 }
 0x209   : > { %v3358_v10 = vpop.f32.mrb[136].mxu1  ;;  %v3436_v44 = vpop.f32.mrb[136].mxu0 }
 0x20a   : > { %v2643_v25 = vadd.f32 %v2642_v22, %v2552_v18  ;;  %v2712_v1 = vadd.f32 %v2711_v13, %v2681_v29  ;;  %v2568_v20 = vadd.f32 %v3436_v44, %v2407_v49  ;;  %v3359_v61 = vpop.f32.mrb[137].mxu1  ;;  %v2559_v53 = vpop.f32.mrb[137].mxu0 }
 0x20b   : > { %v3360_v42 = vadd.f32 %v3359_v61, %v3358_v10  ;;  %v2560_v52 = vadd.f32 %v2559_v53, %v2399_v60  ;;  %v3361_v39 = vpop.f32.mrb[138].mxu1  ;;  %v3437_v62 = vpop.f32.mrb[138].mxu0 }
 0x20c   : > { %v2713_v3 = vadd.f32 %v2712_v1, %v2682_v55  ;;  %2616 = vst [vmem:[%s4571_s10 + $0xd0] sm:$0xff] %v2568_v20  ;;  %v2644_v48 = vadd.f32 %v2643_v25, %v2555_v4  ;;  %v2571_v7 = vadd.f32 %v3437_v62, %v2410_v37  ;;  %v3362_v12 = vpop.f32.mrb[139].mxu1  ;;  %v2562_v46 = vpop.f32.mrb[139].mxu0  ;;  %v2686_v16 = vmul.f32 %v2568_v20, %v2568_v20 }
 0x20d   : > { %2614 = vst [vmem:[%s4571_s10 + $0xc0] sm:$0xff] %v2560_v52  ;;  %v2684_v33 = vmul.f32 %v2560_v52, %v2560_v52  ;;  %v3363_v47 = vadd.f32 %v3362_v12, %v3361_v39  ;;  %v2563_v5 = vadd.f32 %v2562_v46, %v2402_v17  ;;  %v2415_v59 = vadd.f32 %v3360_v42, %v4543_v41 }
 0x20e   : > { %v2645_v8 = vadd.f32 %v2644_v48, %v2560_v52  ;;  %v2714_v32 = vadd.f32 %v2713_v3, %v2683_v31  ;;  %2617 = vst [vmem:[%s4571_s10 + $0xd8] sm:$0xff] %v2571_v7  ;;  %v2687_v0 = vmul.f32 %v2571_v7, %v2571_v7 }
 0x20f   : > { %2615 = vst [vmem:[%s4571_s10 + $0xc8] sm:$0xff] %v2563_v5  ;;  %v2685_v50 = vmul.f32 %v2563_v5, %v2563_v5  ;;  %v2418_v60 = vadd.f32 %v3363_v47, %v4549_v6 }
 0x210   : > { %v2715_v58 = vadd.f32 %v2714_v32, %v2684_v33  ;;  %v2646_v26 = vadd.f32 %v2645_v8, %v2563_v5 }
 0x211   : > { %v3364_v57 = vpop.f32.mrb[140].mxu1  ;;  %v3440_v11 = vpop.f32.mrb[140].mxu0 }
 0x212   : > { %v2647_v24 = vadd.f32 %v2646_v26, %v2568_v20  ;;  %v2716_v9 = vadd.f32 %v2715_v58, %v2685_v50  ;;  %v3365_v35 = vpop.f32.mrb[141].mxu1  ;;  %v2575_v14 = vpop.f32.mrb[141].mxu0 }
 0x213   : > { %v3366_v17 = vadd.f32 %v3365_v35, %v3364_v57  ;;  %v2576_v15 = vadd.f32 %v2575_v14, %v2415_v59  ;;  %v3367_v41 = vpop.f32.mrb[142].mxu1  ;;  %v3441_v18 = vpop.f32.mrb[142].mxu0 }
 0x214   : > { %v2717_v19 = vadd.f32 %v2716_v9, %v2686_v16  ;;  %v2648_v27 = vadd.f32 %v2647_v24, %v2571_v7  ;;  %v3368_v6 = vpop.f32.mrb[143].mxu1  ;;  %v2578_v34 = vpop.f32.mrb[143].mxu0 }
 0x215   : > { %v2423_v54 = vadd.f32 %v3366_v17, %v4555_v51  ;;  %2618 = vst [vmem:[%s4571_s10 + $0xe0] sm:$0xff] %v2576_v15  ;;  %v2688_v30 = vmul.f32 %v2576_v15, %v2576_v15  ;;  %v3369_v36 = vadd.f32 %v3368_v6, %v3367_v41  ;;  %v2579_v45 = vadd.f32 %v2578_v34, %v2418_v60 }
 0x216   : > { %v2649_v56 = vadd.f32 %v2648_v27, %v2576_v15  ;;  %v2718_v4 = vadd.f32 %v2717_v19, %v2687_v0 }
 0x217   : > { %v2584_v43 = vadd.f32 %v3440_v11, %v2423_v54  ;;  %v2426_v23 = vadd.f32 %v3369_v36, %v4561_v28  ;;  %2619 = vst [vmem:[%s4571_s10 + $0xe8] sm:$0xff] %v2579_v45  ;;  %v2689_v38 = vmul.f32 %v2579_v45, %v2579_v45 }
 0x218   : > { %v2719_v21 = vadd.f32 %v2718_v4, %v2688_v30  ;;  %v2650_v40 = vadd.f32 %v2649_v56, %v2579_v45 }
 0x219   : > { %2620 = vst [vmem:[%s4571_s10 + $0xf0] sm:$0xff] %v2584_v43  ;;  %v2690_v49 = vmul.f32 %v2584_v43, %v2584_v43  ;;  %v2587_v63 = vadd.f32 %v3441_v18, %v2426_v23 }
 0x21a   : > { %v2651_v2 = vadd.f32 %v2650_v40, %v2584_v43  ;;  %v2720_v51 = vadd.f32 %v2719_v21, %v2689_v38 }
 0x21b   : > { %2621 = vst [vmem:[%s4571_s10 + $0xf8] sm:$0xff] %v2587_v63  ;;  %v2691_v29 = vmul.f32 %v2587_v63, %v2587_v63 }
 0x21c   : > { %v2652_v37 = vadd.f32 %v2651_v2, %v2587_v63  ;;  %v2721_v13 = vadd.f32 %v2720_v51, %v2690_v49 }
 0x21e   : > { %v2653_v22 = vrot.slane %v2652_v37, 4  ;;  %v2722_v10 = vadd.f32 %v2721_v13, %v2691_v29 }
 0x220   : > { %v2654_v44 = vadd.f32 %v2653_v22, %v2652_v37  ;;  %v2723_v55 = vrot.slane %v2722_v10, 4 }
 0x222   : > { %v2655_v28 = vrot.slane %v2654_v44, 2  ;;  %v2724_v25 = vadd.f32 %v2723_v55, %v2722_v10 }
 0x224   : > { %v2656_v1 = vadd.f32 %v2655_v28, %v2654_v44  ;;  %v2725_v20 = vrot.slane %v2724_v25, 2 }
 0x226   : > { %v2657_v61 = vrot.slane %v2656_v1, 1  ;;  %v2726_v53 = vadd.f32 %v2725_v20, %v2724_v25 }
 0x228   : > { %v2658_v42 = vadd.f32 %v2657_v61, %v2656_v1  ;;  %v2727_v52 = vrot.slane %v2726_v53, 1 }
 0x22a   : > { %2659 = vst [vmem:[%s265_s12] sm:$0x1] %v2658_v42  ;;  %v2728_v39 = vadd.f32 %v2727_v52, %v2726_v53 }
 0x22c   : > { %2729 = vst [vmem:[%s268_s20] sm:$0x1] %v2728_v39 }
 0x22d PF: > { %s17_s21 = sadd.s32 1, %s3546_s21  }
 0x22e   : > { %p14_p4 = scmp.ge.s32.totalorder %s17_s21, 4  }
 0x230   :  { %16 = sbr.rel (!%p14_p4) target bundleno = 1 (0x1), region = 93 }

</bundles_post_ra>
